<compile_context>
chip_gen: v5e
topology: v5e:2x2
jax: 0.10.0
libtpu: 0.0.40
codegen_flags: <defaults>
</compile_context>

<pallas_src>
from collections import OrderedDict
from functools import partial

import jax
import jax.numpy as jnp
from jax.experimental import pallas as pl
from jax.experimental.pallas import tpu as pltpu


def _round_up(x, m):
    return ((x + m - 1) // m) * m


def _cdiv(a, b):
    return (a + b - 1) // b


def _vmem_capacity_bytes():
    try:
        return int(pltpu.get_tpu_info().vmem_capacity_bytes)
    except Exception:
        return 64 << 20            # safe default (v7x per-TC VMEM)


# ----------------------------------------------------------------------------
# Pallas kernel: fused 3x3 stride-2 conv + folded BN + ReLU for th output rows
# ----------------------------------------------------------------------------
def _conv3x3s2_bn_relu_kernel(body_ref, halo_ref, wab_ref, w0_ref, shift_ref,
                              o_ref, *, th, wout, hout, cs, ws_out, mask_rows):
    # body_ref : (1, 2*th, WQS, 2*cs) bf16  input rows [2*th*i, 2*th*(i+1))
    #            lanes of pair p = [stored col 2p | stored col 2p+1]
    #            (stored col k+2 == input col k, cols 0,1 are the conv pad)
    # halo_ref : (1, 1, WQS, 2*cs)    bf16  input row 2*th*i - 1 (prev block)
    # wab_ref  : (3, 2*cs, CoutP)     bf16  [W[kh,1]; W[kh,2]] (BN scale folded)
    # w0_ref   : (3, cs, CoutP)       bf16  W[kh,0]            (dense, no zeros)
    # shift_ref: (1, CoutP)           f32   folded BN shift (0 in padded lanes)
    # o_ref    : (1, th, WS_out, CoutP) bf16 stored-layout output rows
    coutp = o_ref.shape[-1]
    i = pl.program_id(1)

    body = body_ref[...]                                   # (1, 2*th, WQS, 2*cs)
    wqs = body.shape[2]
    rows2 = body[0].reshape(th, 2, wqs, 2 * cs)            # free major-dim split
    even_rows = rows2[:, 0]                                # input rows 2u   (kh=1)
    odd_rows = rows2[:, 1]                                 # input rows 2u+1 (kh=2)

    halo = halo_ref[...][0, 0]                             # input row 2*th*i - 1
    halo = jnp.where(i > 0, halo, jnp.zeros_like(halo))    # row -1 is conv pad
    if th > 1:
        kh0_rows = jnp.concatenate([halo[None], odd_rows[:th - 1]], axis=0)
    else:
        kh0_rows = halo[None]                              # input rows 2u-1 (kh=0)

    acc = jnp.zeros((th * wout, coutp), jnp.float32)
    for kh, rows in enumerate((kh0_rows, even_rows, odd_rows)):
        # pair c+1 lanes = [x[2c] | x[2c+1]]  -> taps (kh,1),(kh,2)  K = 2*cs
        a_win = rows[:, 1:1 + wout, :].reshape(th * wout, 2 * cs)
        # pair c   odd half        =  x[2c-1] -> tap  (kh,0)         K = cs
        b_win = rows[:, 0:wout, cs:].reshape(th * wout, cs)
        acc = acc + jnp.dot(a_win, wab_ref[kh], preferred_element_type=jnp.float32)
        acc = acc + jnp.dot(b_win, w0_ref[kh], preferred_element_type=jnp.float32)

    y = jnp.maximum(acc + shift_ref[...], 0.0)
    y3 = y.reshape(th, wout, coutp)
    if mask_rows:
        # zero phantom rows (stored H is rounded up to even / th coverage)
        rid = th * i + jax.lax.broadcasted_iota(jnp.int32, (th, 1, 1), 0)
        y3 = jnp.where(rid < hout, y3, 0.0)
    y3 = y3.astype(o_ref.dtype)

    # Stored layout: cols [0,2) zero, [2, 2+wout) data, tail zero.
    o_ref[0, :, 0:2, :] = jnp.zeros((th, 2, coutp), o_ref.dtype)
    o_ref[0, :, 2:2 + wout, :] = y3
    if ws_out > 2 + wout:
        o_ref[0, :, 2 + wout:, :] = jnp.zeros((th, ws_out - 2 - wout, coutp),
                                              o_ref.dtype)


# ----------------------------------------------------------------------------
# Per-stage wrapper: stored-layout in -> stored-layout out (no XLA pads)
# ----------------------------------------------------------------------------
def conv_bn_relu_stage(x_stored, wab, w0, shift, in_h, in_w):
    """One backbone stage.

    x_stored: (B, HS_in, WS_in, cs) bf16 stored layout (see header), logical
    spatial size (in_h, in_w).  Returns (B, HS_out, WS_out, CoutP) bf16 in the
    stored layout expected by the next stage.
    """
    B, hs_in, ws_in, cs = x_stored.shape
    coutp = wab.shape[-1]
    assert wab.shape == (3, 2 * cs, coutp) and w0.shape == (3, cs, coutp)

    hout = _cdiv(in_h, 2)
    wout = _cdiv(in_w, 2)
    wqs_in = ws_in // 2
    assert ws_in % 2 == 0 and wqs_in >= wout + 1

    hs_out = _round_up(hout, 2)
    wqs_out = _round_up(_cdiv(wout, 2) + 1, 8)
    ws_out = 2 * wqs_out

    # ---- generation-aware sizing (128 MiB VMEM on v5e/v6e, 64 MiB on v7x) ----
    cap = _vmem_capacity_bytes()
    vmem_limit = int(min(cap * 3 // 4, 100 << 20))
    budget = (vmem_limit * 3) // 5

    def step_bytes(t):
        body = 2 * t * wqs_in * 2 * cs * 2
        halo = wqs_in * 2 * cs * 2
        outb = t * ws_out * coutp * 2
        wbytes = (wab.size + w0.size) * 2 + shift.size * 4
        accb = t * wout * coutp * 4
        return 2 * (body + halo + outb) + 2 * wbytes + 2 * accb + (2 << 20)

    th = 1
    for cand in (32, 16, 8, 4, 2, 1):
        if cand <= max(hout, 1) and step_bytes(cand) <= budget:
            th = cand
            break
    # Prefer an exact divisor of hout of comparable size (avoids phantom rows).
    for cand in range(th, 0, -1):
        if hout % cand == 0:
            if cand * 2 >= th:
                th = cand
            break

    n_i = _cdiv(hs_out, th)
    mask_rows = (th * n_i) > hout

    # Lane-fold of W column pairs: contiguity-preserving (free) reshape.
    x_view = x_stored.reshape(B, hs_in, wqs_in, 2 * cs)

    body_spec = pl.BlockSpec((1, 2 * th, wqs_in, 2 * cs),
                             lambda b, i: (b, i, 0, 0))
    halo_spec = pl.BlockSpec(
        (1, 1, wqs_in, 2 * cs),
        lambda b, i, _t=th: (b, jnp.maximum(2 * _t * i - 1, 0), 0, 0))

    return pl.pallas_call(
        partial(_conv3x3s2_bn_relu_kernel, th=th, wout=wout, hout=hout, cs=cs,
                ws_out=ws_out, mask_rows=mask_rows),
        out_shape=jax.ShapeDtypeStruct((B, hs_out, ws_out, coutp), jnp.bfloat16),
        grid_spec=pltpu.PrefetchScalarGridSpec(
            num_scalar_prefetch=0,
            grid=(B, n_i),
            in_specs=[
                body_spec,
                halo_spec,
                pl.BlockSpec((3, 2 * cs, coutp), lambda b, i: (0, 0, 0)),
                pl.BlockSpec((3, cs, coutp), lambda b, i: (0, 0, 0)),
                pl.BlockSpec((1, coutp), lambda b, i: (0, 0)),
            ],
            out_specs=pl.BlockSpec((1, th, ws_out, coutp),
                                   lambda b, i: (b, i, 0, 0)),
        ),
        compiler_params=pltpu.CompilerParams(
            dimension_semantics=("parallel", "parallel"),
            vmem_limit_bytes=vmem_limit),
    )(x_view, x_view, wab, w0, shift)


# ----------------------------------------------------------------------------
# Parameter preparation (BN fold, padding, bf16 cast) + synthetic backbone
# ----------------------------------------------------------------------------
def prepare_layer_params(w_hwio, gamma, beta, mean, var, cin_store, eps=1e-5):
    """Fold eval-mode BN into the conv weights and lay them out for the kernel."""
    _, _, cin, cout = w_hwio.shape
    scale = gamma / jnp.sqrt(var + eps)
    shift = beta - mean * scale
    coutp = _round_up(cout, 128)                           # lane-dense out

    wf = w_hwio * scale[None, None, None, :]               # fold BN scale
    wf = jnp.pad(wf, ((0, 0), (0, 0), (0, cin_store - cin), (0, coutp - cout)))
    # A-window lanes = [even col | odd col] -> rows [0,cs)=W[.,1], [cs,2cs)=W[.,2]
    wab = jnp.concatenate([wf[:, 1], wf[:, 2]], axis=1)    # (3, 2*cs, CoutP)
    # B-window (odd lane half of the previous pair) -> dense K=cs weight W[.,0]
    w0 = wf[:, 0]                                          # (3, cs, CoutP)
    shift_p = jnp.pad(shift, (0, coutp - cout)).reshape(1, coutp)

    return dict(
        wab=wab.astype(jnp.bfloat16), w0=w0.astype(jnp.bfloat16),
        shift=shift_p.astype(jnp.float32),
        cin=cin, cin_store=cin_store, cout=cout, cout_store=coutp,
        w_raw=w_hwio, scale_raw=scale, shift_raw=shift)


def init_backbone_params(key, in_ch=3, widths=(8, 16, 32, 64)):
    """Deterministic synthetic ResNet-ish backbone: 4x (3x3 s2 conv + BN + ReLU)."""
    layers = []
    cin = in_ch
    cin_store = _round_up(in_ch, 64)   # so 2*cs is a 128 multiple (lane dense)
    for cout in widths:
        key, k_w, k_g, k_b, k_m, k_v = jax.random.split(key, 6)
        w = jax.random.normal(k_w, (3, 3, cin, cout), jnp.float32) * 0.1
        gamma = 1.0 + 0.05 * jax.random.normal(k_g, (cout,), jnp.float32)
        beta = 0.05 * jax.random.normal(k_b, (cout,), jnp.float32)
        mean = 0.05 * jax.random.normal(k_m, (cout,), jnp.float32)
        var = jnp.abs(jax.random.normal(k_v, (cout,), jnp.float32)) + 0.5
        layers.append(prepare_layer_params(w, gamma, beta, mean, var, cin_store))
        cin = cout
        cin_store = layers[-1]['cout_store']   # activations stay channel-padded
    return layers


def to_stored_input(x_nchw, cin_store):
    """NCHW f32 network input -> stored-layout bf16 (only host-side pad left)."""
    B, C, H, W = x_nchw.shape
    hs = _round_up(H, 2)
    wqs = _round_up(_cdiv(W, 2) + 1, 8)
    ws = 2 * wqs
    x = jnp.transpose(x_nchw, (0, 2, 3, 1)).astype(jnp.bfloat16)
    return jnp.pad(x, ((0, 0), (0, hs - H), (2, ws - W - 2), (0, cin_store - C)))


# ----------------------------------------------------------------------------
# BackboneBase forward semantics
# ----------------------------------------------------------------------------
class BackboneBase:
    """JAX/Pallas re-implementation of BackboneBase.forward.

    forward(tensor) -> OrderedDict of NCHW feature maps, keyed '0'..'3' if
    return_interm_layers else {'0': layer4_out}.
    """

    def __init__(self, params, train_backbone, num_channels,
                 return_interm_layers, name):
        # train_backbone only toggles requires_grad in PyTorch; no forward effect.
        self.params = params
        self.name = name
        self.num_channels = num_channels
        self.return_interm_layers = return_interm_layers
        if name.startswith('resnet'):
            if return_interm_layers:
                self.return_layers = {'layer1': '0', 'layer2': '1',
                                      'layer3': '2', 'layer4': '3'}
            else:
                self.return_layers = {'layer4': '0'}
        else:
            # TODO(synk): 'clip' branch (arbitrary module) not synthesized.
            self.return_layers = {}

    def forward(self, tensor, text_conditioning=None):
        B, C, H, W = tensor.shape
        x = to_stored_input(tensor, self.params[0]['cin_store'])
        feats = OrderedDict()
        h, w = H, W
        for li, p in enumerate(self.params):
            x = conv_bn_relu_stage(x, p['wab'], p['w0'], p['shift'], h, w)
            h, w = _cdiv(h, 2), _cdiv(w, 2)
            lname = f'layer{li + 1}'
            if lname in self.return_layers:
                feat = x[:, :h, 2:2 + w, :p['cout']].astype(jnp.float32)
                feats[self.return_layers[lname]] = jnp.transpose(feat,
                                                                 (0, 3, 1, 2))
        return feats

    __call__ = forward


# ----------------------------------------------------------------------------
# Pure-JAX f32 reference (correctness sanity check of the fused bf16 path)
# ----------------------------------------------------------------------------
def _ref_conv_bn_relu_nchw(x_nchw, w_hwio, scale, shift):
    y = jax.lax.conv_general_dilated(
        x_nchw, w_hwio, window_strides=(2, 2), padding=((1, 1), (1, 1)),
        dimension_numbers=('NCHW', 'HWIO', 'NCHW'))
    y = y * scale[None, :, None, None] + shift[None, :, None, None]
    return jnp.maximum(y, 0.0)


if __name__ == "__main__":
    key = jax.random.PRNGKey(0)
    key, k_x = jax.random.split(key)

    # PyTorch conv inputs are NCHW: (batch=2, channels=3, H=32, W=32).
    x = jax.random.normal(k_x, (2, 3, 32, 32), jnp.float32)

    params = init_backbone_params(key, in_ch=3, widths=(8, 16, 32, 64))
    backbone = BackboneBase(params, train_backbone=True, num_channels=64,
                            return_interm_layers=False, name='resnet18')

    fwd = jax.jit(backbone.forward)
    xs = fwd(x)
    xs = jax.tree_util.tree_map(jax.block_until_ready, xs)

    # f32 reference for the whole stack (kernel path runs bf16 activations).
    ref = x
    for p in params:
        ref = _ref_conv_bn_relu_nchw(ref, p['w_raw'], p['scale_raw'],
                                     p['shift_raw'])

    out = xs['0']
    assert out.shape == (2, 64, 2, 2), out.shape
    err = float(jnp.max(jnp.abs(out - ref)))
    assert jnp.allclose(out, ref, atol=5e-2, rtol=5e-2), err

    print("KERNEL_OK")
</pallas_src>

<mosaic_0001>
module attributes {stable_mosaic.version = 11 : i64} {
  func.func @_conv3x3s2_bn_relu_kernel(%arg0: i32, %arg1: i32, %arg2: memref<1x32x24x128xbf16, #tpu.memory_space<vmem>>, %arg3: memref<1x1x24x128xbf16, #tpu.memory_space<vmem>>, %arg4: memref<3x128x128xbf16, #tpu.memory_space<vmem>>, %arg5: memref<3x64x128xbf16, #tpu.memory_space<vmem>>, %arg6: memref<1x128xf32, #tpu.memory_space<vmem>>, %arg7: memref<1x16x32x128xbf16, #tpu.memory_space<vmem>>) attributes {dimension_semantics = [#tpu.dimension_semantics<parallel>, #tpu.dimension_semantics<parallel>], iteration_bounds = array<i64: 2, 1>, scalar_prefetch = 0 : i64, scratch_operands = 0 : i64, tpu.core_type = #tpu.core_type<tc>, window_params = [{transform_indices = @transform_0, window_bounds = array<i64: 1, 32, 24, 128>}, {transform_indices = @transform_1, window_bounds = array<i64: 1, 1, 24, 128>}, {pipeline_mode = #tpu.pipeline_mode<synchronous>, transform_indices = @transform_2, window_bounds = array<i64: 3, 128, 128>}, {pipeline_mode = #tpu.pipeline_mode<synchronous>, transform_indices = @transform_3, window_bounds = array<i64: 3, 64, 128>}, {pipeline_mode = #tpu.pipeline_mode<synchronous>, transform_indices = @transform_4, window_bounds = array<i64: 1, 128>}, {transform_indices = @transform_5, window_bounds = array<i64: 1, 16, 32, 128>}]} {
    %c0 = arith.constant 0 : index
    %c0_0 = arith.constant 0 : index
    %c0_1 = arith.constant 0 : index
    %c0_2 = arith.constant 0 : index
    %0 = vector.load %arg2[%c0, %c0_0, %c0_1, %c0_2] : memref<1x32x24x128xbf16, #tpu.memory_space<vmem>>, vector<1x32x24x128xbf16>
    %1 = vector.shape_cast %0 : vector<1x32x24x128xbf16> to vector<32x24x128xbf16>
    %2 = vector.shape_cast %1 : vector<32x24x128xbf16> to vector<16x2x24x128xbf16>
    %3 = vector.extract_strided_slice %2 {offsets = [0, 0, 0, 0], sizes = [16, 1, 24, 128], strides = [1, 1, 1, 1]} : vector<16x2x24x128xbf16> to vector<16x1x24x128xbf16>
    %4 = vector.shape_cast %3 : vector<16x1x24x128xbf16> to vector<16x24x128xbf16>
    %5 = vector.extract_strided_slice %2 {offsets = [0, 1, 0, 0], sizes = [16, 1, 24, 128], strides = [1, 1, 1, 1]} : vector<16x2x24x128xbf16> to vector<16x1x24x128xbf16>
    %6 = vector.shape_cast %5 : vector<16x1x24x128xbf16> to vector<16x24x128xbf16>
    %c0_3 = arith.constant 0 : index
    %c0_4 = arith.constant 0 : index
    %c0_5 = arith.constant 0 : index
    %c0_6 = arith.constant 0 : index
    %7 = vector.load %arg3[%c0_3, %c0_4, %c0_5, %c0_6] : memref<1x1x24x128xbf16, #tpu.memory_space<vmem>>, vector<1x1x24x128xbf16>
    %8 = vector.shape_cast %7 : vector<1x1x24x128xbf16> to vector<24x128xbf16>
    %c0_i32 = arith.constant 0 : i32
    %9 = arith.cmpi sgt, %arg1, %c0_i32 : i32
    %cst = arith.constant 0.000000e+00 : bf16
    %10 = vector.broadcast %cst : bf16 to vector<24x128xbf16>
    %11 = arith.select %9, %8, %10 : vector<24x128xbf16>
    %12 = vector.shape_cast %11 : vector<24x128xbf16> to vector<1x24x128xbf16>
    %13 = vector.extract_strided_slice %6 {offsets = [0, 0, 0], sizes = [15, 24, 128], strides = [1, 1, 1]} : vector<16x24x128xbf16> to vector<15x24x128xbf16>
    %14 = tpu.concatenate %12, %13 in 0 : vector<1x24x128xbf16>, vector<15x24x128xbf16> -> vector<16x24x128xbf16>
    %cst_7 = arith.constant 0.000000e+00 : f32
    %15 = vector.broadcast %cst_7 : f32 to vector<256x128xf32>
    %16 = vector.extract_strided_slice %14 {offsets = [0, 1, 0], sizes = [16, 16, 128], strides = [1, 1, 1]} : vector<16x24x128xbf16> to vector<16x16x128xbf16>
    %17 = vector.shape_cast %16 : vector<16x16x128xbf16> to vector<256x128xbf16>
    %18 = vector.extract_strided_slice %14 {offsets = [0, 0, 64], sizes = [16, 16, 64], strides = [1, 1, 1]} : vector<16x24x128xbf16> to vector<16x16x64xbf16>
    %19 = vector.shape_cast %18 : vector<16x16x64xbf16> to vector<256x64xbf16>
    %c0_8 = arith.constant 0 : index
    %c0_9 = arith.constant 0 : index
    %c0_10 = arith.constant 0 : index
    %20 = vector.load %arg4[%c0_8, %c0_9, %c0_10] : memref<3x128x128xbf16, #tpu.memory_space<vmem>>, vector<1x128x128xbf16>
    %21 = vector.shape_cast %20 : vector<1x128x128xbf16> to vector<128x128xbf16>
    %cst_11 = arith.constant dense<0.000000e+00> : vector<256x128xf32>
    %22 = tpu.matmul %17, %21, %cst_11 {dimension_numbers = #tpu.dot_dimension_numbers<[1], [0], [0], [1], [0, 0, 1, 1], [], []>} : vector<256x128xbf16>, vector<128x128xbf16>, vector<256x128xf32> -> vector<256x128xf32>
    %23 = arith.addf %15, %22 : vector<256x128xf32>
    %c0_12 = arith.constant 0 : index
    %c0_13 = arith.constant 0 : index
    %c0_14 = arith.constant 0 : index
    %24 = vector.load %arg5[%c0_12, %c0_13, %c0_14] : memref<3x64x128xbf16, #tpu.memory_space<vmem>>, vector<1x64x128xbf16>
    %25 = vector.shape_cast %24 : vector<1x64x128xbf16> to vector<64x128xbf16>
    %cst_15 = arith.constant dense<0.000000e+00> : vector<256x128xf32>
    %26 = tpu.matmul %19, %25, %cst_15 {dimension_numbers = #tpu.dot_dimension_numbers<[1], [0], [0], [1], [0, 0, 1, 1], [], []>} : vector<256x64xbf16>, vector<64x128xbf16>, vector<256x128xf32> -> vector<256x128xf32>
    %27 = arith.addf %23, %26 : vector<256x128xf32>
    %28 = vector.extract_strided_slice %4 {offsets = [0, 1, 0], sizes = [16, 16, 128], strides = [1, 1, 1]} : vector<16x24x128xbf16> to vector<16x16x128xbf16>
    %29 = vector.shape_cast %28 : vector<16x16x128xbf16> to vector<256x128xbf16>
    %30 = vector.extract_strided_slice %4 {offsets = [0, 0, 64], sizes = [16, 16, 64], strides = [1, 1, 1]} : vector<16x24x128xbf16> to vector<16x16x64xbf16>
    %31 = vector.shape_cast %30 : vector<16x16x64xbf16> to vector<256x64xbf16>
    %c1 = arith.constant 1 : index
    %c0_16 = arith.constant 0 : index
    %c0_17 = arith.constant 0 : index
    %32 = vector.load %arg4[%c1, %c0_16, %c0_17] : memref<3x128x128xbf16, #tpu.memory_space<vmem>>, vector<1x128x128xbf16>
    %33 = vector.shape_cast %32 : vector<1x128x128xbf16> to vector<128x128xbf16>
    %cst_18 = arith.constant dense<0.000000e+00> : vector<256x128xf32>
    %34 = tpu.matmul %29, %33, %cst_18 {dimension_numbers = #tpu.dot_dimension_numbers<[1], [0], [0], [1], [0, 0, 1, 1], [], []>} : vector<256x128xbf16>, vector<128x128xbf16>, vector<256x128xf32> -> vector<256x128xf32>
    %35 = arith.addf %27, %34 : vector<256x128xf32>
    %c1_19 = arith.constant 1 : index
    %c0_20 = arith.constant 0 : index
    %c0_21 = arith.constant 0 : index
    %36 = vector.load %arg5[%c1_19, %c0_20, %c0_21] : memref<3x64x128xbf16, #tpu.memory_space<vmem>>, vector<1x64x128xbf16>
    %37 = vector.shape_cast %36 : vector<1x64x128xbf16> to vector<64x128xbf16>
    %cst_22 = arith.constant dense<0.000000e+00> : vector<256x128xf32>
    %38 = tpu.matmul %31, %37, %cst_22 {dimension_numbers = #tpu.dot_dimension_numbers<[1], [0], [0], [1], [0, 0, 1, 1], [], []>} : vector<256x64xbf16>, vector<64x128xbf16>, vector<256x128xf32> -> vector<256x128xf32>
    %39 = arith.addf %35, %38 : vector<256x128xf32>
    %40 = vector.extract_strided_slice %6 {offsets = [0, 1, 0], sizes = [16, 16, 128], strides = [1, 1, 1]} : vector<16x24x128xbf16> to vector<16x16x128xbf16>
    %41 = vector.shape_cast %40 : vector<16x16x128xbf16> to vector<256x128xbf16>
    %42 = vector.extract_strided_slice %6 {offsets = [0, 0, 64], sizes = [16, 16, 64], strides = [1, 1, 1]} : vector<16x24x128xbf16> to vector<16x16x64xbf16>
    %43 = vector.shape_cast %42 : vector<16x16x64xbf16> to vector<256x64xbf16>
    %c2 = arith.constant 2 : index
    %c0_23 = arith.constant 0 : index
    %c0_24 = arith.constant 0 : index
    %44 = vector.load %arg4[%c2, %c0_23, %c0_24] : memref<3x128x128xbf16, #tpu.memory_space<vmem>>, vector<1x128x128xbf16>
    %45 = vector.shape_cast %44 : vector<1x128x128xbf16> to vector<128x128xbf16>
    %cst_25 = arith.constant dense<0.000000e+00> : vector<256x128xf32>
    %46 = tpu.matmul %41, %45, %cst_25 {dimension_numbers = #tpu.dot_dimension_numbers<[1], [0], [0], [1], [0, 0, 1, 1], [], []>} : vector<256x128xbf16>, vector<128x128xbf16>, vector<256x128xf32> -> vector<256x128xf32>
    %47 = arith.addf %39, %46 : vector<256x128xf32>
    %c2_26 = arith.constant 2 : index
    %c0_27 = arith.constant 0 : index
    %c0_28 = arith.constant 0 : index
    %48 = vector.load %arg5[%c2_26, %c0_27, %c0_28] : memref<3x64x128xbf16, #tpu.memory_space<vmem>>, vector<1x64x128xbf16>
    %49 = vector.shape_cast %48 : vector<1x64x128xbf16> to vector<64x128xbf16>
    %cst_29 = arith.constant dense<0.000000e+00> : vector<256x128xf32>
    %50 = tpu.matmul %43, %49, %cst_29 {dimension_numbers = #tpu.dot_dimension_numbers<[1], [0], [0], [1], [0, 0, 1, 1], [], []>} : vector<256x64xbf16>, vector<64x128xbf16>, vector<256x128xf32> -> vector<256x128xf32>
    %51 = arith.addf %47, %50 : vector<256x128xf32>
    %c0_30 = arith.constant 0 : index
    %c0_31 = arith.constant 0 : index
    %52 = vector.load %arg6[%c0_30, %c0_31] : memref<1x128xf32, #tpu.memory_space<vmem>>, vector<1x128xf32>
    %53 = vector.broadcast %52 : vector<1x128xf32> to vector<256x128xf32>
    %54 = arith.addf %51, %53 : vector<256x128xf32>
    %cst_32 = arith.constant 0.000000e+00 : f32
    %55 = vector.broadcast %cst_32 : f32 to vector<256x128xf32>
    %56 = arith.maximumf %54, %55 : vector<256x128xf32>
    %57 = vector.shape_cast %56 : vector<256x128xf32> to vector<16x16x128xf32>
    %58 = arith.truncf %57 : vector<16x16x128xf32> to vector<16x16x128xbf16>
    %cst_33 = arith.constant 0.000000e+00 : bf16
    %59 = vector.broadcast %cst_33 : bf16 to vector<16x2x128xbf16>
    %c0_34 = arith.constant 0 : index
    %c0_35 = arith.constant 0 : index
    %c0_36 = arith.constant 0 : index
    %c0_37 = arith.constant 0 : index
    %60 = vector.load %arg7[%c0_34, %c0_35, %c0_36, %c0_37] : memref<1x16x32x128xbf16, #tpu.memory_space<vmem>>, vector<1x16x2x128xbf16>
    %61 = vector.shape_cast %60 : vector<1x16x2x128xbf16> to vector<16x2x128xbf16>
    %62 = vector.shape_cast %59 : vector<16x2x128xbf16> to vector<1x16x2x128xbf16>
    tpu.vector_store %arg7[%c0_34, %c0_35, %c0_36, %c0_37], %62 {strides = array<i32>} : memref<1x16x32x128xbf16, #tpu.memory_space<vmem>>, vector<1x16x2x128xbf16>,
    %c0_38 = arith.constant 0 : index
    %c0_39 = arith.constant 0 : index
    %c2_40 = arith.constant 2 : index
    %c0_41 = arith.constant 0 : index
    %63 = vector.load %arg7[%c0_38, %c0_39, %c2_40, %c0_41] : memref<1x16x32x128xbf16, #tpu.memory_space<vmem>>, vector<1x16x16x128xbf16>
    %64 = vector.shape_cast %63 : vector<1x16x16x128xbf16> to vector<16x16x128xbf16>
    %65 = vector.shape_cast %58 : vector<16x16x128xbf16> to vector<1x16x16x128xbf16>
    tpu.vector_store %arg7[%c0_38, %c0_39, %c2_40, %c0_41], %65 {strides = array<i32>} : memref<1x16x32x128xbf16, #tpu.memory_space<vmem>>, vector<1x16x16x128xbf16>,
    %cst_42 = arith.constant 0.000000e+00 : bf16
    %66 = vector.broadcast %cst_42 : bf16 to vector<16x14x128xbf16>
    %c0_43 = arith.constant 0 : index
    %c0_44 = arith.constant 0 : index
    %c18 = arith.constant 18 : index
    %c0_45 = arith.constant 0 : index
    %67 = vector.load %arg7[%c0_43, %c0_44, %c18, %c0_45] : memref<1x16x32x128xbf16, #tpu.memory_space<vmem>>, vector<1x16x14x128xbf16>
    %68 = vector.shape_cast %67 : vector<1x16x14x128xbf16> to vector<16x14x128xbf16>
    %69 = vector.shape_cast %66 : vector<16x14x128xbf16> to vector<1x16x14x128xbf16>
    tpu.vector_store %arg7[%c0_43, %c0_44, %c18, %c0_45], %69 {strides = array<i32>} : memref<1x16x32x128xbf16, #tpu.memory_space<vmem>>, vector<1x16x14x128xbf16>,
    return
  }
  func.func @transform_0(%arg0: i32, %arg1: i32) -> (i32, i32, i32, i32) {
    %c0_i32 = arith.constant 0 : i32
    %c0_i32_0 = arith.constant 0 : i32
    %c0_i32_1 = arith.constant 0 : i32
    return %arg0, %arg1, %c0_i32, %c0_i32_0 : i32, i32, i32, i32
  }
  func.func @transform_1(%arg0: i32, %arg1: i32) -> (i32, i32, i32, i32) {
    %c32_i32 = arith.constant 32 : i32
    %0 = arith.muli %c32_i32, %arg1 : i32
    %c1_i32 = arith.constant 1 : i32
    %1 = arith.subi %0, %c1_i32 : i32
    %c0_i32 = arith.constant 0 : i32
    %2 = arith.maxsi %1, %c0_i32 : i32
    %c0_i32_0 = arith.constant 0 : i32
    %c0_i32_1 = arith.constant 0 : i32
    %c0_i32_2 = arith.constant 0 : i32
    return %arg0, %2, %c0_i32_0, %c0_i32_1 : i32, i32, i32, i32
  }
  func.func @transform_2(%arg0: i32, %arg1: i32) -> (i32, i32, i32) {
    %c0_i32 = arith.constant 0 : i32
    %c0_i32_0 = arith.constant 0 : i32
    %c0_i32_1 = arith.constant 0 : i32
    %c0_i32_2 = arith.constant 0 : i32
    return %c0_i32, %c0_i32_0, %c0_i32_1 : i32, i32, i32
  }
  func.func @transform_3(%arg0: i32, %arg1: i32) -> (i32, i32, i32) {
    %c0_i32 = arith.constant 0 : i32
    %c0_i32_0 = arith.constant 0 : i32
    %c0_i32_1 = arith.constant 0 : i32
    %c0_i32_2 = arith.constant 0 : i32
    return %c0_i32, %c0_i32_0, %c0_i32_1 : i32, i32, i32
  }
  func.func @transform_4(%arg0: i32, %arg1: i32) -> (i32, i32) {
    %c0_i32 = arith.constant 0 : i32
    %c0_i32_0 = arith.constant 0 : i32
    %c0_i32_1 = arith.constant 0 : i32
    return %c0_i32, %c0_i32_0 : i32, i32
  }
  func.func @transform_5(%arg0: i32, %arg1: i32) -> (i32, i32, i32, i32) {
    %c0_i32 = arith.constant 0 : i32
    %c0_i32_0 = arith.constant 0 : i32
    %c0_i32_1 = arith.constant 0 : i32
    return %arg0, %arg1, %c0_i32, %c0_i32_0 : i32, i32, i32, i32
  }
}

module attributes {stable_mosaic.version = 11 : i64} {
  func.func @_conv3x3s2_bn_relu_kernel(%arg0: i32, %arg1: i32, %arg2: memref<1x16x16x256xbf16, #tpu.memory_space<vmem>>, %arg3: memref<1x1x16x256xbf16, #tpu.memory_space<vmem>>, %arg4: memref<3x256x128xbf16, #tpu.memory_space<vmem>>, %arg5: memref<3x128x128xbf16, #tpu.memory_space<vmem>>, %arg6: memref<1x128xf32, #tpu.memory_space<vmem>>, %arg7: memref<1x8x16x128xbf16, #tpu.memory_space<vmem>>) attributes {dimension_semantics = [#tpu.dimension_semantics<parallel>, #tpu.dimension_semantics<parallel>], iteration_bounds = array<i64: 2, 1>, scalar_prefetch = 0 : i64, scratch_operands = 0 : i64, tpu.core_type = #tpu.core_type<tc>, window_params = [{transform_indices = @transform_0, window_bounds = array<i64: 1, 16, 16, 256>}, {transform_indices = @transform_1, window_bounds = array<i64: 1, 1, 16, 256>}, {pipeline_mode = #tpu.pipeline_mode<synchronous>, transform_indices = @transform_2, window_bounds = array<i64: 3, 256, 128>}, {pipeline_mode = #tpu.pipeline_mode<synchronous>, transform_indices = @transform_3, window_bounds = array<i64: 3, 128, 128>}, {pipeline_mode = #tpu.pipeline_mode<synchronous>, transform_indices = @transform_4, window_bounds = array<i64: 1, 128>}, {transform_indices = @transform_5, window_bounds = array<i64: 1, 8, 16, 128>}]} {
    %c0 = arith.constant 0 : index
    %c0_0 = arith.constant 0 : index
    %c0_1 = arith.constant 0 : index
    %c0_2 = arith.constant 0 : index
    %0 = vector.load %arg2[%c0, %c0_0, %c0_1, %c0_2] : memref<1x16x16x256xbf16, #tpu.memory_space<vmem>>, vector<1x16x16x256xbf16>
    %1 = vector.shape_cast %0 : vector<1x16x16x256xbf16> to vector<16x16x256xbf16>
    %2 = vector.shape_cast %1 : vector<16x16x256xbf16> to vector<8x2x16x256xbf16>
    %3 = vector.extract_strided_slice %2 {offsets = [0, 0, 0, 0], sizes = [8, 1, 16, 256], strides = [1, 1, 1, 1]} : vector<8x2x16x256xbf16> to vector<8x1x16x256xbf16>
    %4 = vector.shape_cast %3 : vector<8x1x16x256xbf16> to vector<8x16x256xbf16>
    %5 = vector.extract_strided_slice %2 {offsets = [0, 1, 0, 0], sizes = [8, 1, 16, 256], strides = [1, 1, 1, 1]} : vector<8x2x16x256xbf16> to vector<8x1x16x256xbf16>
    %6 = vector.shape_cast %5 : vector<8x1x16x256xbf16> to vector<8x16x256xbf16>
    %c0_3 = arith.constant 0 : index
    %c0_4 = arith.constant 0 : index
    %c0_5 = arith.constant 0 : index
    %c0_6 = arith.constant 0 : index
    %7 = vector.load %arg3[%c0_3, %c0_4, %c0_5, %c0_6] : memref<1x1x16x256xbf16, #tpu.memory_space<vmem>>, vector<1x1x16x256xbf16>
    %8 = vector.shape_cast %7 : vector<1x1x16x256xbf16> to vector<16x256xbf16>
    %c0_i32 = arith.constant 0 : i32
    %9 = arith.cmpi sgt, %arg1, %c0_i32 : i32
    %cst = arith.constant 0.000000e+00 : bf16
    %10 = vector.broadcast %cst : bf16 to vector<16x256xbf16>
    %11 = arith.select %9, %8, %10 : vector<16x256xbf16>
    %12 = vector.shape_cast %11 : vector<16x256xbf16> to vector<1x16x256xbf16>
    %13 = vector.extract_strided_slice %6 {offsets = [0, 0, 0], sizes = [7, 16, 256], strides = [1, 1, 1]} : vector<8x16x256xbf16> to vector<7x16x256xbf16>
    %14 = tpu.concatenate %12, %13 in 0 : vector<1x16x256xbf16>, vector<7x16x256xbf16> -> vector<8x16x256xbf16>
    %cst_7 = arith.constant 0.000000e+00 : f32
    %15 = vector.broadcast %cst_7 : f32 to vector<64x128xf32>
    %16 = vector.extract_strided_slice %14 {offsets = [0, 1, 0], sizes = [8, 8, 256], strides = [1, 1, 1]} : vector<8x16x256xbf16> to vector<8x8x256xbf16>
    %17 = vector.shape_cast %16 : vector<8x8x256xbf16> to vector<64x256xbf16>
    %18 = vector.extract_strided_slice %14 {offsets = [0, 0, 128], sizes = [8, 8, 128], strides = [1, 1, 1]} : vector<8x16x256xbf16> to vector<8x8x128xbf16>
    %19 = vector.shape_cast %18 : vector<8x8x128xbf16> to vector<64x128xbf16>
    %c0_8 = arith.constant 0 : index
    %c0_9 = arith.constant 0 : index
    %c0_10 = arith.constant 0 : index
    %20 = vector.load %arg4[%c0_8, %c0_9, %c0_10] : memref<3x256x128xbf16, #tpu.memory_space<vmem>>, vector<1x256x128xbf16>
    %21 = vector.shape_cast %20 : vector<1x256x128xbf16> to vector<256x128xbf16>
    %cst_11 = arith.constant dense<0.000000e+00> : vector<64x128xf32>
    %22 = tpu.matmul %17, %21, %cst_11 {dimension_numbers = #tpu.dot_dimension_numbers<[1], [0], [0], [1], [0, 0, 1, 1], [], []>} : vector<64x256xbf16>, vector<256x128xbf16>, vector<64x128xf32> -> vector<64x128xf32>
    %23 = arith.addf %15, %22 : vector<64x128xf32>
    %c0_12 = arith.constant 0 : index
    %c0_13 = arith.constant 0 : index
    %c0_14 = arith.constant 0 : index
    %24 = vector.load %arg5[%c0_12, %c0_13, %c0_14] : memref<3x128x128xbf16, #tpu.memory_space<vmem>>, vector<1x128x128xbf16>
    %25 = vector.shape_cast %24 : vector<1x128x128xbf16> to vector<128x128xbf16>
    %cst_15 = arith.constant dense<0.000000e+00> : vector<64x128xf32>
    %26 = tpu.matmul %19, %25, %cst_15 {dimension_numbers = #tpu.dot_dimension_numbers<[1], [0], [0], [1], [0, 0, 1, 1], [], []>} : vector<64x128xbf16>, vector<128x128xbf16>, vector<64x128xf32> -> vector<64x128xf32>
    %27 = arith.addf %23, %26 : vector<64x128xf32>
    %28 = vector.extract_strided_slice %4 {offsets = [0, 1, 0], sizes = [8, 8, 256], strides = [1, 1, 1]} : vector<8x16x256xbf16> to vector<8x8x256xbf16>
    %29 = vector.shape_cast %28 : vector<8x8x256xbf16> to vector<64x256xbf16>
    %30 = vector.extract_strided_slice %4 {offsets = [0, 0, 128], sizes = [8, 8, 128], strides = [1, 1, 1]} : vector<8x16x256xbf16> to vector<8x8x128xbf16>
    %31 = vector.shape_cast %30 : vector<8x8x128xbf16> to vector<64x128xbf16>
    %c1 = arith.constant 1 : index
    %c0_16 = arith.constant 0 : index
    %c0_17 = arith.constant 0 : index
    %32 = vector.load %arg4[%c1, %c0_16, %c0_17] : memref<3x256x128xbf16, #tpu.memory_space<vmem>>, vector<1x256x128xbf16>
    %33 = vector.shape_cast %32 : vector<1x256x128xbf16> to vector<256x128xbf16>
    %cst_18 = arith.constant dense<0.000000e+00> : vector<64x128xf32>
    %34 = tpu.matmul %29, %33, %cst_18 {dimension_numbers = #tpu.dot_dimension_numbers<[1], [0], [0], [1], [0, 0, 1, 1], [], []>} : vector<64x256xbf16>, vector<256x128xbf16>, vector<64x128xf32> -> vector<64x128xf32>
    %35 = arith.addf %27, %34 : vector<64x128xf32>
    %c1_19 = arith.constant 1 : index
    %c0_20 = arith.constant 0 : index
    %c0_21 = arith.constant 0 : index
    %36 = vector.load %arg5[%c1_19, %c0_20, %c0_21] : memref<3x128x128xbf16, #tpu.memory_space<vmem>>, vector<1x128x128xbf16>
    %37 = vector.shape_cast %36 : vector<1x128x128xbf16> to vector<128x128xbf16>
    %cst_22 = arith.constant dense<0.000000e+00> : vector<64x128xf32>
    %38 = tpu.matmul %31, %37, %cst_22 {dimension_numbers = #tpu.dot_dimension_numbers<[1], [0], [0], [1], [0, 0, 1, 1], [], []>} : vector<64x128xbf16>, vector<128x128xbf16>, vector<64x128xf32> -> vector<64x128xf32>
    %39 = arith.addf %35, %38 : vector<64x128xf32>
    %40 = vector.extract_strided_slice %6 {offsets = [0, 1, 0], sizes = [8, 8, 256], strides = [1, 1, 1]} : vector<8x16x256xbf16> to vector<8x8x256xbf16>
    %41 = vector.shape_cast %40 : vector<8x8x256xbf16> to vector<64x256xbf16>
    %42 = vector.extract_strided_slice %6 {offsets = [0, 0, 128], sizes = [8, 8, 128], strides = [1, 1, 1]} : vector<8x16x256xbf16> to vector<8x8x128xbf16>
    %43 = vector.shape_cast %42 : vector<8x8x128xbf16> to vector<64x128xbf16>
    %c2 = arith.constant 2 : index
    %c0_23 = arith.constant 0 : index
    %c0_24 = arith.constant 0 : index
    %44 = vector.load %arg4[%c2, %c0_23, %c0_24] : memref<3x256x128xbf16, #tpu.memory_space<vmem>>, vector<1x256x128xbf16>
    %45 = vector.shape_cast %44 : vector<1x256x128xbf16> to vector<256x128xbf16>
    %cst_25 = arith.constant dense<0.000000e+00> : vector<64x128xf32>
    %46 = tpu.matmul %41, %45, %cst_25 {dimension_numbers = #tpu.dot_dimension_numbers<[1], [0], [0], [1], [0, 0, 1, 1], [], []>} : vector<64x256xbf16>, vector<256x128xbf16>, vector<64x128xf32> -> vector<64x128xf32>
    %47 = arith.addf %39, %46 : vector<64x128xf32>
    %c2_26 = arith.constant 2 : index
    %c0_27 = arith.constant 0 : index
    %c0_28 = arith.constant 0 : index
    %48 = vector.load %arg5[%c2_26, %c0_27, %c0_28] : memref<3x128x128xbf16, #tpu.memory_space<vmem>>, vector<1x128x128xbf16>
    %49 = vector.shape_cast %48 : vector<1x128x128xbf16> to vector<128x128xbf16>
    %cst_29 = arith.constant dense<0.000000e+00> : vector<64x128xf32>
    %50 = tpu.matmul %43, %49, %cst_29 {dimension_numbers = #tpu.dot_dimension_numbers<[1], [0], [0], [1], [0, 0, 1, 1], [], []>} : vector<64x128xbf16>, vector<128x128xbf16>, vector<64x128xf32> -> vector<64x128xf32>
    %51 = arith.addf %47, %50 : vector<64x128xf32>
    %c0_30 = arith.constant 0 : index
    %c0_31 = arith.constant 0 : index
    %52 = vector.load %arg6[%c0_30, %c0_31] : memref<1x128xf32, #tpu.memory_space<vmem>>, vector<1x128xf32>
    %53 = vector.broadcast %52 : vector<1x128xf32> to vector<64x128xf32>
    %54 = arith.addf %51, %53 : vector<64x128xf32>
    %cst_32 = arith.constant 0.000000e+00 : f32
    %55 = vector.broadcast %cst_32 : f32 to vector<64x128xf32>
    %56 = arith.maximumf %54, %55 : vector<64x128xf32>
    %57 = vector.shape_cast %56 : vector<64x128xf32> to vector<8x8x128xf32>
    %58 = arith.truncf %57 : vector<8x8x128xf32> to vector<8x8x128xbf16>
    %cst_33 = arith.constant 0.000000e+00 : bf16
    %59 = vector.broadcast %cst_33 : bf16 to vector<8x2x128xbf16>
    %c0_34 = arith.constant 0 : index
    %c0_35 = arith.constant 0 : index
    %c0_36 = arith.constant 0 : index
    %c0_37 = arith.constant 0 : index
    %60 = vector.load %arg7[%c0_34, %c0_35, %c0_36, %c0_37] : memref<1x8x16x128xbf16, #tpu.memory_space<vmem>>, vector<1x8x2x128xbf16>
    %61 = vector.shape_cast %60 : vector<1x8x2x128xbf16> to vector<8x2x128xbf16>
    %62 = vector.shape_cast %59 : vector<8x2x128xbf16> to vector<1x8x2x128xbf16>
    tpu.vector_store %arg7[%c0_34, %c0_35, %c0_36, %c0_37], %62 {strides = array<i32>} : memref<1x8x16x128xbf16, #tpu.memory_space<vmem>>, vector<1x8x2x128xbf16>,
    %c0_38 = arith.constant 0 : index
    %c0_39 = arith.constant 0 : index
    %c2_40 = arith.constant 2 : index
    %c0_41 = arith.constant 0 : index
    %63 = vector.load %arg7[%c0_38, %c0_39, %c2_40, %c0_41] : memref<1x8x16x128xbf16, #tpu.memory_space<vmem>>, vector<1x8x8x128xbf16>
    %64 = vector.shape_cast %63 : vector<1x8x8x128xbf16> to vector<8x8x128xbf16>
    %65 = vector.shape_cast %58 : vector<8x8x128xbf16> to vector<1x8x8x128xbf16>
    tpu.vector_store %arg7[%c0_38, %c0_39, %c2_40, %c0_41], %65 {strides = array<i32>} : memref<1x8x16x128xbf16, #tpu.memory_space<vmem>>, vector<1x8x8x128xbf16>,
    %cst_42 = arith.constant 0.000000e+00 : bf16
    %66 = vector.broadcast %cst_42 : bf16 to vector<8x6x128xbf16>
    %c0_43 = arith.constant 0 : index
    %c0_44 = arith.constant 0 : index
    %c10 = arith.constant 10 : index
    %c0_45 = arith.constant 0 : index
    %67 = vector.load %arg7[%c0_43, %c0_44, %c10, %c0_45] : memref<1x8x16x128xbf16, #tpu.memory_space<vmem>>, vector<1x8x6x128xbf16>
    %68 = vector.shape_cast %67 : vector<1x8x6x128xbf16> to vector<8x6x128xbf16>
    %69 = vector.shape_cast %66 : vector<8x6x128xbf16> to vector<1x8x6x128xbf16>
    tpu.vector_store %arg7[%c0_43, %c0_44, %c10, %c0_45], %69 {strides = array<i32>} : memref<1x8x16x128xbf16, #tpu.memory_space<vmem>>, vector<1x8x6x128xbf16>,
    return
  }
  func.func @transform_0(%arg0: i32, %arg1: i32) -> (i32, i32, i32, i32) {
    %c0_i32 = arith.constant 0 : i32
    %c0_i32_0 = arith.constant 0 : i32
    %c0_i32_1 = arith.constant 0 : i32
    return %arg0, %arg1, %c0_i32, %c0_i32_0 : i32, i32, i32, i32
  }
  func.func @transform_1(%arg0: i32, %arg1: i32) -> (i32, i32, i32, i32) {
    %c16_i32 = arith.constant 16 : i32
    %0 = arith.muli %c16_i32, %arg1 : i32
    %c1_i32 = arith.constant 1 : i32
    %1 = arith.subi %0, %c1_i32 : i32
    %c0_i32 = arith.constant 0 : i32
    %2 = arith.maxsi %1, %c0_i32 : i32
    %c0_i32_0 = arith.constant 0 : i32
    %c0_i32_1 = arith.constant 0 : i32
    %c0_i32_2 = arith.constant 0 : i32
    return %arg0, %2, %c0_i32_0, %c0_i32_1 : i32, i32, i32, i32
  }
  func.func @transform_2(%arg0: i32, %arg1: i32) -> (i32, i32, i32) {
    %c0_i32 = arith.constant 0 : i32
    %c0_i32_0 = arith.constant 0 : i32
    %c0_i32_1 = arith.constant 0 : i32
    %c0_i32_2 = arith.constant 0 : i32
    return %c0_i32, %c0_i32_0, %c0_i32_1 : i32, i32, i32
  }
  func.func @transform_3(%arg0: i32, %arg1: i32) -> (i32, i32, i32) {
    %c0_i32 = arith.constant 0 : i32
    %c0_i32_0 = arith.constant 0 : i32
    %c0_i32_1 = arith.constant 0 : i32
    %c0_i32_2 = arith.constant 0 : i32
    return %c0_i32, %c0_i32_0, %c0_i32_1 : i32, i32, i32
  }
  func.func @transform_4(%arg0: i32, %arg1: i32) -> (i32, i32) {
    %c0_i32 = arith.constant 0 : i32
    %c0_i32_0 = arith.constant 0 : i32
    %c0_i32_1 = arith.constant 0 : i32
    return %c0_i32, %c0_i32_0 : i32, i32
  }
  func.func @transform_5(%arg0: i32, %arg1: i32) -> (i32, i32, i32, i32) {
    %c0_i32 = arith.constant 0 : i32
    %c0_i32_0 = arith.constant 0 : i32
    %c0_i32_1 = arith.constant 0 : i32
    return %arg0, %arg1, %c0_i32, %c0_i32_0 : i32, i32, i32, i32
  }
}

module attributes {stable_mosaic.version = 11 : i64} {
  func.func @_conv3x3s2_bn_relu_kernel(%arg0: i32, %arg1: i32, %arg2: memref<1x8x8x256xbf16, #tpu.memory_space<vmem>>, %arg3: memref<1x1x8x256xbf16, #tpu.memory_space<vmem>>, %arg4: memref<3x256x128xbf16, #tpu.memory_space<vmem>>, %arg5: memref<3x128x128xbf16, #tpu.memory_space<vmem>>, %arg6: memref<1x128xf32, #tpu.memory_space<vmem>>, %arg7: memref<1x4x16x128xbf16, #tpu.memory_space<vmem>>) attributes {dimension_semantics = [#tpu.dimension_semantics<parallel>, #tpu.dimension_semantics<parallel>], iteration_bounds = array<i64: 2, 1>, scalar_prefetch = 0 : i64, scratch_operands = 0 : i64, tpu.core_type = #tpu.core_type<tc>, window_params = [{transform_indices = @transform_0, window_bounds = array<i64: 1, 8, 8, 256>}, {transform_indices = @transform_1, window_bounds = array<i64: 1, 1, 8, 256>}, {pipeline_mode = #tpu.pipeline_mode<synchronous>, transform_indices = @transform_2, window_bounds = array<i64: 3, 256, 128>}, {pipeline_mode = #tpu.pipeline_mode<synchronous>, transform_indices = @transform_3, window_bounds = array<i64: 3, 128, 128>}, {pipeline_mode = #tpu.pipeline_mode<synchronous>, transform_indices = @transform_4, window_bounds = array<i64: 1, 128>}, {transform_indices = @transform_5, window_bounds = array<i64: 1, 4, 16, 128>}]} {
    %c0 = arith.constant 0 : index
    %c0_0 = arith.constant 0 : index
    %c0_1 = arith.constant 0 : index
    %c0_2 = arith.constant 0 : index
    %0 = vector.load %arg2[%c0, %c0_0, %c0_1, %c0_2] : memref<1x8x8x256xbf16, #tpu.memory_space<vmem>>, vector<1x8x8x256xbf16>
    %1 = vector.shape_cast %0 : vector<1x8x8x256xbf16> to vector<8x8x256xbf16>
    %2 = vector.shape_cast %1 : vector<8x8x256xbf16> to vector<4x2x8x256xbf16>
    %3 = vector.extract_strided_slice %2 {offsets = [0, 0, 0, 0], sizes = [4, 1, 8, 256], strides = [1, 1, 1, 1]} : vector<4x2x8x256xbf16> to vector<4x1x8x256xbf16>
    %4 = vector.shape_cast %3 : vector<4x1x8x256xbf16> to vector<4x8x256xbf16>
    %5 = vector.extract_strided_slice %2 {offsets = [0, 1, 0, 0], sizes = [4, 1, 8, 256], strides = [1, 1, 1, 1]} : vector<4x2x8x256xbf16> to vector<4x1x8x256xbf16>
    %6 = vector.shape_cast %5 : vector<4x1x8x256xbf16> to vector<4x8x256xbf16>
    %c0_3 = arith.constant 0 : index
    %c0_4 = arith.constant 0 : index
    %c0_5 = arith.constant 0 : index
    %c0_6 = arith.constant 0 : index
    %7 = vector.load %arg3[%c0_3, %c0_4, %c0_5, %c0_6] : memref<1x1x8x256xbf16, #tpu.memory_space<vmem>>, vector<1x1x8x256xbf16>
    %8 = vector.shape_cast %7 : vector<1x1x8x256xbf16> to vector<8x256xbf16>
    %c0_i32 = arith.constant 0 : i32
    %9 = arith.cmpi sgt, %arg1, %c0_i32 : i32
    %cst = arith.constant 0.000000e+00 : bf16
    %10 = vector.broadcast %cst : bf16 to vector<8x256xbf16>
    %11 = arith.select %9, %8, %10 : vector<8x256xbf16>
    %12 = vector.shape_cast %11 : vector<8x256xbf16> to vector<1x8x256xbf16>
    %13 = vector.extract_strided_slice %6 {offsets = [0, 0, 0], sizes = [3, 8, 256], strides = [1, 1, 1]} : vector<4x8x256xbf16> to vector<3x8x256xbf16>
    %14 = tpu.concatenate %12, %13 in 0 : vector<1x8x256xbf16>, vector<3x8x256xbf16> -> vector<4x8x256xbf16>
    %cst_7 = arith.constant 0.000000e+00 : f32
    %15 = vector.broadcast %cst_7 : f32 to vector<16x128xf32>
    %16 = vector.extract_strided_slice %14 {offsets = [0, 1, 0], sizes = [4, 4, 256], strides = [1, 1, 1]} : vector<4x8x256xbf16> to vector<4x4x256xbf16>
    %17 = vector.shape_cast %16 : vector<4x4x256xbf16> to vector<16x256xbf16>
    %18 = vector.extract_strided_slice %14 {offsets = [0, 0, 128], sizes = [4, 4, 128], strides = [1, 1, 1]} : vector<4x8x256xbf16> to vector<4x4x128xbf16>
    %19 = vector.shape_cast %18 : vector<4x4x128xbf16> to vector<16x128xbf16>
    %c0_8 = arith.constant 0 : index
    %c0_9 = arith.constant 0 : index
    %c0_10 = arith.constant 0 : index
    %20 = vector.load %arg4[%c0_8, %c0_9, %c0_10] : memref<3x256x128xbf16, #tpu.memory_space<vmem>>, vector<1x256x128xbf16>
    %21 = vector.shape_cast %20 : vector<1x256x128xbf16> to vector<256x128xbf16>
    %cst_11 = arith.constant dense<0.000000e+00> : vector<16x128xf32>
    %22 = tpu.matmul %17, %21, %cst_11 {dimension_numbers = #tpu.dot_dimension_numbers<[1], [0], [0], [1], [0, 0, 1, 1], [], []>} : vector<16x256xbf16>, vector<256x128xbf16>, vector<16x128xf32> -> vector<16x128xf32>
    %23 = arith.addf %15, %22 : vector<16x128xf32>
    %c0_12 = arith.constant 0 : index
    %c0_13 = arith.constant 0 : index
    %c0_14 = arith.constant 0 : index
    %24 = vector.load %arg5[%c0_12, %c0_13, %c0_14] : memref<3x128x128xbf16, #tpu.memory_space<vmem>>, vector<1x128x128xbf16>
    %25 = vector.shape_cast %24 : vector<1x128x128xbf16> to vector<128x128xbf16>
    %cst_15 = arith.constant dense<0.000000e+00> : vector<16x128xf32>
    %26 = tpu.matmul %19, %25, %cst_15 {dimension_numbers = #tpu.dot_dimension_numbers<[1], [0], [0], [1], [0, 0, 1, 1], [], []>} : vector<16x128xbf16>, vector<128x128xbf16>, vector<16x128xf32> -> vector<16x128xf32>
    %27 = arith.addf %23, %26 : vector<16x128xf32>
    %28 = vector.extract_strided_slice %4 {offsets = [0, 1, 0], sizes = [4, 4, 256], strides = [1, 1, 1]} : vector<4x8x256xbf16> to vector<4x4x256xbf16>
    %29 = vector.shape_cast %28 : vector<4x4x256xbf16> to vector<16x256xbf16>
    %30 = vector.extract_strided_slice %4 {offsets = [0, 0, 128], sizes = [4, 4, 128], strides = [1, 1, 1]} : vector<4x8x256xbf16> to vector<4x4x128xbf16>
    %31 = vector.shape_cast %30 : vector<4x4x128xbf16> to vector<16x128xbf16>
    %c1 = arith.constant 1 : index
    %c0_16 = arith.constant 0 : index
    %c0_17 = arith.constant 0 : index
    %32 = vector.load %arg4[%c1, %c0_16, %c0_17] : memref<3x256x128xbf16, #tpu.memory_space<vmem>>, vector<1x256x128xbf16>
    %33 = vector.shape_cast %32 : vector<1x256x128xbf16> to vector<256x128xbf16>
    %cst_18 = arith.constant dense<0.000000e+00> : vector<16x128xf32>
    %34 = tpu.matmul %29, %33, %cst_18 {dimension_numbers = #tpu.dot_dimension_numbers<[1], [0], [0], [1], [0, 0, 1, 1], [], []>} : vector<16x256xbf16>, vector<256x128xbf16>, vector<16x128xf32> -> vector<16x128xf32>
    %35 = arith.addf %27, %34 : vector<16x128xf32>
    %c1_19 = arith.constant 1 : index
    %c0_20 = arith.constant 0 : index
    %c0_21 = arith.constant 0 : index
    %36 = vector.load %arg5[%c1_19, %c0_20, %c0_21] : memref<3x128x128xbf16, #tpu.memory_space<vmem>>, vector<1x128x128xbf16>
    %37 = vector.shape_cast %36 : vector<1x128x128xbf16> to vector<128x128xbf16>
    %cst_22 = arith.constant dense<0.000000e+00> : vector<16x128xf32>
    %38 = tpu.matmul %31, %37, %cst_22 {dimension_numbers = #tpu.dot_dimension_numbers<[1], [0], [0], [1], [0, 0, 1, 1], [], []>} : vector<16x128xbf16>, vector<128x128xbf16>, vector<16x128xf32> -> vector<16x128xf32>
    %39 = arith.addf %35, %38 : vector<16x128xf32>
    %40 = vector.extract_strided_slice %6 {offsets = [0, 1, 0], sizes = [4, 4, 256], strides = [1, 1, 1]} : vector<4x8x256xbf16> to vector<4x4x256xbf16>
    %41 = vector.shape_cast %40 : vector<4x4x256xbf16> to vector<16x256xbf16>
    %42 = vector.extract_strided_slice %6 {offsets = [0, 0, 128], sizes = [4, 4, 128], strides = [1, 1, 1]} : vector<4x8x256xbf16> to vector<4x4x128xbf16>
    %43 = vector.shape_cast %42 : vector<4x4x128xbf16> to vector<16x128xbf16>
    %c2 = arith.constant 2 : index
    %c0_23 = arith.constant 0 : index
    %c0_24 = arith.constant 0 : index
    %44 = vector.load %arg4[%c2, %c0_23, %c0_24] : memref<3x256x128xbf16, #tpu.memory_space<vmem>>, vector<1x256x128xbf16>
    %45 = vector.shape_cast %44 : vector<1x256x128xbf16> to vector<256x128xbf16>
    %cst_25 = arith.constant dense<0.000000e+00> : vector<16x128xf32>
    %46 = tpu.matmul %41, %45, %cst_25 {dimension_numbers = #tpu.dot_dimension_numbers<[1], [0], [0], [1], [0, 0, 1, 1], [], []>} : vector<16x256xbf16>, vector<256x128xbf16>, vector<16x128xf32> -> vector<16x128xf32>
    %47 = arith.addf %39, %46 : vector<16x128xf32>
    %c2_26 = arith.constant 2 : index
    %c0_27 = arith.constant 0 : index
    %c0_28 = arith.constant 0 : index
    %48 = vector.load %arg5[%c2_26, %c0_27, %c0_28] : memref<3x128x128xbf16, #tpu.memory_space<vmem>>, vector<1x128x128xbf16>
    %49 = vector.shape_cast %48 : vector<1x128x128xbf16> to vector<128x128xbf16>
    %cst_29 = arith.constant dense<0.000000e+00> : vector<16x128xf32>
    %50 = tpu.matmul %43, %49, %cst_29 {dimension_numbers = #tpu.dot_dimension_numbers<[1], [0], [0], [1], [0, 0, 1, 1], [], []>} : vector<16x128xbf16>, vector<128x128xbf16>, vector<16x128xf32> -> vector<16x128xf32>
    %51 = arith.addf %47, %50 : vector<16x128xf32>
    %c0_30 = arith.constant 0 : index
    %c0_31 = arith.constant 0 : index
    %52 = vector.load %arg6[%c0_30, %c0_31] : memref<1x128xf32, #tpu.memory_space<vmem>>, vector<1x128xf32>
    %53 = vector.broadcast %52 : vector<1x128xf32> to vector<16x128xf32>
    %54 = arith.addf %51, %53 : vector<16x128xf32>
    %cst_32 = arith.constant 0.000000e+00 : f32
    %55 = vector.broadcast %cst_32 : f32 to vector<16x128xf32>
    %56 = arith.maximumf %54, %55 : vector<16x128xf32>
    %57 = vector.shape_cast %56 : vector<16x128xf32> to vector<4x4x128xf32>
    %58 = arith.truncf %57 : vector<4x4x128xf32> to vector<4x4x128xbf16>
    %cst_33 = arith.constant 0.000000e+00 : bf16
    %59 = vector.broadcast %cst_33 : bf16 to vector<4x2x128xbf16>
    %c0_34 = arith.constant 0 : index
    %c0_35 = arith.constant 0 : index
    %c0_36 = arith.constant 0 : index
    %c0_37 = arith.constant 0 : index
    %60 = vector.load %arg7[%c0_34, %c0_35, %c0_36, %c0_37] : memref<1x4x16x128xbf16, #tpu.memory_space<vmem>>, vector<1x4x2x128xbf16>
    %61 = vector.shape_cast %60 : vector<1x4x2x128xbf16> to vector<4x2x128xbf16>
    %62 = vector.shape_cast %59 : vector<4x2x128xbf16> to vector<1x4x2x128xbf16>
    tpu.vector_store %arg7[%c0_34, %c0_35, %c0_36, %c0_37], %62 {strides = array<i32>} : memref<1x4x16x128xbf16, #tpu.memory_space<vmem>>, vector<1x4x2x128xbf16>,
    %c0_38 = arith.constant 0 : index
    %c0_39 = arith.constant 0 : index
    %c2_40 = arith.constant 2 : index
    %c0_41 = arith.constant 0 : index
    %63 = vector.load %arg7[%c0_38, %c0_39, %c2_40, %c0_41] : memref<1x4x16x128xbf16, #tpu.memory_space<vmem>>, vector<1x4x4x128xbf16>
    %64 = vector.shape_cast %63 : vector<1x4x4x128xbf16> to vector<4x4x128xbf16>
    %65 = vector.shape_cast %58 : vector<4x4x128xbf16> to vector<1x4x4x128xbf16>
    tpu.vector_store %arg7[%c0_38, %c0_39, %c2_40, %c0_41], %65 {strides = array<i32>} : memref<1x4x16x128xbf16, #tpu.memory_space<vmem>>, vector<1x4x4x128xbf16>,
    %cst_42 = arith.constant 0.000000e+00 : bf16
    %66 = vector.broadcast %cst_42 : bf16 to vector<4x10x128xbf16>
    %c0_43 = arith.constant 0 : index
    %c0_44 = arith.constant 0 : index
    %c6 = arith.constant 6 : index
    %c0_45 = arith.constant 0 : index
    %67 = vector.load %arg7[%c0_43, %c0_44, %c6, %c0_45] : memref<1x4x16x128xbf16, #tpu.memory_space<vmem>>, vector<1x4x10x128xbf16>
    %68 = vector.shape_cast %67 : vector<1x4x10x128xbf16> to vector<4x10x128xbf16>
    %69 = vector.shape_cast %66 : vector<4x10x128xbf16> to vector<1x4x10x128xbf16>
    tpu.vector_store %arg7[%c0_43, %c0_44, %c6, %c0_45], %69 {strides = array<i32>} : memref<1x4x16x128xbf16, #tpu.memory_space<vmem>>, vector<1x4x10x128xbf16>,
    return
  }
  func.func @transform_0(%arg0: i32, %arg1: i32) -> (i32, i32, i32, i32) {
    %c0_i32 = arith.constant 0 : i32
    %c0_i32_0 = arith.constant 0 : i32
    %c0_i32_1 = arith.constant 0 : i32
    return %arg0, %arg1, %c0_i32, %c0_i32_0 : i32, i32, i32, i32
  }
  func.func @transform_1(%arg0: i32, %arg1: i32) -> (i32, i32, i32, i32) {
    %c8_i32 = arith.constant 8 : i32
    %0 = arith.muli %c8_i32, %arg1 : i32
    %c1_i32 = arith.constant 1 : i32
    %1 = arith.subi %0, %c1_i32 : i32
    %c0_i32 = arith.constant 0 : i32
    %2 = arith.maxsi %1, %c0_i32 : i32
    %c0_i32_0 = arith.constant 0 : i32
    %c0_i32_1 = arith.constant 0 : i32
    %c0_i32_2 = arith.constant 0 : i32
    return %arg0, %2, %c0_i32_0, %c0_i32_1 : i32, i32, i32, i32
  }
  func.func @transform_2(%arg0: i32, %arg1: i32) -> (i32, i32, i32) {
    %c0_i32 = arith.constant 0 : i32
    %c0_i32_0 = arith.constant 0 : i32
    %c0_i32_1 = arith.constant 0 : i32
    %c0_i32_2 = arith.constant 0 : i32
    return %c0_i32, %c0_i32_0, %c0_i32_1 : i32, i32, i32
  }
  func.func @transform_3(%arg0: i32, %arg1: i32) -> (i32, i32, i32) {
    %c0_i32 = arith.constant 0 : i32
    %c0_i32_0 = arith.constant 0 : i32
    %c0_i32_1 = arith.constant 0 : i32
    %c0_i32_2 = arith.constant 0 : i32
    return %c0_i32, %c0_i32_0, %c0_i32_1 : i32, i32, i32
  }
  func.func @transform_4(%arg0: i32, %arg1: i32) -> (i32, i32) {
    %c0_i32 = arith.constant 0 : i32
    %c0_i32_0 = arith.constant 0 : i32
    %c0_i32_1 = arith.constant 0 : i32
    return %c0_i32, %c0_i32_0 : i32, i32
  }
  func.func @transform_5(%arg0: i32, %arg1: i32) -> (i32, i32, i32, i32) {
    %c0_i32 = arith.constant 0 : i32
    %c0_i32_0 = arith.constant 0 : i32
    %c0_i32_1 = arith.constant 0 : i32
    return %arg0, %arg1, %c0_i32, %c0_i32_0 : i32, i32, i32, i32
  }
}

module attributes {stable_mosaic.version = 11 : i64} {
  func.func @_conv3x3s2_bn_relu_kernel(%arg0: i32, %arg1: i32, %arg2: memref<1x4x8x256xbf16, #tpu.memory_space<vmem>>, %arg3: memref<1x1x8x256xbf16, #tpu.memory_space<vmem>>, %arg4: memref<3x256x128xbf16, #tpu.memory_space<vmem>>, %arg5: memref<3x128x128xbf16, #tpu.memory_space<vmem>>, %arg6: memref<1x128xf32, #tpu.memory_space<vmem>>, %arg7: memref<1x2x16x128xbf16, #tpu.memory_space<vmem>>) attributes {dimension_semantics = [#tpu.dimension_semantics<parallel>, #tpu.dimension_semantics<parallel>], iteration_bounds = array<i64: 2, 1>, scalar_prefetch = 0 : i64, scratch_operands = 0 : i64, tpu.core_type = #tpu.core_type<tc>, window_params = [{transform_indices = @transform_0, window_bounds = array<i64: 1, 4, 8, 256>}, {transform_indices = @transform_1, window_bounds = array<i64: 1, 1, 8, 256>}, {pipeline_mode = #tpu.pipeline_mode<synchronous>, transform_indices = @transform_2, window_bounds = array<i64: 3, 256, 128>}, {pipeline_mode = #tpu.pipeline_mode<synchronous>, transform_indices = @transform_3, window_bounds = array<i64: 3, 128, 128>}, {pipeline_mode = #tpu.pipeline_mode<synchronous>, transform_indices = @transform_4, window_bounds = array<i64: 1, 128>}, {transform_indices = @transform_5, window_bounds = array<i64: 1, 2, 16, 128>}]} {
    %c0 = arith.constant 0 : index
    %c0_0 = arith.constant 0 : index
    %c0_1 = arith.constant 0 : index
    %c0_2 = arith.constant 0 : index
    %0 = vector.load %arg2[%c0, %c0_0, %c0_1, %c0_2] : memref<1x4x8x256xbf16, #tpu.memory_space<vmem>>, vector<1x4x8x256xbf16>
    %1 = vector.shape_cast %0 : vector<1x4x8x256xbf16> to vector<4x8x256xbf16>
    %2 = vector.shape_cast %1 : vector<4x8x256xbf16> to vector<2x2x8x256xbf16>
    %3 = vector.extract_strided_slice %2 {offsets = [0, 0, 0, 0], sizes = [2, 1, 8, 256], strides = [1, 1, 1, 1]} : vector<2x2x8x256xbf16> to vector<2x1x8x256xbf16>
    %4 = vector.shape_cast %3 : vector<2x1x8x256xbf16> to vector<2x8x256xbf16>
    %5 = vector.extract_strided_slice %2 {offsets = [0, 1, 0, 0], sizes = [2, 1, 8, 256], strides = [1, 1, 1, 1]} : vector<2x2x8x256xbf16> to vector<2x1x8x256xbf16>
    %6 = vector.shape_cast %5 : vector<2x1x8x256xbf16> to vector<2x8x256xbf16>
    %c0_3 = arith.constant 0 : index
    %c0_4 = arith.constant 0 : index
    %c0_5 = arith.constant 0 : index
    %c0_6 = arith.constant 0 : index
    %7 = vector.load %arg3[%c0_3, %c0_4, %c0_5, %c0_6] : memref<1x1x8x256xbf16, #tpu.memory_space<vmem>>, vector<1x1x8x256xbf16>
    %8 = vector.shape_cast %7 : vector<1x1x8x256xbf16> to vector<8x256xbf16>
    %c0_i32 = arith.constant 0 : i32
    %9 = arith.cmpi sgt, %arg1, %c0_i32 : i32
    %cst = arith.constant 0.000000e+00 : bf16
    %10 = vector.broadcast %cst : bf16 to vector<8x256xbf16>
    %11 = arith.select %9, %8, %10 : vector<8x256xbf16>
    %12 = vector.shape_cast %11 : vector<8x256xbf16> to vector<1x8x256xbf16>
    %13 = vector.extract_strided_slice %6 {offsets = [0, 0, 0], sizes = [1, 8, 256], strides = [1, 1, 1]} : vector<2x8x256xbf16> to vector<1x8x256xbf16>
    %14 = tpu.concatenate %12, %13 in 0 : vector<1x8x256xbf16>, vector<1x8x256xbf16> -> vector<2x8x256xbf16>
    %cst_7 = arith.constant 0.000000e+00 : f32
    %15 = vector.broadcast %cst_7 : f32 to vector<4x128xf32>
    %16 = vector.extract_strided_slice %14 {offsets = [0, 1, 0], sizes = [2, 2, 256], strides = [1, 1, 1]} : vector<2x8x256xbf16> to vector<2x2x256xbf16>
    %17 = vector.shape_cast %16 : vector<2x2x256xbf16> to vector<4x256xbf16>
    %18 = vector.extract_strided_slice %14 {offsets = [0, 0, 128], sizes = [2, 2, 128], strides = [1, 1, 1]} : vector<2x8x256xbf16> to vector<2x2x128xbf16>
    %19 = vector.shape_cast %18 : vector<2x2x128xbf16> to vector<4x128xbf16>
    %c0_8 = arith.constant 0 : index
    %c0_9 = arith.constant 0 : index
    %c0_10 = arith.constant 0 : index
    %20 = vector.load %arg4[%c0_8, %c0_9, %c0_10] : memref<3x256x128xbf16, #tpu.memory_space<vmem>>, vector<1x256x128xbf16>
    %21 = vector.shape_cast %20 : vector<1x256x128xbf16> to vector<256x128xbf16>
    %cst_11 = arith.constant dense<0.000000e+00> : vector<4x128xf32>
    %22 = tpu.matmul %17, %21, %cst_11 {dimension_numbers = #tpu.dot_dimension_numbers<[1], [0], [0], [1], [0, 0, 1, 1], [], []>} : vector<4x256xbf16>, vector<256x128xbf16>, vector<4x128xf32> -> vector<4x128xf32>
    %23 = arith.addf %15, %22 : vector<4x128xf32>
    %c0_12 = arith.constant 0 : index
    %c0_13 = arith.constant 0 : index
    %c0_14 = arith.constant 0 : index
    %24 = vector.load %arg5[%c0_12, %c0_13, %c0_14] : memref<3x128x128xbf16, #tpu.memory_space<vmem>>, vector<1x128x128xbf16>
    %25 = vector.shape_cast %24 : vector<1x128x128xbf16> to vector<128x128xbf16>
    %cst_15 = arith.constant dense<0.000000e+00> : vector<4x128xf32>
    %26 = tpu.matmul %19, %25, %cst_15 {dimension_numbers = #tpu.dot_dimension_numbers<[1], [0], [0], [1], [0, 0, 1, 1], [], []>} : vector<4x128xbf16>, vector<128x128xbf16>, vector<4x128xf32> -> vector<4x128xf32>
    %27 = arith.addf %23, %26 : vector<4x128xf32>
    %28 = vector.extract_strided_slice %4 {offsets = [0, 1, 0], sizes = [2, 2, 256], strides = [1, 1, 1]} : vector<2x8x256xbf16> to vector<2x2x256xbf16>
    %29 = vector.shape_cast %28 : vector<2x2x256xbf16> to vector<4x256xbf16>
    %30 = vector.extract_strided_slice %4 {offsets = [0, 0, 128], sizes = [2, 2, 128], strides = [1, 1, 1]} : vector<2x8x256xbf16> to vector<2x2x128xbf16>
    %31 = vector.shape_cast %30 : vector<2x2x128xbf16> to vector<4x128xbf16>
    %c1 = arith.constant 1 : index
    %c0_16 = arith.constant 0 : index
    %c0_17 = arith.constant 0 : index
    %32 = vector.load %arg4[%c1, %c0_16, %c0_17] : memref<3x256x128xbf16, #tpu.memory_space<vmem>>, vector<1x256x128xbf16>
    %33 = vector.shape_cast %32 : vector<1x256x128xbf16> to vector<256x128xbf16>
    %cst_18 = arith.constant dense<0.000000e+00> : vector<4x128xf32>
    %34 = tpu.matmul %29, %33, %cst_18 {dimension_numbers = #tpu.dot_dimension_numbers<[1], [0], [0], [1], [0, 0, 1, 1], [], []>} : vector<4x256xbf16>, vector<256x128xbf16>, vector<4x128xf32> -> vector<4x128xf32>
    %35 = arith.addf %27, %34 : vector<4x128xf32>
    %c1_19 = arith.constant 1 : index
    %c0_20 = arith.constant 0 : index
    %c0_21 = arith.constant 0 : index
    %36 = vector.load %arg5[%c1_19, %c0_20, %c0_21] : memref<3x128x128xbf16, #tpu.memory_space<vmem>>, vector<1x128x128xbf16>
    %37 = vector.shape_cast %36 : vector<1x128x128xbf16> to vector<128x128xbf16>
    %cst_22 = arith.constant dense<0.000000e+00> : vector<4x128xf32>
    %38 = tpu.matmul %31, %37, %cst_22 {dimension_numbers = #tpu.dot_dimension_numbers<[1], [0], [0], [1], [0, 0, 1, 1], [], []>} : vector<4x128xbf16>, vector<128x128xbf16>, vector<4x128xf32> -> vector<4x128xf32>
    %39 = arith.addf %35, %38 : vector<4x128xf32>
    %40 = vector.extract_strided_slice %6 {offsets = [0, 1, 0], sizes = [2, 2, 256], strides = [1, 1, 1]} : vector<2x8x256xbf16> to vector<2x2x256xbf16>
    %41 = vector.shape_cast %40 : vector<2x2x256xbf16> to vector<4x256xbf16>
    %42 = vector.extract_strided_slice %6 {offsets = [0, 0, 128], sizes = [2, 2, 128], strides = [1, 1, 1]} : vector<2x8x256xbf16> to vector<2x2x128xbf16>
    %43 = vector.shape_cast %42 : vector<2x2x128xbf16> to vector<4x128xbf16>
    %c2 = arith.constant 2 : index
    %c0_23 = arith.constant 0 : index
    %c0_24 = arith.constant 0 : index
    %44 = vector.load %arg4[%c2, %c0_23, %c0_24] : memref<3x256x128xbf16, #tpu.memory_space<vmem>>, vector<1x256x128xbf16>
    %45 = vector.shape_cast %44 : vector<1x256x128xbf16> to vector<256x128xbf16>
    %cst_25 = arith.constant dense<0.000000e+00> : vector<4x128xf32>
    %46 = tpu.matmul %41, %45, %cst_25 {dimension_numbers = #tpu.dot_dimension_numbers<[1], [0], [0], [1], [0, 0, 1, 1], [], []>} : vector<4x256xbf16>, vector<256x128xbf16>, vector<4x128xf32> -> vector<4x128xf32>
    %47 = arith.addf %39, %46 : vector<4x128xf32>
    %c2_26 = arith.constant 2 : index
    %c0_27 = arith.constant 0 : index
    %c0_28 = arith.constant 0 : index
    %48 = vector.load %arg5[%c2_26, %c0_27, %c0_28] : memref<3x128x128xbf16, #tpu.memory_space<vmem>>, vector<1x128x128xbf16>
    %49 = vector.shape_cast %48 : vector<1x128x128xbf16> to vector<128x128xbf16>
    %cst_29 = arith.constant dense<0.000000e+00> : vector<4x128xf32>
    %50 = tpu.matmul %43, %49, %cst_29 {dimension_numbers = #tpu.dot_dimension_numbers<[1], [0], [0], [1], [0, 0, 1, 1], [], []>} : vector<4x128xbf16>, vector<128x128xbf16>, vector<4x128xf32> -> vector<4x128xf32>
    %51 = arith.addf %47, %50 : vector<4x128xf32>
    %c0_30 = arith.constant 0 : index
    %c0_31 = arith.constant 0 : index
    %52 = vector.load %arg6[%c0_30, %c0_31] : memref<1x128xf32, #tpu.memory_space<vmem>>, vector<1x128xf32>
    %53 = vector.broadcast %52 : vector<1x128xf32> to vector<4x128xf32>
    %54 = arith.addf %51, %53 : vector<4x128xf32>
    %cst_32 = arith.constant 0.000000e+00 : f32
    %55 = vector.broadcast %cst_32 : f32 to vector<4x128xf32>
    %56 = arith.maximumf %54, %55 : vector<4x128xf32>
    %57 = vector.shape_cast %56 : vector<4x128xf32> to vector<2x2x128xf32>
    %58 = arith.truncf %57 : vector<2x2x128xf32> to vector<2x2x128xbf16>
    %cst_33 = arith.constant 0.000000e+00 : bf16
    %59 = vector.broadcast %cst_33 : bf16 to vector<2x2x128xbf16>
    %c0_34 = arith.constant 0 : index
    %c0_35 = arith.constant 0 : index
    %c0_36 = arith.constant 0 : index
    %c0_37 = arith.constant 0 : index
    %60 = vector.load %arg7[%c0_34, %c0_35, %c0_36, %c0_37] : memref<1x2x16x128xbf16, #tpu.memory_space<vmem>>, vector<1x2x2x128xbf16>
    %61 = vector.shape_cast %60 : vector<1x2x2x128xbf16> to vector<2x2x128xbf16>
    %62 = vector.shape_cast %59 : vector<2x2x128xbf16> to vector<1x2x2x128xbf16>
    tpu.vector_store %arg7[%c0_34, %c0_35, %c0_36, %c0_37], %62 {strides = array<i32>} : memref<1x2x16x128xbf16, #tpu.memory_space<vmem>>, vector<1x2x2x128xbf16>,
    %c0_38 = arith.constant 0 : index
    %c0_39 = arith.constant 0 : index
    %c2_40 = arith.constant 2 : index
    %c0_41 = arith.constant 0 : index
    %63 = vector.load %arg7[%c0_38, %c0_39, %c2_40, %c0_41] : memref<1x2x16x128xbf16, #tpu.memory_space<vmem>>, vector<1x2x2x128xbf16>
    %64 = vector.shape_cast %63 : vector<1x2x2x128xbf16> to vector<2x2x128xbf16>
    %65 = vector.shape_cast %58 : vector<2x2x128xbf16> to vector<1x2x2x128xbf16>
    tpu.vector_store %arg7[%c0_38, %c0_39, %c2_40, %c0_41], %65 {strides = array<i32>} : memref<1x2x16x128xbf16, #tpu.memory_space<vmem>>, vector<1x2x2x128xbf16>,
    %cst_42 = arith.constant 0.000000e+00 : bf16
    %66 = vector.broadcast %cst_42 : bf16 to vector<2x12x128xbf16>
    %c0_43 = arith.constant 0 : index
    %c0_44 = arith.constant 0 : index
    %c4 = arith.constant 4 : index
    %c0_45 = arith.constant 0 : index
    %67 = vector.load %arg7[%c0_43, %c0_44, %c4, %c0_45] : memref<1x2x16x128xbf16, #tpu.memory_space<vmem>>, vector<1x2x12x128xbf16>
    %68 = vector.shape_cast %67 : vector<1x2x12x128xbf16> to vector<2x12x128xbf16>
    %69 = vector.shape_cast %66 : vector<2x12x128xbf16> to vector<1x2x12x128xbf16>
    tpu.vector_store %arg7[%c0_43, %c0_44, %c4, %c0_45], %69 {strides = array<i32>} : memref<1x2x16x128xbf16, #tpu.memory_space<vmem>>, vector<1x2x12x128xbf16>,
    return
  }
  func.func @transform_0(%arg0: i32, %arg1: i32) -> (i32, i32, i32, i32) {
    %c0_i32 = arith.constant 0 : i32
    %c0_i32_0 = arith.constant 0 : i32
    %c0_i32_1 = arith.constant 0 : i32
    return %arg0, %arg1, %c0_i32, %c0_i32_0 : i32, i32, i32, i32
  }
  func.func @transform_1(%arg0: i32, %arg1: i32) -> (i32, i32, i32, i32) {
    %c4_i32 = arith.constant 4 : i32
    %0 = arith.muli %c4_i32, %arg1 : i32
    %c1_i32 = arith.constant 1 : i32
    %1 = arith.subi %0, %c1_i32 : i32
    %c0_i32 = arith.constant 0 : i32
    %2 = arith.maxsi %1, %c0_i32 : i32
    %c0_i32_0 = arith.constant 0 : i32
    %c0_i32_1 = arith.constant 0 : i32
    %c0_i32_2 = arith.constant 0 : i32
    return %arg0, %2, %c0_i32_0, %c0_i32_1 : i32, i32, i32, i32
  }
  func.func @transform_2(%arg0: i32, %arg1: i32) -> (i32, i32, i32) {
    %c0_i32 = arith.constant 0 : i32
    %c0_i32_0 = arith.constant 0 : i32
    %c0_i32_1 = arith.constant 0 : i32
    %c0_i32_2 = arith.constant 0 : i32
    return %c0_i32, %c0_i32_0, %c0_i32_1 : i32, i32, i32
  }
  func.func @transform_3(%arg0: i32, %arg1: i32) -> (i32, i32, i32) {
    %c0_i32 = arith.constant 0 : i32
    %c0_i32_0 = arith.constant 0 : i32
    %c0_i32_1 = arith.constant 0 : i32
    %c0_i32_2 = arith.constant 0 : i32
    return %c0_i32, %c0_i32_0, %c0_i32_1 : i32, i32, i32
  }
  func.func @transform_4(%arg0: i32, %arg1: i32) -> (i32, i32) {
    %c0_i32 = arith.constant 0 : i32
    %c0_i32_0 = arith.constant 0 : i32
    %c0_i32_1 = arith.constant 0 : i32
    return %c0_i32, %c0_i32_0 : i32, i32
  }
  func.func @transform_5(%arg0: i32, %arg1: i32) -> (i32, i32, i32, i32) {
    %c0_i32 = arith.constant 0 : i32
    %c0_i32_0 = arith.constant 0 : i32
    %c0_i32_1 = arith.constant 0 : i32
    return %arg0, %arg1, %c0_i32, %c0_i32_0 : i32, i32, i32, i32
  }
}

</mosaic_0001>

<bundles_post_ra>
// kernel: forward.5
= control target key start
LH: loop header
LB: loop body
LE: loop exit
PB: predicated region body
PF: predicated region fallthrough
CT: control target
= control target key end

     0   :  { %s2429_s18 = smov 0   ;;  %s2431_s19 = smov 0   ;;  %s3072_s0 = inlined_call_operand.vmem [shape: bf16[2,16,16,256], index: 0, kind: input, shape index: {}, may-alias: {0,1}]   ;;  %s3073_s1 = inlined_call_operand.vmem [shape: bf16[2,16,16,256], index: 1, kind: input, shape index: {}, may-alias: {0,1}]   ;;  %s3074_s2 = inlined_call_operand.vmem [shape: bf16[3,256,128], index: 2, kind: input, shape index: {}]   ;;  %s3075_s3 = inlined_call_operand.vmem [shape: bf16[3,128,128], index: 3, kind: input, shape index: {}]   ;;  %s3076_s4 = inlined_call_operand.vmem [shape: f32[1,128], index: 4, kind: input, shape index: {}]   ;;  %s3077_s5 = inlined_call_operand.vmem [shape: bf16[2,8,16,128], index: 5, kind: output, shape index: {}]  }
   0x1   :  { %s2433_s20 = smov 0  }
   0x2 LB: > { %s27_s1 = sadd.s32 1, %s2392_s19  ;;  %p1864_p0 = scmp.ge.s32.totalorder %s2396_s20, 1  ;;  %s2396_s20 = sphi %s2433_s20, %s15_s20   ;;  %s2392_s19 = sphi %s2431_s19, %s3081_s19   ;;  %s2388_s18 = sphi %s2429_s18, %s3080_s18  }
   0x3   : > { %p29_p1 = scmp.ge.s32.totalorder %s27_s1, 2  ;;  %p241_p2 = scmp.lt.s32.totalorder %s2396_s20, 3 }
   0x5   : > { %s3083_s1 = smov (%p29_p1, %s27_s1), 0  ;;  %p242_p3 = pnand %p1864_p0, %p241_p2 }
   0x6   : > { %p293_p4 = scmp.lt.s32.totalorder (!%p242_p3), %s2388_s18, 1 }
   0x7   : > { %245 = sbr.rel (%p242_p3) target bundleno = 339 (0x153), region = 40 }
   0xc   : > { %v2283_v0 = vld [vmem:[%s3075_s3 + $0x38] sm:$0xff]  ;;  %v2282_v3 = vld [vmem:[%s3075_s3 + $0x30] sm:$0xff]  ;;  %s3085_s18 = smov (!%p293_p4, %s2388_s18), 1  ;;  %v2281_v6 = vld [vmem:[%s3075_s3 + $0x28] sm:$0xff]  ;;  %v2398_v7 = vmov 0  }
   0xd   : > { %v2275_v1 = vld [vmem:[%s3074_s2 + $0x78] sm:$0xff]  ;;  %615 = vmatpush.bf16.msra.mxu0 %v2283_v0  ;;  %2332 = vmatpush.bf16.msra.mxu1 %v2283_v0  ;;  %v2274_v4 = vld [vmem:[%s3074_s2 + $0x70] sm:$0xff]  ;;  %s2257_s8 = sshll.u32 %s3085_s18, 8  ;;  %s2259_s9 = sshll.u32 %s3085_s18, 6  ;;  %v2273_v8 = vld [vmem:[%s3074_s2 + $0x68] sm:$0xff]  ;;  %v2501_v14 = vrot.slane %v2398_v7, 4 }
   0xe   : > { %v2291_v2 = vld [vmem:[%s3074_s2 + $0xb8] sm:$0xff]  ;;  %801 = vmatpush.bf16.msra.mxu2 %v2275_v1  ;;  %v2290_v5 = vld [vmem:[%s3074_s2 + $0xb0] sm:$0xff]  ;;  %s2468_s12 = scalar_lea.vmem %s3072_s0, %s2257_s8  ;;  %s2473_s15 = scalar_lea.vmem %s3077_s5, %s2259_s9  ;;  %v2289_v9 = vld [vmem:[%s3074_s2 + $0xa8] sm:$0xff]  ;;  %v2504_v15 = vrot.slane %v2398_v7, 5  ;;  %vm372_vm0 = vsmask.f32 3328 }
   0xf   : > { %1119 = vmatpush.bf16.msra.mxu3 %v2291_v2  ;;  %1671 = vst [vmem:[%s2473_s15] sm:$0x1] %v2398_v7  ;;  %v2487_v10 = vld [vmem:[%s2468_s12 + $0x10] sm:$0xff]  ;;  %v2280_v13 = vld [vmem:[%s3075_s3 + $0x20] sm:$0xff]  ;;  %v2279_v18 = vld [vmem:[%s3075_s3 + $0x18] sm:$0xff]  ;;  %vm373_vm1 = vsmask.f32 7440  ;;  %v551_v2 = vunpack.c.l.b16 %v2501_v14 }
  0x10   : > { %1672 = vst [vmem:[%s2473_s15 + $0x8] sm:$0x1] %v2398_v7  ;;  %v390_v11 = vshrl.u32 %v2487_v10, 16  ;;  %v393_v12 = vshll.u32 %v2487_v10, 16  ;;  %v2272_v16 = vld [vmem:[%s3074_s2 + $0x60] sm:$0xff]  ;;  %v2271_v21 = vld [vmem:[%s3074_s2 + $0x58] sm:$0xff]  ;;  %v382_v24 = vor.u32 %v2504_v15, %v2501_v14  ;;  %vm2584_vm2 = vmor %vm372_vm0, %vm373_vm1 }
  0x11   : > { %616 = vmatpush.bf16.msra.mxu0 %v2282_v3  ;;  %2333 = vmatpush.bf16.msra.mxu1 %v2282_v3  ;;  %1673 = vst [vmem:[%s2473_s15 + $0x10] sm:$0x1] %v2398_v7  ;;  %v2288_v17 = vld [vmem:[%s3074_s2 + $0xa0] sm:$0xff]  ;;  %v2287_v22 = vld [vmem:[%s3074_s2 + $0x98] sm:$0xff]  ;;  %v333_v26 = vld [vmem:[%s2468_s12 + $0x8] sm:$0xff]  ;;  %v496_v46 = vrot.slane %v2487_v10, 4 }
  0x12   : > { %802 = vmatpush.bf16.msra.mxu2 %v2274_v4  ;;  %1674 = vst [vmem:[%s2473_s15 + $0x18] sm:$0x1] %v2398_v7  ;;  %v392_v19 = vrot.slane %v390_v11, 4  ;;  %v395_v20 = vrot.slane %v393_v12, 5  ;;  %v335_v23 = vld [vmem:[%s2468_s12 + $0x18] sm:$0xff]  ;;  %v2535_v25 = vld [vmem:[%s2468_s12] sm:$0xff] }
  0x13   : > { %1120 = vmatpush.bf16.msra.mxu3 %v2290_v5  ;;  %1675 = vst [vmem:[%s2473_s15 + $0x20] sm:$0x1] %v2398_v7  ;;  %v2539_v27 = vld [vmem:[%s2468_s12 + $0x20] sm:$0xff]  ;;  %v2544_v28 = vld [vmem:[%s2468_s12 + $0x70] sm:$0xff]  ;;  %v337_v29 = vld [vmem:[%s2468_s12 + $0x28] sm:$0xff]  ;;  %v831_v30 = vshrl.u32 %v2535_v25, 16 }
  0x14   : > { %1676 = vst [vmem:[%s2473_s15 + $0x28] sm:$0x1] %v2398_v7  ;;  %v834_v31 = vshll.u32 %v2535_v25, 16  ;;  %v2278_v32 = vld [vmem:[%s3075_s3 + $0x10] sm:$0xff]  ;;  %v396_v34 = vor.u32 %v395_v20, %v392_v19  ;;  %v399_v35 = vshll.u32 %v335_v23, 16  ;;  %v840_v36 = vshll.u32 %v333_v26, 16 }
  0x15   : > { %617 = vmatpush.bf16.msra.mxu0 %v2281_v6  ;;  %2334 = vmatpush.bf16.msra.mxu1 %v2281_v6  ;;  %1677 = vst [vmem:[%s2473_s15 + $0x30] sm:$0x1] %v2398_v7  ;;  %v2555_v33 = vld [vmem:[%s2468_s12 + $0x90] sm:$0xff]  ;;  %v845_v37 = vshrl.u32 %v2539_v27, 16  ;;  %v833_v38 = vrot.slane %v831_v30, 4  ;;  %v848_v40 = vshll.u32 %v2539_v27, 16  ;;  %v2600_v6 = vunpack.c.l.b16 %v496_v46 }
  0x16   : > { %803 = vmatpush.bf16.msra.mxu2 %v2273_v8  ;;  %1678 = vst [vmem:[%s2473_s15 + $0x38] sm:$0x1] %v2398_v7  ;;  %v836_v39 = vrot.slane %v834_v31, 5  ;;  %v854_v41 = vshll.u32 %v337_v29, 16  ;;  %v2270_v42 = vld [vmem:[%s3074_s2 + $0x50] sm:$0xff]  ;;  %v383_v44 = vrot.slane %v382_v24, 4 }
  0x17   : > { %1121 = vmatpush.bf16.msra.mxu3 %v2289_v9  ;;  %1735 = vst [vmem:[%s2473_s15 + $0x4] sm:$0xe] %v2398_v7  ;;  %v2286_v43 = vld [vmem:[%s3074_s2 + $0x90] sm:$0xff]  ;;  %v847_v45 = vrot.slane %v845_v37, 4  ;;  %v499_v47 = vrot.slane %v2544_v28, 4  ;;  %v850_v49 = vrot.slane %v848_v40, 5 }
  0x18   : > { %1736 = vst [vmem:[%s2473_s15 + $0xc] sm:$0xe] %v2398_v7  ;;  %v837_v48 = vor.u32 %v836_v39, %v833_v38  ;;  %v338_v50 = vld [vmem:[%s2468_s12 + $0x30] sm:$0xff]  ;;  %v500_v51 = vrot.slane %v2555_v33, 4  ;;  %v397_v52 = vrot.slane %v396_v34, 4  ;;  %v401_v53 = vrot.slane %v399_v35, 5 }
  0x19   : > { %618 = vmatpush.bf16.msra.mxu0 %v2280_v13  ;;  %2335 = vmatpush.bf16.msra.mxu1 %v2280_v13  ;;  %1737 = vst [vmem:[%s2473_s15 + $0x14] sm:$0xe] %v2398_v7  ;;  %v2578_v54 = vld [vmem:[%s2468_s12 + $0x50] sm:$0xff]  ;;  %v842_v57 = vrot.slane %v840_v36, 5  ;;  %v851_v58 = vor.u32 %v850_v49, %v847_v45  ;;  %v856_v59 = vrot.slane %v854_v41, 5  ;;  %v2277_v60 = vld [vmem:[%s3075_s3 + $0x8] sm:$0xff]  ;;  %v2607_v8 = vsel %vm2584_vm2, %v383_v44, %v2504_v15 }
  0x1a   : > { %804 = vmatpush.bf16.msra.mxu2 %v2272_v16  ;;  %1738 = vst [vmem:[%s2473_s15 + $0x1c] sm:$0xe] %v2398_v7  ;;  %v838_v56 = vrot.slane %v837_v48, 4  ;;  %v404_v61 = vshrl.u32 %v338_v50, 16  ;;  %v407_v62 = vshll.u32 %v338_v50, 16  ;;  %v497_v63 = vrot.slane %v338_v50, 4 }
  0x1b   : > { %1122 = vmatpush.bf16.msra.mxu3 %v2288_v17  ;;  %1739 = vst [vmem:[%s2473_s15 + $0x24] sm:$0xe] %v2398_v7  ;;  %v2269_v0 = vld [vmem:[%s3074_s2 + $0x48] sm:$0xff]  ;;  %v852_v3 = vrot.slane %v851_v58, 4  ;;  %v418_v4 = vshrl.u32 %v2578_v54, 16  ;;  %v421_v5 = vshll.u32 %v2578_v54, 16  ;;  %v2611_v10 = vunpack.c.l.b16 %v500_v51 }
  0x1c   : > { %1740 = vst [vmem:[%s2473_s15 + $0x2c] sm:$0xe] %v2398_v7  ;;  %v2285_v1 = vld [vmem:[%s3074_s2 + $0x88] sm:$0xff]  ;;  %v2609_v9 = vunpack.c.l.b16 %v497_v63  ;;  %v2615_v11 = vsel %vm2584_vm2, %v397_v52, %v401_v53  ;;  %v2619_v12 = vsel %vm2584_vm2, %v838_v56, %v842_v57  ;;  %v2276_v14 = vld [vmem:[%s3075_s3] sm:$0xff]  ;;  %v406_v15 = vrot.slane %v404_v61, 4  ;;  %v2299_v19 = vld [vmem:[%s3074_s2 + $0xf8] sm:$0xff] }
  0x1d   : > { %619 = vmatpush.bf16.msra.mxu0 %v2279_v18  ;;  %2336 = vmatpush.bf16.msra.mxu1 %v2279_v18  ;;  %1741 = vst [vmem:[%s2473_s15 + $0x34] sm:$0xe] %v2398_v7  ;;  %v2623_v13 = vsel %vm2584_vm2, %v852_v3, %v856_v59  ;;  %v409_v16 = vrot.slane %v407_v62, 5  ;;  %v2267_v18 = vld [vmem:[%s3074_s2 + $0x38] sm:$0xff]  ;;  %v2268_v20 = vld [vmem:[%s3074_s2 + $0x40] sm:$0xff]  ;;  %v645_v24 = vunpack.c.h.b16 %v2607_v8  ;;  %v647_v26 = vunpack.c.h.b16 %v2615_v11  ;;  %v341_v39 = vld [vmem:[%s2468_s12 + $0x48] sm:$0xff] }
  0x1e   : > { %805 = vmatpush.bf16.msra.mxu2 %v2271_v21  ;;  %1742 = vst [vmem:[%s2473_s15 + $0x3c] sm:$0xe] %v2398_v7  ;;  %v2602_v7 = vunpack.c.l.b16 %v499_v47  ;;  %v1550_v17 = vpack.c.b16 %v2609_v9, %v2600_v6  ;;  %v420_v21 = vrot.slane %v418_v4, 4  ;;  %v2284_v23 = vld [vmem:[%s3074_s2 + $0x80] sm:$0xff]  ;;  %v991_v29 = vunpack.c.l.b16 %v2619_v12  ;;  %v339_v31 = vld [vmem:[%s2468_s12 + $0x38] sm:$0xff]  ;;  %v2266_v41 = vld [vmem:[%s3074_s2 + $0x30] sm:$0xff] }
  0x1f   : > { %1123 = vmatpush.bf16.msra.mxu3 %v2287_v22  ;;  %v423_v22 = vrot.slane %v421_v5, 5  ;;  %v993_v30 = vunpack.c.l.b16 %v2623_v13  ;;  %v559_v34 = vpack.c.b16 %v2600_v6, %v551_v2  ;;  %v2315_v36 = vld [vmem:[%s3074_s2 + $0x138] sm:$0xff]  ;;  %v410_v38 = vor.u32 %v409_v16, %v406_v15  ;;  %v2668_v45 = vld [vmem:[%s2468_s12 + $0x60] sm:$0xff]  ;;  %v345_v50 = vld [vmem:[%s2468_s12 + $0x68] sm:$0xff] }
  0x20   : > { %v561_v35 = vpack.c.b16 %v2611_v10, %v2602_v7  ;;  %v343_v37 = vld [vmem:[%s2468_s12 + $0x58] sm:$0xff]  ;;  %v661_v47 = vpack.c.b16 %v647_v26, %v645_v24  ;;  %v432_v52 = vshrl.u32 %v2544_v28, 16  ;;  %v2677_v53 = vld [vmem:[%s2468_s12 + $0xb0] sm:$0xff]  ;;  %v868_v57 = vshll.u32 %v341_v39, 16  ;;  %v2724_v39 = vld [vmem:[%s2468_s12 + $0xa0] sm:$0xff] }
  0x21   : > { %620 = vmatpush.bf16.msra.mxu0 %v2278_v32  ;;  %2337 = vmatpush.bf16.msra.mxu1 %v2278_v32  ;;  %v2648_v32 = vld [vmem:[%s2468_s12 + $0x40] sm:$0xff]  ;;  %v2323_v40 = vld [vmem:[%s3074_s2 + $0x178] sm:$0xff]  ;;  %v424_v44 = vor.u32 %v423_v22, %v420_v21  ;;  %v1007_v48 = vpack.c.b16 %v993_v30, %v991_v29  ;;  %v427_v49 = vshll.u32 %v343_v37, 16  ;;  %v2680_v58 = vld [vmem:[%s2468_s12 + $0xd0] sm:$0xff]  ;;  %v411_v59 = vrot.slane %v410_v38, 4 }
  0x22   : > { %806 = vmatpush.bf16.msra.mxu2 %v2270_v42  ;;  %v2298_v42 = vld [vmem:[%s3074_s2 + $0xf0] sm:$0xff]  ;;  %v859_v46 = vshrl.u32 %v2648_v32, 16  ;;  %v862_v51 = vshll.u32 %v2648_v32, 16  ;;  %v873_v61 = vshrl.u32 %v2668_v45, 16  ;;  %v876_v4 = vshll.u32 %v2668_v45, 16 }
  0x23   : > { %1124 = vmatpush.bf16.msra.mxu3 %v2286_v43  ;;  %v413_v43 = vshll.u32 %v339_v31, 16  ;;  %v2314_v62 = vld [vmem:[%s3074_s2 + $0x130] sm:$0xff]  ;;  %v425_v3 = vrot.slane %v424_v44, 4  ;;  %v882_v5 = vshll.u32 %v345_v50, 16  ;;  %v870_v16 = vrot.slane %v868_v57, 5  ;;  %v2263_v57 = vld [vmem:[%s3074_s2 + $0x18] sm:$0xff] }
  0x24   : > { %v861_v56 = vrot.slane %v859_v46, 4  ;;  %v2322_v63 = vld [vmem:[%s3074_s2 + $0x170] sm:$0xff]  ;;  %v502_v21 = vrot.slane %v2680_v58, 4  ;;  %v878_v22 = vrot.slane %v876_v4, 5  ;;  %v435_v24 = vshll.u32 %v2544_v28, 16  ;;  %v2264_v28 = vld [vmem:[%s3074_s2 + $0x20] sm:$0xff] }
  0x25   : > { %621 = vmatpush.bf16.msra.mxu0 %v2277_v60  ;;  %2338 = vmatpush.bf16.msra.mxu1 %v2277_v60  ;;  %v864_v60 = vrot.slane %v862_v51, 5  ;;  %v415_v2 = vrot.slane %v413_v43, 5  ;;  %v446_v29 = vshrl.u32 %v2555_v33, 16  ;;  %v449_v30 = vshll.u32 %v2555_v33, 16  ;;  %v2296_v33 = vld [vmem:[%s3074_s2 + $0xe0] sm:$0xff] }
  0x26   : > { %807 = vmatpush.bf16.msra.mxu2 %v2269_v0  ;;  %v2265_v0 = vld [vmem:[%s3074_s2 + $0x28] sm:$0xff]  ;;  %v884_v38 = vrot.slane %v882_v5, 5  ;;  %v904_v4 = vshll.u32 %v2724_v39, 16 }
  0x27   : > { %1125 = vmatpush.bf16.msra.mxu3 %v2285_v1  ;;  %v2297_v1 = vld [vmem:[%s3074_s2 + $0xe8] sm:$0xff]  ;;  %v865_v15 = vor.u32 %v864_v60, %v861_v56  ;;  %v448_v50 = vrot.slane %v446_v29, 4  ;;  %v451_v51 = vrot.slane %v449_v30, 5  ;;  %v2312_v56 = vld [vmem:[%s3074_s2 + $0x120] sm:$0xff] }
  0x29   : > { %622 = vmatpush.bf16.msra.mxu0 %v2276_v14  ;;  %2339 = vmatpush.bf16.msra.mxu1 %v2276_v14  ;;  %v429_v14 = vrot.slane %v427_v49, 5  ;;  %v866_v31 = vrot.slane %v865_v15, 4  ;;  %v437_v49 = vrot.slane %v435_v24, 5  ;;  %v351_v15 = vld [vmem:[%s2468_s12 + $0x98] sm:$0xff]  ;;  %v2294_v24 = vld [vmem:[%s3074_s2 + $0xd0] sm:$0xff] }
  0x2a   : > { %808 = vmatpush.bf16.msra.mxu2 %v2268_v20  ;;  %v501_v20 = vrot.slane %v2677_v53, 4 }
  0x2b   : > { %1126 = vmatpush.bf16.msra.mxu3 %v2284_v23  ;;  %v2700_v23 = vld [vmem:[%s2468_s12 + $0x80] sm:$0xff] }
  0x2c   : > { %623 = vmatmul.bf16.vlgmr.msra.gmra.mxu0 %v559_v34  ;;  %633 = vmatmul.bf16.vlgmr.msra.gmra.mxu1 %v561_v35  ;;  %v2321_v34 = vld [vmem:[%s3074_s2 + $0x168] sm:$0xff]  ;;  %v2711_v35 = vrot.slane %v432_v52, 4  ;;  %v890_v43 = vshll.u32 %v2700_v23, 16  ;;  %v2738_v46 = vunpack.c.l.b16 %v501_v20  ;;  %v901_v52 = vshrl.u32 %v2724_v39, 16 }
  0x2d   : > { %772 = vmatpush.bf16.msrb.mxu1 %v2267_v18  ;;  %1148 = vmatpush.bf16.msrb.mxu0 %v2299_v19  ;;  %v875_v18 = vrot.slane %v873_v61, 4  ;;  %v498_v19 = vrot.slane %v2578_v54, 4  ;;  %v2313_v54 = vld [vmem:[%s3074_s2 + $0x128] sm:$0xff]  ;;  %v906_v20 = vrot.slane %v904_v4, 5  ;;  %v646_v4 = vunpack.c.l.b16 %v2615_v11 }
  0x2e   : > { %1466 = vmatpush.bf16.msrb.mxu2 %v2315_v36  ;;  %1127 = vmatmul.bf16.vlgmr.msra.gmra.mxu3 %v1007_v48  ;;  %v2721_v36 = vsel %vm2584_vm2, %v411_v59, %v415_v2  ;;  %v2295_v59 = vld [vmem:[%s3074_s2 + $0xd8] sm:$0xff]  ;;  %v438_v30 = vor.u32 %v437_v49, %v2711_v35  ;;  %v2261_v35 = vld [vmem:[%s3074_s2 + $0x8] sm:$0xff] }
  0x2f   : > { %1495 = vmatpush.bf16.msrb.mxu3 %v2323_v40  ;;  %809 = vmatmul.bf16.vlgmr.msra.gmra.mxu2 %v661_v47  ;;  %v879_v37 = vor.u32 %v878_v22, %v875_v18  ;;  %v2728_v40 = vsel %vm2584_vm2, %v425_v3, %v429_v14  ;;  %v2736_v44 = vunpack.c.l.b16 %v498_v19  ;;  %v2740_v47 = vunpack.c.l.b16 %v502_v21  ;;  %v353_v19 = vld [vmem:[%s2468_s12 + $0xa8] sm:$0xff]  ;;  %v2311_v21 = vld [vmem:[%s3074_s2 + $0x118] sm:$0xff]  ;;  %v2262_v22 = vld [vmem:[%s3074_s2 + $0x10] sm:$0xff] }
  0x30   : > { %v649_v60 = vunpack.c.h.b16 %v2721_v36  ;;  %v651_v61 = vunpack.c.h.b16 %v2728_v40  ;;  %v892_v3 = vrot.slane %v890_v43, 5  ;;  %v903_v18 = vrot.slane %v901_v52, 4  ;;  %v2320_v43 = vld [vmem:[%s3074_s2 + $0x160] sm:$0xff] }
  0x31   : > { %773 = vmatpush.bf16.msrb.mxu1 %v2266_v41  ;;  %1149 = vmatpush.bf16.msrb.mxu0 %v2298_v42  ;;  %v2732_v41 = vsel %vm2584_vm2, %v866_v31, %v870_v16  ;;  %v887_v42 = vshrl.u32 %v2700_v23, 16  ;;  %v880_v48 = vrot.slane %v879_v37, 4  ;;  %v560_v5 = vpack.c.b16 %v2736_v44, %v2609_v9  ;;  %v349_v16 = vld [vmem:[%s2468_s12 + $0x88] sm:$0xff] }
  0x32   : > { %1467 = vmatpush.bf16.msrb.mxu2 %v2314_v62  ;;  %v562_v14 = vpack.c.b16 %v2740_v47, %v2738_v46  ;;  %v663_v29 = vpack.c.b16 %v651_v61, %v649_v60  ;;  %v896_v37 = vshll.u32 %v349_v16, 16  ;;  %v439_v49 = vrot.slane %v438_v30, 4  ;;  %v2309_v16 = vld [vmem:[%s3074_s2 + $0x108] sm:$0xff] }
  0x33   : > { %1496 = vmatpush.bf16.msrb.mxu3 %v2322_v63  ;;  %v2756_v62 = vsel %vm2584_vm2, %v880_v48, %v884_v38  ;;  %v995_v63 = vunpack.c.l.b16 %v2732_v41  ;;  %v889_v2 = vrot.slane %v887_v42, 4  ;;  %v907_v38 = vor.u32 %v906_v20, %v903_v18  ;;  %v2293_v48 = vld [vmem:[%s3074_s2 + $0xc8] sm:$0xff] }
  0x34   : > { %v910_v42 = vshll.u32 %v353_v19, 16  ;;  %v992_v18 = vunpack.c.h.b16 %v2619_v12  ;;  %v994_v19 = vunpack.c.h.b16 %v2623_v13  ;;  %v474_v20 = vshrl.u32 %v2680_v58, 16  ;;  %v2307_v12 = vld [vmem:[%s3075_s3 + $0x78] sm:$0xff] }
  0x35   : > { %774 = vmatpush.bf16.msrb.mxu1 %v2265_v0  ;;  %1150 = vmatpush.bf16.msrb.mxu0 %v2297_v1  ;;  %v997_v0 = vunpack.c.l.b16 %v2756_v62  ;;  %v347_v1 = vld [vmem:[%s2468_s12 + $0x78] sm:$0xff]  ;;  %v1551_v6 = vpack.c.b16 %v2602_v7, %v2736_v44  ;;  %v1552_v7 = vpack.c.b16 %v2738_v46, %v2611_v10 }
  0x36   : > { %1468 = vmatpush.bf16.msrb.mxu2 %v2313_v54  ;;  %v441_v31 = vshll.u32 %v347_v1, 16  ;;  %v452_v54 = vor.u32 %v451_v51, %v448_v50  ;;  %v2796_v1 = vld [vmem:[%s2468_s12 + $0xc0] sm:$0xff] }
  0x37   : > { %1497 = vmatpush.bf16.msrb.mxu3 %v2321_v34  ;;  %v1009_v34 = vpack.c.b16 %v997_v0, %v995_v63  ;;  %v908_v63 = vrot.slane %v907_v38, 4  ;;  %v912_v0 = vrot.slane %v910_v42, 5  ;;  %v476_v38 = vrot.slane %v474_v20, 4 }
  0x38   : > { %v443_v50 = vrot.slane %v441_v31, 5  ;;  %v453_v51 = vrot.slane %v452_v54, 4  ;;  %v918_v31 = vshll.u32 %v2796_v1, 16 }
  0x39   : > { %775 = vmatpush.bf16.msrb.mxu1 %v2264_v28  ;;  %1151 = vmatpush.bf16.msrb.mxu0 %v2296_v33  ;;  %v455_v28 = vshll.u32 %v351_v15, 16  ;;  %v893_v33 = vor.u32 %v892_v3, %v889_v2  ;;  %v2319_v2 = vld [vmem:[%s3074_s2 + $0x158] sm:$0xff]  ;;  %v644_v3 = vunpack.c.l.b16 %v2607_v8  ;;  %v2806_v15 = vld [vmem:[%s2468_s12 + $0xe0] sm:$0xff]  ;;  %v477_v8 = vshll.u32 %v2680_v58, 16 }
  0x3a   : > { %1469 = vmatpush.bf16.msrb.mxu2 %v2312_v56  ;;  %v2826_v13 = vsel %vm2584_vm2, %v439_v49, %v443_v50  ;;  %v2844_v30 = vsel %vm2584_vm2, %v908_v63, %v912_v0  ;;  %v929_v54 = vshrl.u32 %v2806_v15, 16  ;;  %v1008_v49 = vpack.c.b16 %v994_v19, %v992_v18 }
  0x3b   : > { %v457_v52 = vrot.slane %v455_v28, 5  ;;  %v894_v56 = vrot.slane %v893_v33, 4  ;;  %1498 = vmatpush.bf16.msrb.mxu3 %v2320_v43  ;;  %v2318_v28 = vld [vmem:[%s3074_s2 + $0x150] sm:$0xff]  ;;  %v479_v42 = vrot.slane %v477_v8, 5  ;;  %v653_v43 = vunpack.c.h.b16 %v2826_v13 }
  0x3c   : > { %628 = vmatmul.bf16.gmra.mxu0 %v560_v5  ;;  %638 = vmatmul.bf16.gmra.mxu1 %v562_v14  ;;  %v460_v5 = vshrl.u32 %v2677_v53, 16  ;;  %v463_v14 = vshll.u32 %v2677_v53, 16  ;;  %v2260_v53 = vld [vmem:[%s3074_s2] sm:$0xff]  ;;  %v920_v0 = vrot.slane %v918_v31, 5 }
  0x3d   : > { %776 = vmatpush.bf16.msrb.mxu1 %v2263_v57  ;;  %1152 = vmatpush.bf16.msrb.mxu0 %v2295_v59  ;;  %v898_v57 = vrot.slane %v896_v37, 5  ;;  %v2310_v59 = vld [vmem:[%s3074_s2 + $0x110] sm:$0xff]  ;;  %v2830_v58 = vsel %vm2584_vm2, %v453_v51, %v457_v52  ;;  %v1001_v51 = vunpack.c.l.b16 %v2844_v30 }
  0x3e   : > { %1470 = vmatpush.bf16.msrb.mxu2 %v2311_v21  ;;  %1132 = vmatmul.bf16.gmra.mxu3 %v1009_v34  ;;  %v2292_v21 = vld [vmem:[%s3074_s2 + $0xc0] sm:$0xff]  ;;  %v932_v34 = vshll.u32 %v2806_v15, 16  ;;  %v462_v33 = vrot.slane %v460_v5, 4  ;;  %v465_v37 = vrot.slane %v463_v14, 5  ;;  %v2306_v52 = vld [vmem:[%s3075_s3 + $0x70] sm:$0xff]  ;;  %v357_v5 = vld [vmem:[%s2468_s12 + $0xc8] sm:$0xff] }
  0x3f   : > { %814 = vmatmul.bf16.gmra.mxu2 %v663_v29  ;;  %v915_v29 = vshrl.u32 %v2796_v1, 16  ;;  %1499 = vmatpush.bf16.msrb.mxu3 %v2319_v2  ;;  %v931_v2 = vrot.slane %v929_v54, 4  ;;  %v361_v14 = vld [vmem:[%s2468_s12 + $0xe8] sm:$0xff]  ;;  %v924_v31 = vshll.u32 %v357_v5, 16 }
  0x40   : > { %v466_v19 = vor.u32 %v465_v37, %v462_v33  ;;  %v2316_v33 = vld [vmem:[%s3074_s2 + $0x140] sm:$0xff]  ;;  %v2329_v37 = vld [vmem:[%s3075_s3 + $0xa8] sm:$0xff] }
  0x41   : > { %777 = vmatpush.bf16.msrb.mxu1 %v2262_v22  ;;  %1153 = vmatpush.bf16.msrb.mxu0 %v2294_v24  ;;  %v2834_v22 = vsel %vm2584_vm2, %v894_v56, %v898_v57  ;;  %v2839_v24 = vld [vmem:[%s3075_s3 + $0xb8] sm:$0xff]  ;;  %v2330_v56 = vld [vmem:[%s3075_s3 + $0xb0] sm:$0xff]  ;;  %v917_v63 = vrot.slane %v915_v29, 4 }
  0x42   : > { %1471 = vmatpush.bf16.msrb.mxu2 %v2310_v59  ;;  %v999_v50 = vunpack.c.l.b16 %v2834_v22  ;;  %v355_v57 = vld [vmem:[%s2468_s12 + $0xb8] sm:$0xff] }
  0x43   : > { %v359_v59 = vld [vmem:[%s2468_s12 + $0xd8] sm:$0xff]  ;;  %1500 = vmatpush.bf16.msrb.mxu3 %v2318_v28  ;;  %v469_v8 = vshll.u32 %v355_v57, 16  ;;  %v921_v29 = vor.u32 %v920_v0, %v917_v63  ;;  %v2308_v28 = vld [vmem:[%s3074_s2 + $0x100] sm:$0xff]  ;;  %v648_v0 = vunpack.c.l.b16 %v2721_v36 }
  0x44   : > { %v1011_v20 = vpack.c.b16 %v1001_v51, %v999_v50  ;;  %v926_v51 = vrot.slane %v924_v31, 5  ;;  %v2328_v63 = vld [vmem:[%s3075_s3 + $0xa0] sm:$0xff]  ;;  %v2327_v31 = vld [vmem:[%s3075_s3 + $0x98] sm:$0xff] }
  0x45   : > { %778 = vmatpush.bf16.msrb.mxu1 %v2261_v35  ;;  %1154 = vmatpush.bf16.msrb.mxu0 %v2293_v48  ;;  %v655_v35 = vunpack.c.h.b16 %v2830_v58  ;;  %v660_v48 = vpack.c.b16 %v646_v4, %v644_v3  ;;  %v934_v3 = vrot.slane %v932_v34, 5  ;;  %v938_v34 = vshll.u32 %v361_v14, 16 }
  0x46   : > { %1472 = vmatpush.bf16.msrb.mxu2 %v2309_v16  ;;  %v2317_v16 = vld [vmem:[%s3074_s2 + $0x148] sm:$0xff]  ;;  %v922_v50 = vrot.slane %v921_v29, 4  ;;  %v998_v14 = vunpack.c.h.b16 %v2756_v62 }
  0x47   : > { %v665_v18 = vpack.c.b16 %v655_v35, %v653_v43  ;;  %v935_v54 = vor.u32 %v934_v3, %v931_v2  ;;  %1501 = vmatpush.bf16.msrb.mxu3 %v2317_v16  ;;  %v940_v57 = vrot.slane %v938_v34, 5  ;;  %v650_v2 = vunpack.c.l.b16 %v2728_v40  ;;  %v2326_v34 = vld [vmem:[%s3075_s3 + $0x90] sm:$0xff] }
  0x48   : > { %v996_v3 = vunpack.c.h.b16 %v2732_v41  ;;  %v2303_v41 = vld [vmem:[%s3075_s3 + $0x58] sm:$0xff] }
  0x49   : > { %779 = vmatpush.bf16.msrb.mxu1 %v2260_v53  ;;  %1155 = vmatpush.bf16.msrb.mxu0 %v2292_v21  ;;  %v480_v53 = vor.u32 %v479_v42, %v476_v38  ;;  %v483_v21 = vshll.u32 %v359_v59, 16  ;;  %v467_v38 = vrot.slane %v466_v19, 4  ;;  %v471_v42 = vrot.slane %v469_v8, 5  ;;  %v2304_v59 = vld [vmem:[%s3075_s3 + $0x60] sm:$0xff] }
  0x4a   : > { %1473 = vmatpush.bf16.msrb.mxu2 %v2308_v28  ;;  %v2300_v28 = vld [vmem:[%s3075_s3 + $0x40] sm:$0xff] }
  0x4b   : > { %1502 = vmatpush.bf16.msrb.mxu3 %v2316_v33  ;;  %v2900_v5 = vsel %vm2584_vm2, %v467_v38, %v471_v42  ;;  %v2325_v33 = vld [vmem:[%s3075_s3 + $0x88] sm:$0xff]  ;;  %v654_v38 = vunpack.c.l.b16 %v2830_v58  ;;  %v1000_v42 = vunpack.c.h.b16 %v2834_v22  ;;  %v2324_v22 = vld [vmem:[%s3075_s3 + $0x80] sm:$0xff] }
  0x4c   : > { %780 = vmatmul.bf16.vlgmr.msrb.gmra.mxu1 %v660_v48  ;;  %1156 = vmatmul.bf16.vlgmr.msrb.gmra.mxu0 %v1008_v49  ;;  %v481_v48 = vrot.slane %v480_v53, 4  ;;  %v485_v49 = vrot.slane %v483_v21, 5  ;;  %v657_v19 = vunpack.c.h.b16 %v2900_v5  ;;  %v662_v53 = vpack.c.b16 %v650_v2, %v648_v0 }
  0x4d   : > { %1266 = vmatpush.bf16.msra.mxu1 %v2307_v12  ;;  %1606 = vmatpush.bf16.msra.mxu0 %v2839_v24  ;;  %v2305_v12 = vld [vmem:[%s3075_s3 + $0x68] sm:$0xff]  ;;  %v1010_v21 = vpack.c.b16 %v998_v14, %v996_v3  ;;  %v362_v3 = vld [vmem:[%s2468_s12 + $0xf0] sm:$0xff] }
  0x4e   : > { %1137 = vmatmul.bf16.gmra.mxu3 %v1011_v20  ;;  %2340 = vmatpush.bf16.msra.mxu2 %v2839_v24  ;;  %v2905_v16 = vsel %vm2584_vm2, %v481_v48, %v485_v49  ;;  %v1002_v48 = vunpack.c.h.b16 %v2844_v30  ;;  %v656_v30 = vunpack.c.l.b16 %v2900_v5  ;;  %v1318_v55 = vrot.slane %v362_v3, 4 }
  0x4f   : > { %819 = vmatmul.bf16.gmra.mxu2 %v665_v18  ;;  %v927_v18 = vsel %vm2584_vm2, %v922_v50, %v926_v51  ;;  %v659_v62 = vunpack.c.h.b16 %v2905_v16  ;;  %v1354_v51 = vpack.c.b16 %v648_v0, %v646_v4  ;;  %v658_v4 = vunpack.c.l.b16 %v2905_v16 }
  0x50   : > { %v1003_v20 = vunpack.c.l.b16 %v927_v18  ;;  %v1012_v50 = vpack.c.b16 %v1002_v48, %v1000_v42  ;;  %v951_v0 = vrot.slane %v2539_v27, 4 }
  0x51   : > { %1267 = vmatpush.bf16.msra.mxu1 %v2306_v52  ;;  %1607 = vmatpush.bf16.msra.mxu0 %v2330_v56  ;;  %v936_v52 = vrot.slane %v935_v54, 4  ;;  %v667_v29 = vpack.c.b16 %v659_v62, %v657_v19  ;;  %v2301_v54 = vld [vmem:[%s3075_s3 + $0x48] sm:$0xff] }
  0x52   : > { %2341 = vmatpush.bf16.msra.mxu2 %v2330_v56 }
  0x53   : > { %v941_v24 = vsel %vm2584_vm2, %v936_v52, %v940_v57  ;;  %v1355_v52 = vpack.c.b16 %v649_v60, %v647_v26  ;;  %v1004_v57 = vunpack.c.h.b16 %v927_v18  ;;  %v1357_v60 = vpack.c.b16 %v653_v43, %v651_v61 }
  0x54   : > { %v1005_v8 = vunpack.c.l.b16 %v941_v24  ;;  %v1006_v11 = vunpack.c.h.b16 %v941_v24  ;;  %v1203_v18 = vunpack.c.l.b16 %v951_v0  ;;  %v1304_v24 = vshrl.u32 %v362_v3, 16 }
  0x55   : > { %1268 = vmatpush.bf16.msra.mxu1 %v2305_v12  ;;  %1608 = vmatpush.bf16.msra.mxu0 %v2329_v37  ;;  %v2302_v12 = vld [vmem:[%s3075_s3 + $0x50] sm:$0xff]  ;;  %v1359_v61 = vpack.c.b16 %v657_v19, %v655_v35  ;;  %v952_v43 = vrot.slane %v2648_v32, 4  ;;  %v954_v32 = vrot.slane %v2700_v23, 4  ;;  %v957_v23 = vrot.slane %v2806_v15, 4 }
  0x56   : > { %2342 = vmatpush.bf16.msra.mxu2 %v2329_v37  ;;  %v1013_v56 = vpack.c.b16 %v1005_v8, %v1003_v20  ;;  %v652_v37 = vunpack.c.l.b16 %v2826_v13  ;;  %v1014_v36 = vpack.c.b16 %v1006_v11, %v1004_v57  ;;  %v1306_v20 = vrot.slane %v1304_v24, 4  ;;  %v363_v8 = vld [vmem:[%s2468_s12 + $0xf8] sm:$0xff] }
  0x57   : > { %v1358_v13 = vpack.c.b16 %v656_v30, %v654_v38  ;;  %v1313_v27 = vshll.u32 %v363_v8, 16 }
  0x58   : > { %v664_v49 = vpack.c.b16 %v654_v38, %v652_v37  ;;  %v1356_v26 = vpack.c.b16 %v652_v37, %v650_v2 }
  0x59   : > { %1269 = vmatpush.bf16.msra.mxu1 %v2304_v59  ;;  %1609 = vmatpush.bf16.msra.mxu0 %v2328_v63  ;;  %v666_v59 = vpack.c.b16 %v658_v4, %v656_v30 }
  0x5a   : > { %2343 = vmatpush.bf16.msra.mxu2 %v2328_v63  ;;  %v950_v63 = vrot.slane %v2535_v25, 4 }
  0x5c   : > { %785 = vmatmul.bf16.gmra.mxu1 %v662_v53  ;;  %1161 = vmatmul.bf16.gmra.mxu0 %v1010_v21  ;;  %v1202_v14 = vunpack.c.l.b16 %v950_v63  ;;  %v953_v53 = vrot.slane %v2668_v45, 4  ;;  %v955_v45 = vrot.slane %v2724_v39, 4 }
  0x5d   : > { %1270 = vmatpush.bf16.msra.mxu1 %v2303_v41  ;;  %1610 = vmatpush.bf16.msra.mxu0 %v2327_v31  ;;  %v1307_v41 = vshll.u32 %v362_v3, 16 }
  0x5e   : > { %1142 = vmatmul.bf16.gmra.mxu3 %v1013_v56  ;;  %2344 = vmatpush.bf16.msra.mxu2 %v2327_v31  ;;  %v1210_v2 = vpack.c.b16 %v1203_v18, %v1202_v14  ;;  %v1205_v58 = vunpack.c.l.b16 %v953_v53  ;;  %v1206_v31 = vunpack.c.l.b16 %v954_v32 }
  0x5f   : > { %824 = vmatmul.bf16.gmra.mxu2 %v667_v29  ;;  %v1309_v40 = vrot.slane %v1307_v41, 5  ;;  %v1204_v29 = vunpack.c.l.b16 %v952_v43 }
  0x61   : > { %1271 = vmatpush.bf16.msra.mxu1 %v2302_v12  ;;  %1611 = vmatpush.bf16.msra.mxu0 %v2326_v34  ;;  %v1310_v25 = vor.u32 %v1309_v40, %v1306_v20  ;;  %v1315_v12 = vrot.slane %v1313_v27, 5  ;;  %v1211_v56 = vpack.c.b16 %v1205_v58, %v1204_v29 }
  0x62   : > { %2345 = vmatpush.bf16.msra.mxu2 %v2326_v34  ;;  %v1549_v34 = vunpack.c.l.b16 %v1318_v55 }
  0x63   : > { %v1311_v21 = vrot.slane %v1310_v25, 4 }
  0x64   : > { %v1553_v16 = vpack.c.b16 %v1549_v34, %v2740_v47 }
  0x65   : > { %1272 = vmatpush.bf16.msra.mxu1 %v2301_v54  ;;  %1612 = vmatpush.bf16.msra.mxu0 %v2325_v33  ;;  %v1316_v35 = vsel %vm2584_vm2, %v1311_v21, %v1315_v12  ;;  %v1207_v54 = vunpack.c.l.b16 %v955_v45 }
  0x66   : > { %2346 = vmatpush.bf16.msra.mxu2 %v2325_v33  ;;  %v1352_v5 = vunpack.c.l.b16 %v1316_v35  ;;  %v1353_v19 = vunpack.c.h.b16 %v1316_v35 }
  0x68   : > { %v1360_v9 = vpack.c.b16 %v1352_v5, %v658_v4 }
  0x69   : > { %1273 = vmatpush.bf16.msra.mxu1 %v2300_v28  ;;  %1613 = vmatpush.bf16.msra.mxu0 %v2324_v22  ;;  %v1212_v28 = vpack.c.b16 %v1207_v54, %v1206_v31 }
  0x6a   : > { %2347 = vmatpush.bf16.msra.mxu2 %v2324_v22 }
  0x6c   : > { %790 = vmatmul.bf16.gmra.mxu1 %v664_v49  ;;  %1166 = vmatmul.bf16.gmra.mxu0 %v1012_v50  ;;  %v1209_v49 = vunpack.c.l.b16 %v957_v23 }
  0x6e   : > { %1503 = vmatmul.bf16.vlgmr.msrb.gmra.mxu3 %v1355_v52 }
  0x6f   : > { %1474 = vmatmul.bf16.vlgmr.msrb.gmra.mxu2 %v1354_v51 }
  0x7c   : > { %795 = vmatmul.bf16.gmra.mxu1 %v666_v59  ;;  %1171 = vmatmul.bf16.gmra.mxu0 %v1014_v36 }
  0x7e   : > { %1508 = vmatmul.bf16.gmra.mxu3 %v1357_v60 }
  0x7f   : > { %1479 = vmatmul.bf16.gmra.mxu2 %v1356_v26 }
  0x8c   : > { %1274 = vmatmul.bf16.vlgmr.msra.gmra.mxu1 %v1210_v2  ;;  %1614 = vmatmul.bf16.vlgmr.msra.gmra.mxu0 %v1550_v17  ;;  %v1361_v17 = vpack.c.b16 %v1353_v19, %v659_v62  ;;  %v956_v62 = vrot.slane %v2796_v1, 4 }
  0x8e   : > { %1513 = vmatmul.bf16.gmra.mxu3 %v1359_v61  ;;  %v1208_v48 = vunpack.c.l.b16 %v956_v62 }
  0x8f   : > { %1484 = vmatmul.bf16.gmra.mxu2 %v1358_v13 }
  0x90   : > { %v1213_v50 = vpack.c.b16 %v1209_v49, %v1208_v48 }
  0x9c   : > { %1279 = vmatmul.bf16.gmra.mxu1 %v1211_v56  ;;  %1619 = vmatmul.bf16.gmra.mxu0 %v1551_v6 }
  0x9e   : > { %1518 = vmatmul.bf16.gmra.mxu3 %v1361_v17 }
  0x9f   : > { %1489 = vmatmul.bf16.gmra.mxu2 %v1360_v9 }
  0xa9   : > { %v624_v44 = vpop.f32.mrf.mxu0  ;;  %v634_v33 = vpop.f32.mrf.mxu1 }
  0xac   : > { %1284 = vmatmul.bf16.gmra.mxu1 %v1212_v28  ;;  %1624 = vmatmul.bf16.gmra.mxu0 %v1552_v7 }
  0xaf   : > { %1629 = vmatmul.bf16.vlgmr.msra.gmra.mxu2 %v1553_v16 }
  0xb1   : > { %v626_v39 = vpop.f32.mrf.mxu0  ;;  %v636_v37 = vpop.f32.mrf.mxu1 }
  0xb2   : > { %v810_v38 = vpop.f32.mrf.mxu2  ;;  %v1128_v42 = vpop.f32.mrf.mxu3 }
  0xb9   : > { %v629_v51 = vpop.f32.mrf.mxu0  ;;  %v639_v10 = vpop.f32.mrf.mxu1 }
  0xba   : > { %v812_v46 = vpop.f32.mrf.mxu2  ;;  %v2983_v52 = vpop.f32.mrf.mxu3 }
  0xbc   : > { %1289 = vmatmul.bf16.gmra.mxu1 %v1213_v50 }
  0xc1   : > { %v631_v47 = vpop.f32.mrf.mxu0  ;;  %v641_v22 = vpop.f32.mrf.mxu1 }
  0xc2   : > { %v815_v30 = vpop.f32.mrf.mxu2  ;;  %v2985_v4 = vpop.f32.mrf.mxu3 }
  0xc9   : > { %v781_v1 = vpop.f32.mrf.mxu1  ;;  %v1157_v15 = vpop.f32.mrf.mxu0 }
  0xca   : > { %v782_v57 = vadd.f32 %v781_v1, %v624_v44  ;;  %v817_v11 = vpop.f32.mrf.mxu2  ;;  %v2987_v59 = vpop.f32.mrf.mxu3  ;;  %v1158_v62 = vadd.f32 %v1157_v15, %v1128_v42 }
  0xcc   : > { %v811_v36 = vadd.f32 %v810_v38, %v782_v57 }
  0xce   : > { %v1177_v23 = vadd.f32 %v1158_v62, %v811_v36 }
  0xd1   : > { %v783_v26 = vpop.f32.mrf.mxu1  ;;  %v1159_v60 = vpop.f32.mrf.mxu0 }
  0xd2   : > { %v784_v63 = vadd.f32 %v783_v26, %v626_v39  ;;  %v820_v0 = vpop.f32.mrf.mxu2  ;;  %v2989_v3 = vpop.f32.mrf.mxu3 }
  0xd4   : > { %v813_v14 = vadd.f32 %v812_v46, %v784_v63  ;;  %v1160_v46 = vadd.f32 %v1159_v60, %v2983_v52 }
  0xd6   : > { %v1178_v42 = vadd.f32 %v1160_v46, %v813_v14 }
  0xd9   : > { %v786_v18 = vpop.f32.mrf.mxu1  ;;  %v1162_v24 = vpop.f32.mrf.mxu0 }
  0xda   : > { %v787_v41 = vadd.f32 %v786_v18, %v629_v51  ;;  %v822_v2 = vpop.f32.mrf.mxu2  ;;  %v2991_v20 = vpop.f32.mrf.mxu3 }
  0xdc   : > { %v816_v40 = vadd.f32 %v815_v30, %v787_v41 }
  0xe1   : > { %v788_v8 = vpop.f32.mrf.mxu1  ;;  %v2993_v13 = vpop.f32.mrf.mxu0 }
  0xe2   : > { %v789_v61 = vadd.f32 %v788_v8, %v631_v47  ;;  %v825_v25 = vpop.f32.mrf.mxu2  ;;  %v2997_v43 = vpop.f32.mrf.mxu3 }
  0xe4   : > { %v2995_v27 = vadd.f32 %v817_v11, %v789_v61 }
  0xe9   : > { %v791_v53 = vpop.f32.mrf.mxu1  ;;  %v2999_v21 = vpop.f32.mrf.mxu0 }
  0xea   : > { %v792_v12 = vadd.f32 %v791_v53, %v634_v33  ;;  %v827_v29 = vpop.f32.mrf.mxu2  ;;  %v3003_v35 = vpop.f32.mrf.mxu3 }
  0xec   : > { %v3001_v58 = vadd.f32 %v820_v0, %v792_v12  ;;  %v1163_v0 = vadd.f32 %v1162_v24, %v2985_v4  ;;  %v1165_v4 = vadd.f32 %v2993_v13, %v2987_v59  ;;  %v1168_v59 = vadd.f32 %v2999_v21, %v2989_v3 }
  0xee   : > { %v1179_v14 = vadd.f32 %v1163_v0, %v816_v40 }
  0xf1   : > { %v793_v5 = vpop.f32.mrf.mxu1  ;;  %v3005_v19 = vpop.f32.mrf.mxu0 }
  0xf2   : > { %v794_v56 = vadd.f32 %v793_v5, %v636_v37  ;;  %v1475_v6 = vpop.f32.mrf.mxu2  ;;  %v1504_v17 = vpop.f32.mrf.mxu3  ;;  %v1170_v21 = vadd.f32 %v3005_v19, %v2991_v20 }
  0xf3   : > { %v1505_v38 = vadd.f32 %v1504_v17, %v1475_v6 }
  0xf4   : > { %v3007_v9 = vadd.f32 %v822_v2, %v794_v56 }
  0xf9   : > { %v796_v32 = vpop.f32.mrf.mxu1  ;;  %v3009_v45 = vpop.f32.mrf.mxu0 }
  0xfa   : > { %v797_v55 = vadd.f32 %v796_v32, %v639_v10  ;;  %v1477_v31 = vpop.f32.mrf.mxu2  ;;  %v1506_v7 = vpop.f32.mrf.mxu3  ;;  %v3020_v10 = vld [vmem:[%s3076_s4] ss:$0 sm:$0xff]  ;;  %v1173_v19 = vadd.f32 %v3009_v45, %v2997_v43 }
  0xfb   : > { %v1507_v15 = vadd.f32 %v1506_v7, %v1477_v31 }
  0xfc   : > { %v3011_v54 = vadd.f32 %v825_v25, %v797_v55  ;;  %v1180_v55 = vadd.f32 %v1165_v4, %v2995_v27 }
 0x101   : > { %v798_v34 = vpop.f32.mrf.mxu1  ;;  %v3013_v28 = vpop.f32.mrf.mxu0 }
 0x102   : > { %v799_v44 = vadd.f32 %v798_v34, %v641_v22  ;;  %v1480_v33 = vpop.f32.mrf.mxu2  ;;  %v1509_v50 = vpop.f32.mrf.mxu3  ;;  %v1175_v43 = vadd.f32 %v3013_v28, %v3003_v35 }
 0x103   : > { %v1510_v25 = vadd.f32 %v1509_v50, %v1480_v33 }
 0x104   : > { %v3015_v16 = vadd.f32 %v827_v29, %v799_v44 }
 0x109   : > { %v1275_v39 = vpop.f32.mrf.mxu1  ;;  %v1615_v37 = vpop.f32.mrf.mxu0 }
 0x10a   : > { %v1295_v48 = vadd.f32 %v1275_v39, %v1177_v23  ;;  %v1482_v49 = vpop.f32.mrf.mxu2  ;;  %v1511_v18 = vpop.f32.mrf.mxu3 }
 0x10b   : > { %v1512_v7 = vadd.f32 %v1511_v18, %v1482_v49 }
 0x10c   : > { %v1524_v51 = vadd.f32 %v1505_v38, %v1295_v48  ;;  %v1181_v48 = vadd.f32 %v1168_v59, %v3001_v58  ;;  %v1182_v58 = vadd.f32 %v1170_v21, %v3007_v9 }
 0x10e   : > { %v1635_v47 = vadd.f32 %v1615_v37, %v1524_v51 }
 0x110   : > { %v1647_v22 = vadd.f32 %v3020_v10, %v1635_v47 }
 0x111   : > { %v1277_v30 = vpop.f32.mrf.mxu1  ;;  %v1617_v1 = vpop.f32.mrf.mxu0 }
 0x112   : > { %v1655_v57 = vmax.f32 %v1647_v22, 0.0  ;;  %v1296_v11 = vadd.f32 %v1277_v30, %v1178_v42  ;;  %v1485_v36 = vpop.f32.mrf.mxu2  ;;  %v1514_v17 = vpop.f32.mrf.mxu3 }
 0x113   : > { %v1515_v51 = vadd.f32 %v1514_v17, %v1485_v36  ;;  %v1184_v17 = vadd.f32 %v1175_v43, %v3015_v16 }
 0x114   : > { %v1663_v26 = vpack.c.bf16 %v1655_v57, %v1655_v57  ;;  %v1525_v63 = vadd.f32 %v1507_v15, %v1296_v11 }
 0x116   : > { %v1687_v41 = vrot.slane %v1663_v26, 7  ;;  %v1636_v2 = vadd.f32 %v1617_v1, %v1525_v63 }
 0x118   : > { %v1688_v52 = vrot.slane %v1687_v41, 4  ;;  %1719 = vst [vmem:[%s2473_s15] sm:$0xe] %v1687_v41  ;;  %v1648_v60 = vadd.f32 %v3020_v10, %v1636_v2 }
 0x119   : > { %v1280_v8 = vpop.f32.mrf.mxu1  ;;  %v1620_v61 = vpop.f32.mrf.mxu0 }
 0x11a   : > { %1720 = vst [vmem:[%s2473_s15 + $0x4] sm:$0x1] %v1688_v52  ;;  %v1656_v53 = vmax.f32 %v1648_v60, 0.0  ;;  %v1297_v12 = vadd.f32 %v1280_v8, %v1179_v14  ;;  %v1487_v56 = vpop.f32.mrf.mxu2  ;;  %v1516_v22 = vpop.f32.mrf.mxu3  ;;  %v1183_v8 = vadd.f32 %v1173_v19, %v3011_v54 }
 0x11b   : > { %v1517_v26 = vadd.f32 %v1516_v22, %v1487_v56 }
 0x11c   : > { %v1664_v29 = vpack.c.bf16 %v1656_v53, %v1656_v53  ;;  %v1526_v5 = vadd.f32 %v1510_v25, %v1297_v12 }
 0x11e   : > { %v1689_v24 = vrot.slane %v1664_v29, 7  ;;  %v1637_v6 = vadd.f32 %v1620_v61, %v1526_v5 }
 0x120   : > { %v1690_v32 = vrot.slane %v1689_v24, 4  ;;  %1721 = vst [vmem:[%s2473_s15 + $0x8] sm:$0xe] %v1689_v24  ;;  %v1649_v40 = vadd.f32 %v3020_v10, %v1637_v6 }
 0x121   : > { %v1282_v31 = vpop.f32.mrf.mxu1  ;;  %v1622_v34 = vpop.f32.mrf.mxu0 }
 0x122   : > { %1722 = vst [vmem:[%s2473_s15 + $0xc] sm:$0x1] %v1690_v32  ;;  %v1657_v44 = vmax.f32 %v1649_v40, 0.0  ;;  %v1298_v33 = vadd.f32 %v1282_v31, %v1180_v55  ;;  %v1490_v37 = vpop.f32.mrf.mxu2  ;;  %v1519_v20 = vpop.f32.mrf.mxu3 }
 0x123   : > { %v1520_v25 = vadd.f32 %v1519_v20, %v1490_v37 }
 0x124   : > { %v1665_v62 = vpack.c.bf16 %v1657_v44, %v1657_v44  ;;  %v1527_v23 = vadd.f32 %v1512_v7, %v1298_v33 }
 0x126   : > { %v1691_v13 = vrot.slane %v1665_v62, 7  ;;  %v1638_v39 = vadd.f32 %v1622_v34, %v1527_v23 }
 0x128   : > { %v1692_v38 = vrot.slane %v1691_v13, 4  ;;  %1723 = vst [vmem:[%s2473_s15 + $0x10] sm:$0xe] %v1691_v13  ;;  %v1650_v27 = vadd.f32 %v3020_v10, %v1638_v39 }
 0x129   : > { %v1285_v49 = vpop.f32.mrf.mxu1  ;;  %v1625_v50 = vpop.f32.mrf.mxu0 }
 0x12a   : > { %1724 = vst [vmem:[%s2473_s15 + $0x14] sm:$0x1] %v1692_v38  ;;  %v1658_v46 = vmax.f32 %v1650_v27, 0.0  ;;  %v1299_v47 = vadd.f32 %v1285_v49, %v1181_v48  ;;  %v1492_v11 = vpop.f32.mrf.mxu2  ;;  %v1521_v24 = vpop.f32.mrf.mxu3 }
 0x12b   : > { %v1522_v40 = vadd.f32 %v1521_v24, %v1492_v11 }
 0x12c   : > { %v1666_v42 = vpack.c.bf16 %v1658_v46, %v1658_v46  ;;  %v1528_v3 = vadd.f32 %v1515_v51, %v1299_v47 }
 0x12e   : > { %v1693_v30 = vrot.slane %v1666_v42, 7  ;;  %v1639_v1 = vadd.f32 %v1625_v50, %v1528_v3 }
 0x130   : > { %v1694_v15 = vrot.slane %v1693_v30, 4  ;;  %1725 = vst [vmem:[%s2473_s15 + $0x18] sm:$0xe] %v1693_v30  ;;  %v1651_v57 = vadd.f32 %v3020_v10, %v1639_v1 }
 0x131   : > { %v1287_v36 = vpop.f32.mrf.mxu1  ;;  %v1627_v18 = vpop.f32.mrf.mxu0 }
 0x132   : > { %1726 = vst [vmem:[%s2473_s15 + $0x1c] sm:$0x1] %v1694_v15  ;;  %v1659_v63 = vmax.f32 %v1651_v57, 0.0  ;;  %v1300_v0 = vadd.f32 %v1287_v36, %v1182_v58  ;;  %v1630_v29 = vpop.f32.mrf.mxu2 }
 0x134   : > { %v1667_v41 = vpack.c.bf16 %v1659_v63, %v1659_v63  ;;  %v1529_v2 = vadd.f32 %v1517_v26, %v1300_v0 }
 0x136   : > { %v1695_v52 = vrot.slane %v1667_v41, 7  ;;  %v1640_v60 = vadd.f32 %v1627_v18, %v1529_v2 }
 0x138   : > { %v1696_v14 = vrot.slane %v1695_v52, 4  ;;  %1727 = vst [vmem:[%s2473_s15 + $0x20] sm:$0xe] %v1695_v52  ;;  %v1652_v9 = vadd.f32 %v3020_v10, %v1640_v60 }
 0x139   : > { %v1290_v61 = vpop.f32.mrf.mxu1 }
 0x13a   : > { %1728 = vst [vmem:[%s2473_s15 + $0x24] sm:$0x1] %v1696_v14  ;;  %v1660_v53 = vmax.f32 %v1652_v9, 0.0  ;;  %v1301_v12 = vadd.f32 %v1290_v61, %v1183_v8  ;;  %v1632_v28 = vpop.f32.mrf.mxu2 }
 0x13c   : > { %v1668_v5 = vpack.c.bf16 %v1660_v53, %v1660_v53  ;;  %v1530_v56 = vadd.f32 %v1520_v25, %v1301_v12 }
 0x13e   : > { %v1697_v45 = vrot.slane %v1668_v5, 7  ;;  %v1641_v4 = vadd.f32 %v1630_v29, %v1530_v56 }
 0x140   : > { %v1698_v6 = vrot.slane %v1697_v45, 4  ;;  %1729 = vst [vmem:[%s2473_s15 + $0x28] sm:$0xe] %v1697_v45  ;;  %v1653_v54 = vadd.f32 %v3020_v10, %v1641_v4 }
 0x141   : > { %v1292_v32 = vpop.f32.mrf.mxu1 }
 0x142   : > { %1730 = vst [vmem:[%s2473_s15 + $0x2c] sm:$0x1] %v1698_v6  ;;  %v1661_v55 = vmax.f32 %v1653_v54, 0.0  ;;  %v1302_v31 = vadd.f32 %v1292_v32, %v1184_v17 }
 0x144   : > { %v1669_v34 = vpack.c.bf16 %v1661_v55, %v1661_v55  ;;  %v1531_v35 = vadd.f32 %v1522_v40, %v1302_v31 }
 0x146   : > { %v1699_v7 = vrot.slane %v1669_v34, 7  ;;  %v1642_v44 = vadd.f32 %v1632_v28, %v1531_v35 }
 0x148   : > { %v1700_v33 = vrot.slane %v1699_v7, 4  ;;  %1731 = vst [vmem:[%s2473_s15 + $0x30] sm:$0xe] %v1699_v7  ;;  %v1654_v62 = vadd.f32 %v3020_v10, %v1642_v44 }
 0x14a   : > { %1732 = vst [vmem:[%s2473_s15 + $0x34] sm:$0x1] %v1700_v33  ;;  %v1662_v23 = vmax.f32 %v1654_v62, 0.0 }
 0x14c   : > { %v1670_v59 = vpack.c.bf16 %v1662_v23, %v1662_v23 }
 0x14e   : > { %v1701_v16 = vrot.slane %v1670_v59, 7 }
 0x150   : > { %v1702_v13 = vrot.slane %v1701_v16, 4  ;;  %1733 = vst [vmem:[%s2473_s15 + $0x38] sm:$0xe] %v1701_v16 }
 0x152   : > { %1734 = vst [vmem:[%s2473_s15 + $0x3c] sm:$0x1] %v1702_v13 }
 0x153 PF: > { %s15_s20 = sadd.s32 1, %s2396_s20   ;;  %s3080_s18 = smov %s2392_s19 }
 0x154   : > { %p12_p5 = scmp.ge.s32.totalorder %s15_s20, 4   ;;  %s3081_s19 = smov %s3083_s1 }
 0x156   :  { %14 = sbr.rel (!%p12_p5) target bundleno = 2 (0x2), region = 77 }

// kernel: forward.6
= control target key start
LH: loop header
LB: loop body
LE: loop exit
PB: predicated region body
PF: predicated region fallthrough
CT: control target
= control target key end

     0   :  { %s2070_s18 = smov 0   ;;  %s2072_s19 = smov 0   ;;  %s2501_s0 = inlined_call_operand.vmem [shape: bf16[2,8,8,256], index: 0, kind: input, shape index: {}, may-alias: {0,1}]   ;;  %s2502_s1 = inlined_call_operand.vmem [shape: bf16[2,8,8,256], index: 1, kind: input, shape index: {}, may-alias: {0,1}]   ;;  %s2503_s2 = inlined_call_operand.vmem [shape: bf16[3,256,128], index: 2, kind: input, shape index: {}]   ;;  %s2504_s3 = inlined_call_operand.vmem [shape: bf16[3,128,128], index: 3, kind: input, shape index: {}]   ;;  %s2505_s4 = inlined_call_operand.vmem [shape: f32[1,128], index: 4, kind: input, shape index: {}]   ;;  %s2506_s5 = inlined_call_operand.vmem [shape: bf16[2,4,16,128], index: 5, kind: output, shape index: {}]  }
   0x1   :  { %s2074_s20 = smov 0  }
   0x2 LB: > { %s27_s1 = sadd.s32 1, %s2033_s19  ;;  %p1521_p0 = scmp.ge.s32.totalorder %s2037_s20, 1  ;;  %s2037_s20 = sphi %s2074_s20, %s15_s20   ;;  %s2033_s19 = sphi %s2072_s19, %s2510_s19   ;;  %s2029_s18 = sphi %s2070_s18, %s2509_s18  }
   0x3   : > { %p29_p1 = scmp.ge.s32.totalorder %s27_s1, 2  ;;  %p241_p2 = scmp.lt.s32.totalorder %s2037_s20, 3 }
   0x5   : > { %s2512_s1 = smov (%p29_p1, %s27_s1), 0  ;;  %p242_p3 = pnand %p1521_p0, %p241_p2 }
   0x6   : > { %p293_p4 = scmp.lt.s32.totalorder (!%p242_p3), %s2029_s18, 1 }
   0x7   : > { %245 = sbr.rel (%p242_p3) target bundleno = 255 (0xff), region = 40 }
   0xc   : > { %v1940_v0 = vld [vmem:[%s2504_s3 + $0x38] sm:$0xff]  ;;  %vm354_vm0 = vcmask 1041408   ;;  %v2039_v4 = vmov 0   ;;  %v1939_v6 = vld [vmem:[%s2504_s3 + $0x30] sm:$0xff]  ;;  %vm358_vm1 = vcmask 1043458   ;;  %s2514_s18 = smov (!%p293_p4, %s2029_s18), 1 }
   0xd   : > { %v1932_v1 = vld [vmem:[%s2503_s2 + $0x78] sm:$0xff]  ;;  %v350_v5 = vrot.slane %v2039_v4, 2  ;;  %556 = vmatpush.bf16.msra.mxu0 %v1940_v0  ;;  %v1931_v7 = vld [vmem:[%s2503_s2 + $0x70] sm:$0xff]  ;;  %v1938_v13 = vld [vmem:[%s2504_s3 + $0x28] sm:$0xff]  ;;  %s1914_s23 = sshll.u32 %s2514_s18, 6  ;;  %s1916_s14 = sshll.u32 %s2514_s18, 5 }
   0xe   : > { %v1948_v2 = vld [vmem:[%s2503_s2 + $0xb8] sm:$0xff]  ;;  %695 = vmatpush.bf16.msra.mxu2 %v1932_v1  ;;  %v1947_v8 = vld [vmem:[%s2503_s2 + $0xb0] sm:$0xff]  ;;  %v1930_v14 = vld [vmem:[%s2503_s2 + $0x68] sm:$0xff]  ;;  %s2146_s9 = scalar_lea.vmem %s2501_s0, %s1914_s23  ;;  %vm380_vm2 = vsmask.f32 1280  ;;  %s2459_s17 = scalar_lea.vmem %s2506_s5, %s1916_s14 }
   0xf   : > { %v1924_v3 = vld [vmem:[%s2503_s2 + $0x38] sm:$0xff]  ;;  %945 = vmatpush.bf16.msra.mxu3 %v1948_v2  ;;  %v1923_v9 = vld [vmem:[%s2503_s2 + $0x30] sm:$0xff]  ;;  %v357_v10 = vsel %vm354_vm0, 0, %v350_v5  ;;  %v359_v15 = vsel %vm358_vm1, 0, %v350_v5  ;;  %v1946_v17 = vld [vmem:[%s2503_s2 + $0xa8] sm:$0xff]  ;;  %1372 = vst [vmem:[%s2459_s17] sm:$0x1] %v2039_v4 }
  0x10   : > { %681 = vmatpush.bf16.msra.mxu1 %v1924_v3  ;;  %v443_v11 = vrot.slane %v357_v10, 2  ;;  %v387_v12 = vshrl.u32 %v357_v10, 16  ;;  %v390_v16 = vshll.u32 %v357_v10, 16  ;;  %v1922_v18 = vld [vmem:[%s2503_s2 + $0x28] sm:$0xff]  ;;  %v361_v19 = vrot.slane %v359_v15, 2  ;;  %v1937_v22 = vld [vmem:[%s2504_s3 + $0x20] sm:$0xff] }
  0x11   : > { %557 = vmatpush.bf16.msra.mxu0 %v1939_v6  ;;  %v1929_v23 = vld [vmem:[%s2503_s2 + $0x60] sm:$0xff]  ;;  %vm381_vm3 = vsmask.f32 3336  ;;  %v1936_v28 = vld [vmem:[%s2504_s3 + $0x18] sm:$0xff]  ;;  %vm383_vm4 = vsmask.f32 5392 }
  0x12   : > { %696 = vmatpush.bf16.msra.mxu2 %v1931_v7  ;;  %496 = vst [vmem:[#allocation1] ss:$4 sm:$0xff] %v443_v11  ;;  %v389_v20 = vrot.slane %v387_v12, 6  ;;  %v392_v21 = vrot.slane %v390_v16, 7  ;;  %v1945_v24 = vld [vmem:[%s2503_s2 + $0xa0] sm:$0xff]  ;;  %v396_v27 = vshll.u32 %v361_v19, 16  ;;  %vm382_vm6 = vmor %vm380_vm2, %vm381_vm3 }
  0x13   : > { %946 = vmatpush.bf16.msra.mxu3 %v1947_v8  ;;  %v1921_v25 = vld [vmem:[%s2503_s2 + $0x20] sm:$0xff]  ;;  %v1928_v29 = vld [vmem:[%s2503_s2 + $0x58] sm:$0xff]  ;;  %v333_v32 = vld [vmem:[%s2146_s9 + $0x8] sm:$0xff]  ;;  %vm385_vm5 = vsmask.f32 7448  ;;  %1392 = vst [vmem:[%s2459_s17] sm:$0x8] %v2039_v4 }
  0x14   : > { %682 = vmatpush.bf16.msra.mxu1 %v1923_v9  ;;  %v393_v26 = vor.u32 %v392_v21, %v389_v20  ;;  %v1944_v30 = vld [vmem:[%s2503_s2 + $0x98] sm:$0xff]  ;;  %v337_v34 = vld [vmem:[%s2146_s9 + $0x28] sm:$0xff]  ;;  %v351_v35 = vrot.slane %v333_v32, 2  ;;  %vm384_vm7 = vmor %vm382_vm6, %vm383_vm4  ;;  %v398_v39 = vrot.slane %v396_v27, 7  ;;  %1373 = vst [vmem:[%s2459_s17 + $0x8] sm:$0x1] %v2039_v4 }
  0x15   : > { %558 = vmatpush.bf16.msra.mxu0 %v1938_v13  ;;  %v1920_v31 = vld [vmem:[%s2503_s2 + $0x18] sm:$0xff]  ;;  %v353_v37 = vrot.slane %v337_v34, 2  ;;  %v2166_v40 = vld [vmem:[%s2146_s9] sm:$0xff]  ;;  %v2169_v41 = vld [vmem:[%s2146_s9 + $0x10] sm:$0xff]  ;;  %1374 = vst [vmem:[%s2459_s17 + $0x10] sm:$0x1] %v2039_v4 }
  0x16   : > { %697 = vmatpush.bf16.msra.mxu2 %v1930_v14  ;;  %v335_v33 = vld [vmem:[%s2146_s9 + $0x18] sm:$0xff]  ;;  %v394_v38 = vrot.slane %v393_v26, 2  ;;  %v1935_v42 = vld [vmem:[%s2504_s3 + $0x10] sm:$0xff]  ;;  %v2178_v44 = vsel %vm354_vm0, %v333_v32, %v351_v35  ;;  %v365_v45 = vsel %vm358_vm1, %v333_v32, %v351_v35  ;;  %vm2182_vm8 = vmor %vm384_vm7, %vm385_vm5  ;;  %v713_v47 = vrot.slane %v2166_v40, 2  ;;  %1375 = vst [vmem:[%s2459_s17 + $0x18] sm:$0x1] %v2039_v4 }
  0x17   : > { %947 = vmatpush.bf16.msra.mxu3 %v1946_v17  ;;  %v352_v36 = vrot.slane %v335_v33, 2  ;;  %v1927_v43 = vld [vmem:[%s2503_s2 + $0x50] sm:$0xff]  ;;  %v714_v48 = vrot.slane %v2169_v41, 2  ;;  %v2198_v52 = vsel %vm354_vm0, %v337_v34, %v353_v37  ;;  %v444_v53 = vrot.slane %v2178_v44, 2  ;;  %v1934_v55 = vld [vmem:[%s2504_s3 + $0x8] sm:$0xff]  ;;  %v336_v3 = vld [vmem:[%s2146_s9 + $0x20] sm:$0xff] }
  0x18   : > { %683 = vmatpush.bf16.msra.mxu1 %v1922_v18  ;;  %v1943_v49 = vld [vmem:[%s2503_s2 + $0x90] sm:$0xff]  ;;  %v367_v54 = vrot.slane %v365_v45, 2  ;;  %v1926_v56 = vld [vmem:[%s2503_s2 + $0x48] sm:$0xff]  ;;  %v446_v58 = vrot.slane %v2198_v52, 2  ;;  %v377_v60 = vsel %vm358_vm1, %v337_v34, %v353_v37  ;;  %v2221_v1 = vsel %vm2182_vm8, %v394_v38, %v398_v39  ;;  %v1972_v34 = vld [vmem:[%s2503_s2 + $0x138] sm:$0xff] }
  0x19   : > { %559 = vmatpush.bf16.msra.mxu0 %v1937_v22  ;;  %v1919_v50 = vld [vmem:[%s2503_s2 + $0x10] sm:$0xff]  ;;  %v2195_v51 = vsel %vm354_vm0, %v335_v33, %v352_v36  ;;  %v371_v59 = vsel %vm358_vm1, %v335_v33, %v352_v36  ;;  %v1942_v61 = vld [vmem:[%s2503_s2 + $0x88] sm:$0xff]  ;;  %499 = vst [vmem:[#allocation1 + $0x1] ss:$4 sm:$0xff] %v444_v53  ;;  %v379_v0 = vrot.slane %v377_v60, 2  ;;  %v400_v2 = vshrl.u32 %v2178_v44, 16 }
  0x1a   : > { %698 = vmatpush.bf16.msra.mxu2 %v1929_v23  ;;  %v445_v57 = vrot.slane %v2195_v51, 2  ;;  %v1918_v62 = vld [vmem:[%s2503_s2 + $0x8] sm:$0xff]  ;;  %v373_v63 = vrot.slane %v371_v59, 2  ;;  %v2226_v5 = vld [vmem:[%s2146_s9 + $0x30] sm:$0xff]  ;;  %v403_v6 = vshll.u32 %v2178_v44, 16  ;;  %v409_v7 = vshll.u32 %v367_v54, 16 }
  0x1b   : > { %948 = vmatpush.bf16.msra.mxu3 %v1945_v24  ;;  %v413_v8 = vshrl.u32 %v2195_v51, 16  ;;  %v416_v9 = vshll.u32 %v2195_v51, 16  ;;  %505 = vst [vmem:[#allocation1 + $0x3] ss:$4 sm:$0xff] %v446_v58  ;;  %v402_v10 = vrot.slane %v400_v2, 6  ;;  %v426_v12 = vshrl.u32 %v2198_v52, 16 }
  0x1c   : > { %684 = vmatpush.bf16.msra.mxu1 %v1921_v25  ;;  %502 = vst [vmem:[#allocation1 + $0x2] ss:$4 sm:$0xff] %v445_v57  ;;  %v422_v11 = vshll.u32 %v373_v63, 16  ;;  %v429_v13 = vshll.u32 %v2198_v52, 16  ;;  %v405_v14 = vrot.slane %v403_v6, 7  ;;  %v411_v15 = vrot.slane %v409_v7, 7 }
  0x1d   : > { %560 = vmatpush.bf16.msra.mxu0 %v1936_v28  ;;  %v415_v16 = vrot.slane %v413_v8, 6  ;;  %v418_v17 = vrot.slane %v416_v9, 7  ;;  %v428_v19 = vrot.slane %v426_v12, 6  ;;  %v435_v21 = vshll.u32 %v379_v0, 16  ;;  %v1933_v22 = vld [vmem:[%s2504_s3] sm:$0xff]  ;;  %v1980_v35 = vld [vmem:[%s2503_s2 + $0x178] sm:$0xff] }
  0x1e   : > { %699 = vmatpush.bf16.msra.mxu2 %v1928_v29  ;;  %v424_v18 = vrot.slane %v422_v11, 7  ;;  %v431_v20 = vrot.slane %v429_v13, 7  ;;  %v1925_v23 = vld [vmem:[%s2503_s2 + $0x40] sm:$0xff]  ;;  %v406_v24 = vor.u32 %v405_v14, %v402_v10  ;;  %v715_v26 = vrot.slane %v336_v3, 2  ;;  %v1956_v29 = vld [vmem:[%s2503_s2 + $0xf8] sm:$0xff]  ;;  %v1971_v59 = vld [vmem:[%s2503_s2 + $0x130] sm:$0xff] }
  0x1f   : > { %949 = vmatpush.bf16.msra.mxu3 %v1944_v30  ;;  %v419_v25 = vor.u32 %v418_v17, %v415_v16  ;;  %v716_v27 = vrot.slane %v2226_v5, 2  ;;  %v1941_v28 = vld [vmem:[%s2503_s2 + $0x80] sm:$0xff]  ;;  %v2254_v32 = vsel %vm354_vm0, %v2166_v40, %v713_v47  ;;  %v720_v33 = vsel %vm358_vm1, %v2166_v40, %v713_v47  ;;  %v1979_v60 = vld [vmem:[%s2503_s2 + $0x170] sm:$0xff]  ;;  %v1954_v13 = vld [vmem:[%s2503_s2 + $0xe8] sm:$0xff]  ;;  %1393 = vst [vmem:[%s2459_s17 + $0x4] sm:$0xf] %v2039_v4 }
  0x20   : > { %685 = vmatpush.bf16.msra.mxu1 %v1920_v31  ;;  %v432_v30 = vor.u32 %v431_v20, %v428_v19  ;;  %v437_v31 = vrot.slane %v435_v21, 7  ;;  %v407_v36 = vrot.slane %v406_v24, 2  ;;  %v722_v38 = vrot.slane %v720_v33, 2  ;;  %v1917_v40 = vld [vmem:[%s2503_s2] sm:$0xff]  ;;  %v1963_v9 = vld [vmem:[%s2504_s3 + $0x70] sm:$0xff]  ;;  %v1978_v19 = vld [vmem:[%s2503_s2 + $0x168] sm:$0xff] }
  0x21   : > { %561 = vmatpush.bf16.msra.mxu0 %v1935_v42  ;;  %v420_v37 = vrot.slane %v419_v25, 2  ;;  %v2270_v39 = vsel %vm354_vm0, %v2169_v41, %v714_v48  ;;  %v2280_v45 = vsel %vm354_vm0, %v336_v3, %v715_v26  ;;  %v732_v47 = vsel %vm358_vm1, %v336_v3, %v715_v26  ;;  %v1984_v46 = vld [vmem:[%s2504_s3 + $0x98] sm:$0xff]  ;;  %v1981_v44 = vld [vmem:[%s2504_s3 + $0x80] sm:$0xff]  ;;  %1394 = vst [vmem:[%s2459_s17 + $0x8] sm:$0x8] %v2039_v4 }
  0x22   : > { %700 = vmatpush.bf16.msra.mxu2 %v1927_v43  ;;  %v433_v42 = vrot.slane %v432_v30, 2  ;;  %v726_v43 = vsel %vm358_vm1, %v2169_v41, %v714_v48  ;;  %v2288_v54 = vsel %vm2182_vm8, %v407_v36, %v411_v15  ;;  %v734_v48 = vrot.slane %v732_v47, 2  ;;  %1395 = vst [vmem:[%s2459_s17 + $0xc] sm:$0xf] %v2039_v4 }
  0x23   : > { %950 = vmatpush.bf16.msra.mxu3 %v1943_v49  ;;  %v1964_v49 = vld [vmem:[%s2504_s3 + $0x78] sm:$0xff]  ;;  %v728_v41 = vrot.slane %v726_v43, 2  ;;  %v738_v63 = vsel %vm358_vm1, %v2226_v5, %v716_v27  ;;  %v741_v2 = vshrl.u32 %v2254_v32, 16  ;;  %v744_v3 = vshll.u32 %v2254_v32, 16  ;;  %1396 = vst [vmem:[%s2459_s17 + $0x10] sm:$0x8] %v2039_v4 }
  0x24   : > { %686 = vmatpush.bf16.msra.mxu1 %v1919_v50  ;;  %v506_v50 = vld.sshfl [vmem:[#allocation1] sm:$0xff pattern:$0x73625140]  ;;  %v740_v0 = vrot.slane %v738_v63, 2  ;;  %v750_v6 = vshll.u32 %v722_v38, 16  ;;  %v757_v7 = vshll.u32 %v2270_v39, 16 }
  0x25   : > { %562 = vmatpush.bf16.msra.mxu0 %v1934_v55  ;;  %v2292_v55 = vsel %vm2182_vm8, %v420_v37, %v424_v18  ;;  %571 = vst [vmem:[#allocation1] ss:$4 sm:$0xff] %v2221_v1  ;;  %v754_v1 = vshrl.u32 %v2270_v39, 16  ;;  %v763_v8 = vshll.u32 %v728_v41, 16  ;;  %v743_v10 = vrot.slane %v741_v2, 6  ;;  %v1970_v18 = vld [vmem:[%s2503_s2 + $0x128] sm:$0xff] }
  0x26   : > { %701 = vmatpush.bf16.msra.mxu2 %v1926_v56  ;;  %v1955_v56 = vld [vmem:[%s2503_s2 + $0xf0] sm:$0xff]  ;;  %574 = vst [vmem:[#allocation1 + $0x1] ss:$4 sm:$0xff] %v2288_v54  ;;  %v746_v11 = vrot.slane %v744_v3, 7  ;;  %v770_v12 = vshll.u32 %v2280_v45, 16  ;;  %v752_v14 = vrot.slane %v750_v6, 7 }
  0x27   : > { %951 = vmatpush.bf16.msra.mxu3 %v1942_v61  ;;  %v2305_v61 = vsel %vm2182_vm8, %v433_v42, %v437_v31  ;;  %577 = vst [vmem:[#allocation1 + $0x2] ss:$4 sm:$0xff] %v2292_v55  ;;  %v756_v15 = vrot.slane %v754_v1, 6  ;;  %v759_v16 = vrot.slane %v757_v7, 7  ;;  %v765_v25 = vrot.slane %v763_v8, 7  ;;  %v339_v37 = vld [vmem:[%s2146_s9 + $0x38] sm:$0xff] }
  0x28   : > { %687 = vmatpush.bf16.msra.mxu1 %v1918_v62  ;;  %v2310_v62 = vsel %vm354_vm0, %v2226_v5, %v716_v27  ;;  %v767_v5 = vshrl.u32 %v2280_v45, 16  ;;  %580 = vst [vmem:[#allocation1 + $0x3] ss:$4 sm:$0xff] %v2305_v61  ;;  %v747_v20 = vor.u32 %v746_v11, %v743_v10  ;;  %v772_v21 = vrot.slane %v770_v12, 7  ;;  %v1969_v38 = vld [vmem:[%s2503_s2 + $0x120] sm:$0xff]  ;;  %v1968_v2 = vld [vmem:[%s2503_s2 + $0x118] sm:$0xff] }
  0x29   : > { %563 = vmatpush.bf16.msra.mxu0 %v1933_v22  ;;  %v776_v22 = vshll.u32 %v734_v48, 16  ;;  %v760_v24 = vor.u32 %v759_v16, %v756_v15  ;;  %v783_v26 = vshll.u32 %v2310_v62, 16  ;;  %v789_v27 = vshll.u32 %v740_v0, 16  ;;  %v1952_v0 = vld [vmem:[%s2503_s2 + $0xd8] sm:$0xff]  ;;  %v1951_v8 = vld [vmem:[%s2503_s2 + $0xd0] sm:$0xff]  ;;  %v1950_v15 = vld [vmem:[%s2503_s2 + $0xc8] sm:$0xff] }
  0x2a   : > { %702 = vmatpush.bf16.msra.mxu2 %v1925_v23  ;;  %v769_v17 = vrot.slane %v767_v5, 6  ;;  %v780_v23 = vshrl.u32 %v2310_v62, 16  ;;  %v1976_v3 = vld [vmem:[%s2503_s2 + $0x158] sm:$0xff]  ;;  %v1967_v5 = vld [vmem:[%s2503_s2 + $0x110] sm:$0xff]  ;;  %v798_v16 = vrot.slane %v2270_v39, 2  ;;  %v1958_v39 = vld [vmem:[%s2504_s3 + $0x48] sm:$0xff] }
  0x2b   : > { %952 = vmatpush.bf16.msra.mxu3 %v1941_v28  ;;  %v1962_v28 = vld [vmem:[%s2504_s3 + $0x68] sm:$0xff]  ;;  %v778_v31 = vrot.slane %v776_v22, 7  ;;  %v785_v36 = vrot.slane %v783_v26, 7  ;;  %v791_v47 = vrot.slane %v789_v27, 7  ;;  %v1960_v7 = vld [vmem:[%s2504_s3 + $0x58] sm:$0xff] }
  0x2c   : > { %688 = vmatpush.bf16.msra.mxu1 %v1917_v40  ;;  %564 = vmatmul.bf16.vlgmr.msra.gmra.mxu0 %v506_v50  ;;  %v773_v30 = vor.u32 %v772_v21, %v769_v17  ;;  %v782_v33 = vrot.slane %v780_v23, 6  ;;  %v1977_v40 = vld [vmem:[%s2503_s2 + $0x160] sm:$0xff]  ;;  %v799_v17 = vrot.slane %v2280_v45, 2  ;;  %v1988_v26 = vld [vmem:[%s2504_s3 + $0xb8] sm:$0xff]  ;;  %1397 = vst [vmem:[%s2459_s17 + $0x14] sm:$0xf] %v2039_v4 }
  0x2d   : > { %959 = vmatpush.bf16.msrb.mxu0 %v1956_v29  ;;  %v748_v29 = vrot.slane %v747_v20, 2  ;;  %v1949_v45 = vld [vmem:[%s2503_s2 + $0xc0] sm:$0xff]  ;;  %1398 = vst [vmem:[%s2459_s17 + $0x18] sm:$0x8] %v2039_v4 }
  0x2e   : > { %1233 = vmatpush.bf16.msrb.mxu2 %v1972_v34  ;;  %v1953_v34 = vld [vmem:[%s2503_s2 + $0xe0] sm:$0xff]  ;;  %v774_v43 = vrot.slane %v773_v30, 2  ;;  %v786_v48 = vor.u32 %v785_v36, %v782_v33  ;;  %v1987_v33 = vld [vmem:[%s2504_s3 + $0xb0] sm:$0xff]  ;;  %v1986_v36 = vld [vmem:[%s2504_s3 + $0xa8] sm:$0xff]  ;;  %1399 = vst [vmem:[%s2459_s17 + $0x1c] sm:$0xf] %v2039_v4 }
  0x2f   : > { %1247 = vmatpush.bf16.msrb.mxu3 %v1980_v35  ;;  %v761_v35 = vrot.slane %v760_v24, 2  ;;  %v753_v42 = vsel %vm2182_vm8, %v748_v29, %v752_v14  ;;  %v582_v50 = vld.sshfl [vmem:[#allocation1 + $0x8] sm:$0xff pattern:$0x73625140]  ;;  %v797_v14 = vrot.slane %v2254_v32, 2  ;;  %v800_v32 = vrot.slane %v2310_v62, 2 }
  0x30   : > { %1053 = vmatpush.bf16.msrb.mxu1 %v1964_v49  ;;  %v581_v49 = vld.sshfl [vmem:[#allocation1] sm:$0xff pattern:$0x73625140]  ;;  %703 = vmatmul.bf16.vlgmr.msra.gmra.mxu2 %v582_v50  ;;  %v787_v63 = vrot.slane %v786_v48, 2 }
  0x31   : > { %960 = vmatpush.bf16.msrb.mxu0 %v1955_v56  ;;  %v766_v41 = vsel %vm2182_vm8, %v761_v35, %v765_v25  ;;  %v779_v56 = vsel %vm2182_vm8, %v774_v43, %v778_v31  ;;  %835 = vst [vmem:[#allocation1] ss:$4 sm:$0xff] %v753_v42  ;;  %689 = vmatmul.bf16.vlgmr.msra.gmra.mxu1 %v581_v49  ;;  %v1965_v62 = vld [vmem:[%s2503_s2 + $0x100] sm:$0xff] }
  0x32   : > { %1234 = vmatpush.bf16.msrb.mxu2 %v1971_v59  ;;  %v1961_v59 = vld [vmem:[%s2504_s3 + $0x60] sm:$0xff]  ;;  %838 = vst [vmem:[#allocation1 + $0x1] ss:$4 sm:$0xff] %v766_v41  ;;  %v792_v6 = vsel %vm2182_vm8, %v787_v63, %v791_v47 }
  0x33   : > { %1248 = vmatpush.bf16.msrb.mxu3 %v1979_v60  ;;  %v1070_v60 = vrot.slane %v339_v37, 2  ;;  %841 = vst [vmem:[#allocation1 + $0x2] ss:$4 sm:$0xff] %v779_v56  ;;  %v1973_v25 = vld [vmem:[%s2503_s2 + $0x140] sm:$0xff] }
  0x34   : > { %1054 = vmatpush.bf16.msrb.mxu1 %v1963_v9  ;;  %844 = vst [vmem:[#allocation1 + $0x3] ss:$4 sm:$0xff] %v792_v6  ;;  %v1975_v9 = vld [vmem:[%s2503_s2 + $0x150] sm:$0xff]  ;;  %v1957_v29 = vld [vmem:[%s2504_s3 + $0x40] sm:$0xff] }
  0x35   : > { %961 = vmatpush.bf16.msrb.mxu0 %v1954_v13  ;;  %v2371_v1 = vsel %vm354_vm0, %v339_v37, %v1070_v60  ;;  %v1074_v12 = vsel %vm358_vm1, %v339_v37, %v1070_v60  ;;  %v1959_v13 = vld [vmem:[%s2504_s3 + $0x50] sm:$0xff]  ;;  %v1985_v37 = vld [vmem:[%s2504_s3 + $0xa0] sm:$0xff] }
  0x36   : > { %1235 = vmatpush.bf16.msrb.mxu2 %v1970_v18  ;;  %v1077_v10 = vshrl.u32 %v2371_v1, 16  ;;  %v1080_v11 = vshll.u32 %v2371_v1, 16  ;;  %v1966_v18 = vld [vmem:[%s2503_s2 + $0x108] sm:$0xff]  ;;  %v1076_v20 = vrot.slane %v1074_v12, 2 }
  0x37   : > { %1249 = vmatpush.bf16.msrb.mxu3 %v1978_v19  ;;  %v1974_v19 = vld [vmem:[%s2503_s2 + $0x148] sm:$0xff] }
  0x38   : > { %1055 = vmatpush.bf16.msrb.mxu1 %v1962_v28  ;;  %v1079_v21 = vrot.slane %v1077_v10, 6  ;;  %v1082_v22 = vrot.slane %v1080_v11, 7  ;;  %v1086_v28 = vshll.u32 %v1076_v20, 16 }
  0x39   : > { %962 = vmatpush.bf16.msrb.mxu0 %v1953_v34 }
  0x3a   : > { %1236 = vmatpush.bf16.msrb.mxu2 %v1969_v38  ;;  %v1083_v27 = vor.u32 %v1082_v22, %v1079_v21  ;;  %v1088_v31 = vrot.slane %v1086_v28, 7 }
  0x3b   : > { %1250 = vmatpush.bf16.msrb.mxu3 %v1977_v40  ;;  %v845_v23 = vld.sshfl [vmem:[#allocation1] sm:$0xff pattern:$0x73625140]  ;;  %v846_v24 = vld.sshfl [vmem:[#allocation1 + $0x8] sm:$0xff pattern:$0x73625140] }
  0x3c   : > { %1056 = vmatpush.bf16.msrb.mxu1 %v1961_v59  ;;  %953 = vmatmul.bf16.vlgmr.msra.gmra.mxu3 %v845_v23  ;;  %993 = vst [vmem:[#allocation1] ss:$4 sm:$0xff] %v797_v14  ;;  %v1084_v30 = vrot.slane %v1083_v27, 2 }
  0x3d   : > { %963 = vmatpush.bf16.msrb.mxu0 %v1952_v0  ;;  %996 = vst [vmem:[#allocation1 + $0x1] ss:$4 sm:$0xff] %v798_v16 }
  0x3e   : > { %1237 = vmatpush.bf16.msrb.mxu2 %v1968_v2  ;;  %999 = vst [vmem:[#allocation1 + $0x2] ss:$4 sm:$0xff] %v799_v17  ;;  %v1089_v35 = vsel %vm2182_vm8, %v1084_v30, %v1088_v31 }
  0x3f   : > { %1251 = vmatpush.bf16.msrb.mxu3 %v1976_v3  ;;  %1002 = vst [vmem:[#allocation1 + $0x3] ss:$4 sm:$0xff] %v800_v32 }
  0x40   : > { %1057 = vmatpush.bf16.msrb.mxu1 %v1960_v7 }
  0x41   : > { %964 = vmatpush.bf16.msrb.mxu0 %v1951_v8 }
  0x42   : > { %1238 = vmatpush.bf16.msrb.mxu2 %v1967_v5 }
  0x43   : > { %1252 = vmatpush.bf16.msrb.mxu3 %v1975_v9  ;;  %v2014_v9 = vld [vmem:[%s2505_s4] ss:$0 sm:$0xff] }
  0x44   : > { %1058 = vmatpush.bf16.msrb.mxu1 %v1959_v13 }
  0x45   : > { %965 = vmatpush.bf16.msrb.mxu0 %v1950_v15 }
  0x46   : > { %1239 = vmatpush.bf16.msrb.mxu2 %v1966_v18  ;;  %v1003_v34 = vld.sshfl [vmem:[#allocation1] sm:$0xff pattern:$0x73625140] }
  0x47   : > { %1253 = vmatpush.bf16.msrb.mxu3 %v1974_v19  ;;  %1125 = vst [vmem:[#allocation1] ss:$4 sm:$0xff] %v2288_v54  ;;  %v1091_v54 = vrot.slane %v2371_v1, 2 }
  0x48   : > { %1059 = vmatpush.bf16.msrb.mxu1 %v1958_v39  ;;  %1127 = vst [vmem:[#allocation1 + $0x1] ss:$4 sm:$0xff] %v2292_v55  ;;  %v1983_v55 = vld [vmem:[%s2504_s3 + $0x90] sm:$0xff] }
  0x49   : > { %966 = vmatpush.bf16.msrb.mxu0 %v1949_v45  ;;  %1129 = vst [vmem:[#allocation1 + $0x2] ss:$4 sm:$0xff] %v2305_v61  ;;  %v1982_v61 = vld [vmem:[%s2504_s3 + $0x88] sm:$0xff] }
  0x4a   : > { %1240 = vmatpush.bf16.msrb.mxu2 %v1965_v62  ;;  %1132 = vst [vmem:[#allocation1 + $0x3] ss:$4 sm:$0xff] %v1089_v35 }
  0x4b   : > { %1254 = vmatpush.bf16.msrb.mxu3 %v1973_v25 }
  0x4c   : > { %967 = vmatmul.bf16.vlgmr.msrb.gmra.mxu0 %v846_v24  ;;  %1060 = vmatpush.bf16.msrb.mxu1 %v1957_v29 }
  0x4d   : > { %1338 = vmatpush.bf16.msra.mxu0 %v1988_v26 }
  0x4f   : > { %1061 = vmatmul.bf16.vlgmr.msrb.gmra.mxu1 %v1003_v34 }
  0x51   : > { %1339 = vmatpush.bf16.msra.mxu0 %v1987_v33  ;;  %v1133_v38 = vld.sshfl [vmem:[#allocation1] sm:$0xff pattern:$0x73625140]  ;;  %v1134_v40 = vld.sshfl [vmem:[#allocation1 + $0x8] sm:$0xff pattern:$0x73625140] }
  0x52   : > { %1241 = vmatmul.bf16.vlgmr.msrb.gmra.mxu2 %v1133_v38  ;;  %1255 = vmatmul.bf16.vlgmr.msrb.gmra.mxu3 %v1134_v40  ;;  %1280 = vst [vmem:[#allocation1] ss:$4 sm:$0xff] %v444_v53 }
  0x53   : > { %1282 = vst [vmem:[#allocation1 + $0x1] ss:$4 sm:$0xff] %v445_v57 }
  0x54   : > { %1284 = vst [vmem:[#allocation1 + $0x2] ss:$4 sm:$0xff] %v446_v58 }
  0x55   : > { %1340 = vmatpush.bf16.msra.mxu0 %v1986_v36  ;;  %1287 = vst [vmem:[#allocation1 + $0x3] ss:$4 sm:$0xff] %v1091_v54 }
  0x59   : > { %1341 = vmatpush.bf16.msra.mxu0 %v1985_v37 }
  0x5c   : > { %v1288_v51 = vld.sshfl [vmem:[#allocation1] sm:$0xff pattern:$0x73625140] }
  0x5d   : > { %1342 = vmatpush.bf16.msra.mxu0 %v1984_v46 }
  0x61   : > { %1343 = vmatpush.bf16.msra.mxu0 %v1983_v55 }
  0x65   : > { %1344 = vmatpush.bf16.msra.mxu0 %v1982_v61 }
  0x69   : > { %1345 = vmatpush.bf16.msra.mxu0 %v1981_v44 }
  0x6c   : > { %1346 = vmatmul.bf16.vlgmr.msra.gmra.mxu0 %v1288_v51 }
  0xa9   : > { %v565_v52 = vpop.f32.mrf.mxu0 }
  0xae   : > { %v690_v58 = vpop.f32.mrf.mxu1 }
  0xaf   : > { %v691_v41 = vadd.f32 %v690_v58, %v565_v52 }
  0xb1   : > { %v567_v42 = vpop.f32.mrf.mxu0 }
  0xb3   : > { %v704_v53 = vpop.f32.mrf.mxu2 }
  0xb4   : > { %v705_v48 = vadd.f32 %v704_v53, %v691_v41 }
  0xb6   : > { %v692_v49 = vpop.f32.mrf.mxu1 }
  0xb7   : > { %v693_v3 = vadd.f32 %v692_v49, %v567_v42 }
  0xbb   : > { %v706_v43 = vpop.f32.mrf.mxu2 }
  0xbc   : > { %v707_v7 = vadd.f32 %v706_v43, %v693_v3 }
  0xbf   : > { %v954_v57 = vpop.f32.mrf.mxu3 }
  0xc7   : > { %v956_v47 = vpop.f32.mrf.mxu3 }
  0xc9   : > { %v968_v50 = vpop.f32.mrf.mxu0 }
  0xca   : > { %v969_v56 = vadd.f32 %v968_v50, %v954_v57 }
  0xcc   : > { %v1062_v63 = vpop.f32.mrf.mxu1  ;;  %v973_v2 = vadd.f32 %v969_v56, %v705_v48 }
  0xce   : > { %v1067_v4 = vadd.f32 %v1062_v63, %v973_v2 }
  0xd1   : > { %v970_v0 = vpop.f32.mrf.mxu0 }
  0xd2   : > { %v971_v1 = vadd.f32 %v970_v0, %v956_v47 }
  0xd4   : > { %v974_v12 = vadd.f32 %v971_v1, %v707_v7  ;;  %v1064_v14 = vpop.f32.mrf.mxu1 }
  0xd5   : > { %v1242_v59 = vpop.f32.mrf.mxu2  ;;  %v1256_v60 = vpop.f32.mrf.mxu3 }
  0xd6   : > { %v1257_v6 = vadd.f32 %v1256_v60, %v1242_v59  ;;  %v1068_v17 = vadd.f32 %v1064_v14, %v974_v12 }
  0xd8   : > { %v1261_v5 = vadd.f32 %v1257_v6, %v1067_v4 }
  0xdd   : > { %v1244_v8 = vpop.f32.mrf.mxu2  ;;  %v1258_v10 = vpop.f32.mrf.mxu3 }
  0xde   : > { %v1259_v15 = vadd.f32 %v1258_v10, %v1244_v8 }
  0xe0   : > { %v1262_v20 = vadd.f32 %v1259_v15, %v1068_v17 }
  0xe9   : > { %v1347_v11 = vpop.f32.mrf.mxu0 }
  0xea   : > { %v1352_v13 = vadd.f32 %v1347_v11, %v1261_v5 }
  0xec   : > { %v1358_v16 = vadd.f32 %v2014_v9, %v1352_v13 }
  0xee   : > { %v1360_v18 = vmax.f32 %v1358_v16, 0.0 }
  0xf0   : > { %v1364_v19 = vrot.slane %v1360_v18, 4  ;;  %v1368_v32 = vpack.c.bf16 %v1360_v18, %v1360_v18 }
  0xf1   : > { %v1349_v21 = vpop.f32.mrf.mxu0 }
  0xf2   : > { %v1369_v22 = vpack.c.bf16 %v1364_v19, %v1364_v19  ;;  %v1380_v23 = vrot.slane %v1368_v32, 7  ;;  %v1353_v24 = vadd.f32 %v1349_v21, %v1262_v20 }
  0xf4   : > { %v1381_v39 = vrot.slane %v1369_v22, 7  ;;  %1388 = vst [vmem:[%s2459_s17] sm:$0x6] %v1380_v23  ;;  %v1359_v45 = vadd.f32 %v2014_v9, %v1353_v24 }
  0xf6   : > { %1389 = vst [vmem:[%s2459_s17 + $0x8] sm:$0x6] %v1381_v39  ;;  %v1361_v62 = vmax.f32 %v1359_v45, 0.0 }
  0xf8   : > { %v1365_v25 = vrot.slane %v1361_v62, 4  ;;  %v1370_v26 = vpack.c.bf16 %v1361_v62, %v1361_v62 }
  0xfa   : > { %v1371_v27 = vpack.c.bf16 %v1365_v25, %v1365_v25  ;;  %v1382_v28 = vrot.slane %v1370_v26, 7 }
  0xfc   : > { %v1383_v29 = vrot.slane %v1371_v27, 7  ;;  %1390 = vst [vmem:[%s2459_s17 + $0x10] sm:$0x6] %v1382_v28 }
  0xfe   : > { %1391 = vst [vmem:[%s2459_s17 + $0x18] sm:$0x6] %v1383_v29 }
  0xff PF: > { %s15_s20 = sadd.s32 1, %s2037_s20   ;;  %s2509_s18 = smov %s2033_s19 }
 0x100   : > { %p12_p5 = scmp.ge.s32.totalorder %s15_s20, 4   ;;  %s2510_s19 = smov %s2512_s1 }
 0x102   :  { %14 = sbr.rel (!%p12_p5) target bundleno = 2 (0x2), region = 95 }

// kernel: forward.7
= control target key start
LH: loop header
LB: loop body
LE: loop exit
PB: predicated region body
PF: predicated region fallthrough
CT: control target
= control target key end

     0   :  { %s1896_s18 = smov 0   ;;  %s1898_s19 = smov 0   ;;  %s2228_s0 = inlined_call_operand.vmem [shape: bf16[2,4,8,256], index: 0, kind: input, shape index: {}, may-alias: {0,1}]   ;;  %s2229_s1 = inlined_call_operand.vmem [shape: bf16[2,4,8,256], index: 1, kind: input, shape index: {}, may-alias: {0,1}]   ;;  %s2230_s2 = inlined_call_operand.vmem [shape: bf16[3,256,128], index: 2, kind: input, shape index: {}]   ;;  %s2231_s3 = inlined_call_operand.vmem [shape: bf16[3,128,128], index: 3, kind: input, shape index: {}]   ;;  %s2232_s4 = inlined_call_operand.vmem [shape: f32[1,128], index: 4, kind: input, shape index: {}]   ;;  %s2233_s5 = inlined_call_operand.vmem [shape: bf16[2,2,16,128], index: 5, kind: output, shape index: {}]  }
   0x1   :  { %s1900_s20 = smov 0  }
   0x2 LB: > { %s27_s1 = sadd.s32 1, %s1859_s19  ;;  %p1342_p0 = scmp.ge.s32.totalorder %s1863_s20, 1  ;;  %s1863_s20 = sphi %s1900_s20, %s15_s20   ;;  %s1859_s19 = sphi %s1898_s19, %s2237_s19   ;;  %s1855_s18 = sphi %s1896_s18, %s2236_s18  }
   0x3   : > { %p29_p1 = scmp.ge.s32.totalorder %s27_s1, 2  ;;  %p241_p2 = scmp.lt.s32.totalorder %s1863_s20, 3 }
   0x5   : > { %s2239_s1 = smov (%p29_p1, %s27_s1), 0  ;;  %p242_p3 = pnand %p1342_p0, %p241_p2 }
   0x6   : > { %p293_p4 = scmp.lt.s32.totalorder (!%p242_p3), %s1855_s18, 1 }
   0x7   : > { %245 = sbr.rel (%p242_p3) target bundleno = 247 (0xf7), region = 40 }
   0xc   : > { %v1766_v0 = vld [vmem:[%s2231_s3 + $0x38] sm:$0xff]  ;;  %vm346_vm0 = vcmask 1040384   ;;  %v1865_v4 = vmov 0   ;;  %v1765_v6 = vld [vmem:[%s2231_s3 + $0x30] sm:$0xff]  ;;  %s2241_s18 = smov (!%p293_p4, %s1855_s18), 1  ;;  %v1764_v12 = vld [vmem:[%s2231_s3 + $0x28] sm:$0xff] }
   0xd   : > { %v1758_v1 = vld [vmem:[%s2230_s2 + $0x78] sm:$0xff]  ;;  %v344_v5 = vrot.slane %v1865_v4, 3  ;;  %498 = vmatpush.bf16.msra.mxu0 %v1766_v0  ;;  %v1757_v7 = vld [vmem:[%s2230_s2 + $0x70] sm:$0xff]  ;;  %v1756_v13 = vld [vmem:[%s2230_s2 + $0x68] sm:$0xff]  ;;  %s1740_s23 = sshll.u32 %s2241_s18, 5  ;;  %vm350_vm1 = vcmask 1041409  }
   0xe   : > { %v1774_v2 = vld [vmem:[%s2230_s2 + $0xb8] sm:$0xff]  ;;  %629 = vmatpush.bf16.msra.mxu2 %v1758_v1  ;;  %v1773_v8 = vld [vmem:[%s2230_s2 + $0xb0] sm:$0xff]  ;;  %v1772_v14 = vld [vmem:[%s2230_s2 + $0xa8] sm:$0xff]  ;;  %s1973_s9 = scalar_lea.vmem %s2228_s0, %s1740_s23  ;;  %vm360_vm2 = vsmask.f32 256  ;;  %s1742_s7 = sshll.u32 %s2241_s18, 4 }
   0xf   : > { %v1750_v3 = vld [vmem:[%s2230_s2 + $0x38] sm:$0xff]  ;;  %816 = vmatpush.bf16.msra.mxu3 %v1774_v2  ;;  %v1749_v9 = vld [vmem:[%s2230_s2 + $0x30] sm:$0xff]  ;;  %v1940_v10 = vsel %vm346_vm0, 0, %v344_v5  ;;  %v1748_v15 = vld [vmem:[%s2230_s2 + $0x28] sm:$0xff]  ;;  %vm361_vm3 = vsmask.f32 1284  ;;  %s2191_s11 = scalar_lea.vmem %s2233_s5, %s1742_s7 }
  0x10   : > { %616 = vmatpush.bf16.msra.mxu1 %v1750_v3  ;;  %v393_v11 = vrot.slane %v1940_v10, 1  ;;  %v1763_v16 = vld [vmem:[%s2231_s3 + $0x20] sm:$0xff]  ;;  %v1762_v20 = vld [vmem:[%s2231_s3 + $0x18] sm:$0xff]  ;;  %vm363_vm4 = vsmask.f32 2312  ;;  %v333_v24 = vld [vmem:[%s1973_s9 + $0x8] sm:$0xff] }
  0x11   : > { %499 = vmatpush.bf16.msra.mxu0 %v1765_v6  ;;  %v1755_v17 = vld [vmem:[%s2230_s2 + $0x60] sm:$0xff]  ;;  %v1754_v21 = vld [vmem:[%s2230_s2 + $0x58] sm:$0xff]  ;;  %v351_v25 = vsel %vm350_vm1, 0, %v344_v5  ;;  %vm365_vm5 = vsmask.f32 3340  ;;  %v345_v26 = vrot.slane %v333_v24, 3  ;;  %vm362_vm6 = vmor %vm360_vm2, %vm361_vm3 }
  0x12   : > { %630 = vmatpush.bf16.msra.mxu2 %v1757_v7  ;;  %444 = vst [vmem:[#allocation1] ss:$9 sm:$0xff] %v393_v11  ;;  %v1771_v18 = vld [vmem:[%s2230_s2 + $0xa0] sm:$0xff]  ;;  %v1770_v22 = vld [vmem:[%s2230_s2 + $0x98] sm:$0xff]  ;;  %vm367_vm7 = vsmask.f32 4368  ;;  %vm364_vm8 = vmor %vm362_vm6, %vm363_vm4 }
  0x13   : > { %817 = vmatpush.bf16.msra.mxu3 %v1773_v8  ;;  %v1747_v19 = vld [vmem:[%s2230_s2 + $0x20] sm:$0xff]  ;;  %v1746_v23 = vld [vmem:[%s2230_s2 + $0x18] sm:$0xff]  ;;  %v1761_v27 = vld [vmem:[%s2231_s3 + $0x10] sm:$0xff]  ;;  %vm369_vm9 = vsmask.f32 5396  ;;  %v1998_v30 = vsel %vm346_vm0, %v333_v24, %v345_v26  ;;  %v353_v32 = vrot.slane %v351_v25, 1  ;;  %v357_v33 = vsel %vm350_vm1, %v333_v24, %v345_v26 }
  0x14   : > { %617 = vmatpush.bf16.msra.mxu1 %v1749_v9  ;;  %v332_v28 = vld [vmem:[%s1973_s9] sm:$0xff]  ;;  %v1753_v29 = vld [vmem:[%s2230_s2 + $0x50] sm:$0xff]  ;;  %vm366_vm10 = vmor %vm364_vm8, %vm365_vm5  ;;  %vm371_vm11 = vsmask.f32 6424  ;;  %v394_v36 = vrot.slane %v1998_v30, 1  ;;  %v359_v37 = vrot.slane %v357_v33, 1 }
  0x15   : > { %500 = vmatpush.bf16.msra.mxu0 %v1764_v12  ;;  %v334_v31 = vld [vmem:[%s1973_s9 + $0x10] sm:$0xff]  ;;  %vm368_vm12 = vmor %vm366_vm10, %vm367_vm7  ;;  %vm373_vm14 = vsmask.f32 7452  ;;  %v644_v38 = vrot.slane %v332_v28, 3  ;;  %v1760_v40 = vld [vmem:[%s2231_s3 + $0x8] sm:$0xff]  ;;  %v375_v42 = vshrl.u32 %v1940_v10, 16 }
  0x16   : > { %631 = vmatpush.bf16.msra.mxu2 %v1756_v13  ;;  %v1769_v34 = vld [vmem:[%s2230_s2 + $0x90] sm:$0xff]  ;;  %vm370_vm13 = vmor %vm368_vm12, %vm369_vm9  ;;  %447 = vst [vmem:[#allocation1 + $0x1] ss:$9 sm:$0xff] %v394_v36  ;;  %v645_v39 = vrot.slane %v334_v31, 3  ;;  %v1752_v41 = vld [vmem:[%s2230_s2 + $0x48] sm:$0xff]  ;;  %v380_v43 = vshll.u32 %v353_v32, 16 }
  0x17   : > { %818 = vmatpush.bf16.msra.mxu3 %v1772_v14  ;;  %v1745_v35 = vld [vmem:[%s2230_s2 + $0x10] sm:$0xff]  ;;  %vm372_vm15 = vmor %vm370_vm13, %vm371_vm11  ;;  %v1768_v44 = vld [vmem:[%s2230_s2 + $0x88] sm:$0xff]  ;;  %v383_v47 = vshrl.u32 %v1998_v30, 16  ;;  %v388_v48 = vshll.u32 %v359_v37, 16  ;;  %v649_v49 = vsel %vm350_vm1, %v332_v28, %v644_v38  ;;  %v2060_v61 = vsel %vm346_vm0, %v332_v28, %v644_v38  ;;  %1207 = vst [vmem:[%s2191_s11] sm:$0x1] %v1865_v4 }
  0x18   : > { %618 = vmatpush.bf16.msra.mxu1 %v1748_v15  ;;  %v1744_v45 = vld [vmem:[%s2230_s2 + $0x8] sm:$0xff]  ;;  %vm2028_vm2 = vmor %vm372_vm15, %vm373_vm14  ;;  %v655_v50 = vsel %vm350_vm1, %v334_v31, %v645_v39  ;;  %v1759_v51 = vld [vmem:[%s2231_s3] sm:$0xff]  ;;  %v651_v57 = vrot.slane %v649_v49, 1  ;;  %v2066_v0 = vsel %vm346_vm0, %v334_v31, %v645_v39  ;;  %v658_v3 = vshrl.u32 %v2060_v61, 16  ;;  %1208 = vst [vmem:[%s2191_s11 + $0x8] sm:$0x1] %v1865_v4 }
  0x19   : > { %501 = vmatpush.bf16.msra.mxu0 %v1763_v16  ;;  %v1751_v52 = vld [vmem:[%s2230_s2 + $0x40] sm:$0xff]  ;;  %v382_v53 = vsel %vm2028_vm2, %v375_v42, %v380_v43  ;;  %v1782_v55 = vld [vmem:[%s2230_s2 + $0xf8] sm:$0xff]  ;;  %v2051_v56 = vsel %vm2028_vm2, %v383_v47, %v388_v48  ;;  %v657_v62 = vrot.slane %v655_v50, 1  ;;  %v1781_v2 = vld [vmem:[%s2230_s2 + $0xf0] sm:$0xff]  ;;  %v666_v8 = vshrl.u32 %v2066_v0, 16  ;;  %1217 = vst [vmem:[%s2191_s11] sm:$0xc] %v1865_v4 }
  0x1a   : > { %632 = vmatpush.bf16.msra.mxu2 %v1755_v17  ;;  %v1767_v54 = vld [vmem:[%s2230_s2 + $0x80] sm:$0xff]  ;;  %v1798_v58 = vld [vmem:[%s2230_s2 + $0x138] sm:$0xff]  ;;  %v663_v5 = vshll.u32 %v651_v57, 16  ;;  %v1797_v6 = vld [vmem:[%s2230_s2 + $0x130] sm:$0xff]  ;;  %v676_v26 = vrot.slane %v2060_v61, 1  ;;  %v677_v31 = vrot.slane %v2066_v0, 1 }
  0x1b   : > { %819 = vmatpush.bf16.msra.mxu3 %v1771_v18  ;;  %v1806_v59 = vld [vmem:[%s2230_s2 + $0x178] sm:$0xff]  ;;  %v1743_v63 = vld [vmem:[%s2230_s2] sm:$0xff]  ;;  %v1805_v7 = vld [vmem:[%s2230_s2 + $0x170] sm:$0xff]  ;;  %v671_v9 = vshll.u32 %v657_v62, 16  ;;  %1218 = vst [vmem:[%s2191_s11 + $0x4] sm:$0xf] %v1865_v4 }
  0x1c   : > { %619 = vmatpush.bf16.msra.mxu1 %v1747_v19  ;;  %v1790_v1 = vld [vmem:[%s2231_s3 + $0x78] sm:$0xff]  ;;  %v1789_v10 = vld [vmem:[%s2231_s3 + $0x70] sm:$0xff]  ;;  %v1780_v11 = vld [vmem:[%s2230_s2 + $0xe8] sm:$0xff]  ;;  %v665_v12 = vsel %vm2028_vm2, %v658_v3, %v663_v5  ;;  %1219 = vst [vmem:[%s2191_s11 + $0x8] sm:$0xc] %v1865_v4 }
  0x1d   : > { %502 = vmatpush.bf16.msra.mxu0 %v1762_v20  ;;  %v448_v60 = vld [vmem:[#allocation1] sm:$0xff]  ;;  %v1796_v13 = vld [vmem:[%s2230_s2 + $0x128] sm:$0xff]  ;;  %v673_v15 = vsel %vm2028_vm2, %v666_v8, %v671_v9  ;;  %v335_v16 = vld [vmem:[%s1973_s9 + $0x18] sm:$0xff]  ;;  %1220 = vst [vmem:[%s2191_s11 + $0xc] sm:$0xf] %v1865_v4 }
  0x1e   : > { %633 = vmatpush.bf16.msra.mxu2 %v1754_v21  ;;  %512 = vst [vmem:[#allocation1] ss:$9 sm:$0xff] %v382_v53  ;;  %v1804_v14 = vld [vmem:[%s2230_s2 + $0x168] sm:$0xff]  ;;  %v1779_v20 = vld [vmem:[%s2230_s2 + $0xe0] sm:$0xff]  ;;  %v930_v21 = vrot.slane %v335_v16, 3  ;;  %v1778_v25 = vld [vmem:[%s2230_s2 + $0xd8] sm:$0xff] }
  0x1f   : > { %820 = vmatpush.bf16.msra.mxu3 %v1770_v22  ;;  %515 = vst [vmem:[#allocation1 + $0x1] ss:$9 sm:$0xff] %v2051_v56  ;;  %v1788_v19 = vld [vmem:[%s2231_s3 + $0x68] sm:$0xff]  ;;  %v1795_v22 = vld [vmem:[%s2230_s2 + $0x120] sm:$0xff]  ;;  %v1794_v28 = vld [vmem:[%s2230_s2 + $0x118] sm:$0xff] }
  0x20   : > { %620 = vmatpush.bf16.msra.mxu1 %v1746_v23  ;;  %v1803_v23 = vld [vmem:[%s2230_s2 + $0x160] sm:$0xff]  ;;  %v1786_v33 = vld [vmem:[%s2231_s3 + $0x58] sm:$0xff]  ;;  %v1777_v37 = vld [vmem:[%s2230_s2 + $0xd0] sm:$0xff]  ;;  %v933_v38 = vsel %vm346_vm0, %v335_v16, %v930_v21 }
  0x21   : > { %503 = vmatpush.bf16.msra.mxu0 %v1761_v27  ;;  %v1787_v24 = vld [vmem:[%s2231_s3 + $0x60] sm:$0xff]  ;;  %v934_v27 = vsel %vm350_vm1, %v335_v16, %v930_v21  ;;  %v1793_v39 = vld [vmem:[%s2230_s2 + $0x110] sm:$0xff]  ;;  %v937_v42 = vshrl.u32 %v933_v38, 16  ;;  %v1800_v47 = vld [vmem:[%s2230_s2 + $0x148] sm:$0xff] }
  0x22   : > { %634 = vmatpush.bf16.msra.mxu2 %v1753_v29  ;;  %v1802_v29 = vld [vmem:[%s2230_s2 + $0x158] sm:$0xff]  ;;  %v1784_v48 = vld [vmem:[%s2231_s3 + $0x48] sm:$0xff]  ;;  %v1775_v50 = vld [vmem:[%s2230_s2 + $0xc0] sm:$0xff] }
  0x23   : > { %821 = vmatpush.bf16.msra.mxu3 %v1769_v34  ;;  %v1799_v53 = vld [vmem:[%s2230_s2 + $0x140] sm:$0xff]  ;;  %v1814_v46 = vld [vmem:[%s2231_s3 + $0xb8] sm:$0xff]  ;;  %v1809_v30 = vld [vmem:[%s2231_s3 + $0x90] sm:$0xff] }
  0x24   : > { %621 = vmatpush.bf16.msra.mxu1 %v1745_v35  ;;  %v936_v35 = vrot.slane %v934_v27, 1  ;;  %v1810_v61 = vld [vmem:[%s2231_s3 + $0x98] sm:$0xff]  ;;  %v1807_v62 = vld [vmem:[%s2231_s3 + $0x80] sm:$0xff] }
  0x25   : > { %504 = vmatpush.bf16.msra.mxu0 %v1760_v40  ;;  %v1801_v40 = vld [vmem:[%s2230_s2 + $0x150] sm:$0xff] }
  0x26   : > { %635 = vmatpush.bf16.msra.mxu2 %v1752_v41  ;;  %v516_v17 = vld [vmem:[#allocation1] sm:$0xff]  ;;  %v517_v18 = vld [vmem:[#allocation1 + $0x9] sm:$0xff]  ;;  %v942_v43 = vshll.u32 %v936_v35, 16 }
  0x27   : > { %822 = vmatpush.bf16.msra.mxu3 %v1768_v44  ;;  %712 = vst [vmem:[#allocation1] ss:$9 sm:$0xff] %v665_v12  ;;  %v1785_v41 = vld [vmem:[%s2231_s3 + $0x50] sm:$0xff]  ;;  %v1776_v44 = vld [vmem:[%s2230_s2 + $0xc8] sm:$0xff] }
  0x28   : > { %622 = vmatpush.bf16.msra.mxu1 %v1744_v45  ;;  %715 = vst [vmem:[#allocation1 + $0x1] ss:$9 sm:$0xff] %v673_v15  ;;  %v1792_v45 = vld [vmem:[%s2230_s2 + $0x108] sm:$0xff]  ;;  %v944_v49 = vsel %vm2028_vm2, %v937_v42, %v942_v43 }
  0x29   : > { %505 = vmatpush.bf16.msra.mxu0 %v1759_v51 }
  0x2a   : > { %636 = vmatpush.bf16.msra.mxu2 %v1751_v52  ;;  %v1791_v52 = vld [vmem:[%s2230_s2 + $0x100] sm:$0xff] }
  0x2b   : > { %823 = vmatpush.bf16.msra.mxu3 %v1767_v54  ;;  %v1783_v54 = vld [vmem:[%s2231_s3 + $0x40] sm:$0xff] }
  0x2c   : > { %623 = vmatpush.bf16.msra.mxu1 %v1743_v63  ;;  %506 = vmatmul.bf16.vlgmr.msra.gmra.mxu0 %v448_v60  ;;  %v1811_v60 = vld [vmem:[%s2231_s3 + $0xa0] sm:$0xff] }
  0x2d   : > { %829 = vmatpush.bf16.msrb.mxu0 %v1782_v55  ;;  %637 = vmatmul.bf16.vlgmr.msra.gmra.mxu2 %v517_v18  ;;  %v946_v55 = vrot.slane %v933_v38, 1 }
  0x2e   : > { %1084 = vmatpush.bf16.msrb.mxu2 %v1798_v58 }
  0x2f   : > { %1097 = vmatpush.bf16.msrb.mxu3 %v1806_v59  ;;  %624 = vmatmul.bf16.vlgmr.msra.gmra.mxu1 %v516_v17  ;;  %v716_v32 = vld [vmem:[#allocation1] sm:$0xff]  ;;  %v717_v34 = vld [vmem:[#allocation1 + $0x9] sm:$0xff] }
  0x30   : > { %915 = vmatpush.bf16.msrb.mxu1 %v1790_v1  ;;  %824 = vmatmul.bf16.vlgmr.msra.gmra.mxu3 %v716_v32  ;;  %861 = vst [vmem:[#allocation1] ss:$9 sm:$0xff] %v676_v26  ;;  %v1812_v59 = vld [vmem:[%s2231_s3 + $0xa8] sm:$0xff] }
  0x31   : > { %830 = vmatpush.bf16.msrb.mxu0 %v1781_v2  ;;  %864 = vst [vmem:[#allocation1 + $0x1] ss:$9 sm:$0xff] %v677_v31 }
  0x32   : > { %1085 = vmatpush.bf16.msrb.mxu2 %v1797_v6 }
  0x33   : > { %1098 = vmatpush.bf16.msrb.mxu3 %v1805_v7 }
  0x34   : > { %916 = vmatpush.bf16.msrb.mxu1 %v1789_v10 }
  0x35   : > { %831 = vmatpush.bf16.msrb.mxu0 %v1780_v11 }
  0x36   : > { %1086 = vmatpush.bf16.msrb.mxu2 %v1796_v13 }
  0x37   : > { %1099 = vmatpush.bf16.msrb.mxu3 %v1804_v14 }
  0x38   : > { %917 = vmatpush.bf16.msrb.mxu1 %v1788_v19  ;;  %v865_v51 = vld [vmem:[#allocation1] sm:$0xff] }
  0x39   : > { %832 = vmatpush.bf16.msrb.mxu0 %v1779_v20  ;;  %980 = vst [vmem:[#allocation1] ss:$9 sm:$0xff] %v2051_v56  ;;  %v1813_v56 = vld [vmem:[%s2231_s3 + $0xb0] sm:$0xff] }
  0x3a   : > { %1087 = vmatpush.bf16.msrb.mxu2 %v1795_v22  ;;  %983 = vst [vmem:[#allocation1 + $0x1] ss:$9 sm:$0xff] %v944_v49 }
  0x3b   : > { %1100 = vmatpush.bf16.msrb.mxu3 %v1803_v23  ;;  %v1840_v23 = vld [vmem:[%s2232_s4] ss:$0 sm:$0xff] }
  0x3c   : > { %918 = vmatpush.bf16.msrb.mxu1 %v1787_v24 }
  0x3d   : > { %833 = vmatpush.bf16.msrb.mxu0 %v1778_v25 }
  0x3e   : > { %1088 = vmatpush.bf16.msrb.mxu2 %v1794_v28 }
  0x3f   : > { %1101 = vmatpush.bf16.msrb.mxu3 %v1802_v29 }
  0x40   : > { %919 = vmatpush.bf16.msrb.mxu1 %v1786_v33 }
  0x41   : > { %834 = vmatpush.bf16.msrb.mxu0 %v1777_v37  ;;  %v984_v57 = vld [vmem:[#allocation1] sm:$0xff]  ;;  %v985_v58 = vld [vmem:[#allocation1 + $0x9] sm:$0xff] }
  0x42   : > { %1089 = vmatpush.bf16.msrb.mxu2 %v1793_v39  ;;  %1128 = vst [vmem:[#allocation1] ss:$9 sm:$0xff] %v394_v36  ;;  %v1808_v36 = vld [vmem:[%s2231_s3 + $0x88] sm:$0xff] }
  0x43   : > { %1102 = vmatpush.bf16.msrb.mxu3 %v1801_v40  ;;  %1131 = vst [vmem:[#allocation1 + $0x1] ss:$9 sm:$0xff] %v946_v55 }
  0x44   : > { %920 = vmatpush.bf16.msrb.mxu1 %v1785_v41 }
  0x45   : > { %835 = vmatpush.bf16.msrb.mxu0 %v1776_v44 }
  0x46   : > { %1090 = vmatpush.bf16.msrb.mxu2 %v1792_v45 }
  0x47   : > { %1103 = vmatpush.bf16.msrb.mxu3 %v1800_v47 }
  0x48   : > { %921 = vmatpush.bf16.msrb.mxu1 %v1784_v48 }
  0x49   : > { %836 = vmatpush.bf16.msrb.mxu0 %v1775_v50 }
  0x4a   : > { %1091 = vmatpush.bf16.msrb.mxu2 %v1791_v52  ;;  %v1132_v63 = vld [vmem:[#allocation1] sm:$0xff] }
  0x4b   : > { %1104 = vmatpush.bf16.msrb.mxu3 %v1799_v53 }
  0x4c   : > { %837 = vmatmul.bf16.vlgmr.msrb.gmra.mxu0 %v717_v34  ;;  %922 = vmatpush.bf16.msrb.mxu1 %v1783_v54 }
  0x4d   : > { %1182 = vmatpush.bf16.msra.mxu0 %v1814_v46  ;;  %1092 = vmatmul.bf16.vlgmr.msrb.gmra.mxu2 %v984_v57 }
  0x4e   : > { %1105 = vmatmul.bf16.vlgmr.msrb.gmra.mxu3 %v985_v58 }
  0x4f   : > { %923 = vmatmul.bf16.vlgmr.msrb.gmra.mxu1 %v865_v51 }
  0x51   : > { %1183 = vmatpush.bf16.msra.mxu0 %v1813_v56 }
  0x55   : > { %1184 = vmatpush.bf16.msra.mxu0 %v1812_v59 }
  0x59   : > { %1185 = vmatpush.bf16.msra.mxu0 %v1811_v60 }
  0x5d   : > { %1186 = vmatpush.bf16.msra.mxu0 %v1810_v61 }
  0x61   : > { %1187 = vmatpush.bf16.msra.mxu0 %v1809_v30 }
  0x65   : > { %1188 = vmatpush.bf16.msra.mxu0 %v1808_v36 }
  0x69   : > { %1189 = vmatpush.bf16.msra.mxu0 %v1807_v62 }
  0x6c   : > { %1190 = vmatmul.bf16.vlgmr.msra.gmra.mxu0 %v1132_v63 }
  0xa9   : > { %v507_v0 = vpop.f32.mrf.mxu0 }
  0xac   : > { %v625_v1 = vpop.f32.mrf.mxu1 }
  0xad   : > { %v626_v14 = vadd.f32 %v625_v1, %v507_v0 }
  0xb0   : > { %v638_v3 = vpop.f32.mrf.mxu2 }
  0xb1   : > { %v509_v2 = vpop.f32.mrf.mxu0  ;;  %v639_v17 = vadd.f32 %v638_v3, %v626_v14 }
  0xb3   : > { %v825_v7 = vpop.f32.mrf.mxu3 }
  0xb4   : > { %v627_v5 = vpop.f32.mrf.mxu1 }
  0xb8   : > { %v640_v6 = vpop.f32.mrf.mxu2 }
  0xbb   : > { %v827_v8 = vpop.f32.mrf.mxu3 }
  0xc9   : > { %v838_v9 = vpop.f32.mrf.mxu0 }
  0xca   : > { %v839_v18 = vadd.f32 %v838_v9, %v825_v7 }
  0xcc   : > { %v924_v10 = vpop.f32.mrf.mxu1  ;;  %v842_v19 = vadd.f32 %v839_v18, %v639_v17 }
  0xce   : > { %v928_v21 = vadd.f32 %v924_v10, %v842_v19 }
  0xd0   : > { %v1093_v4 = vpop.f32.mrf.mxu2 }
  0xd1   : > { %v840_v11 = vpop.f32.mrf.mxu0  ;;  %v1106_v12 = vpop.f32.mrf.mxu3 }
  0xd2   : > { %v1107_v20 = vadd.f32 %v1106_v12, %v1093_v4 }
  0xd4   : > { %v926_v13 = vpop.f32.mrf.mxu1  ;;  %v1110_v22 = vadd.f32 %v1107_v20, %v928_v21 }
  0xd8   : > { %v1095_v15 = vpop.f32.mrf.mxu2 }
  0xd9   : > { %v1108_v16 = vpop.f32.mrf.mxu3 }
  0xe9   : > { %v1191_v24 = vpop.f32.mrf.mxu0 }
  0xea   : > { %v1195_v25 = vadd.f32 %v1191_v24, %v1110_v22 }
  0xec   : > { %v1200_v26 = vadd.f32 %v1840_v23, %v1195_v25 }
  0xee   : > { %v1201_v27 = vmax.f32 %v1200_v26, 0.0 }
  0xf0   : > { %v1203_v28 = vrot.slane %v1201_v27, 2  ;;  %v1205_v29 = vpack.c.bf16 %v1201_v27, %v1201_v27 }
  0xf1   : > { %v1193_v31 = vpop.f32.mrf.mxu0 }
  0xf2   : > { %v1206_v32 = vpack.c.bf16 %v1203_v28, %v1203_v28  ;;  %v1211_v33 = vrot.slane %v1205_v29, 7 }
  0xf4   : > { %v1212_v34 = vrot.slane %v1206_v32, 7  ;;  %1215 = vst [vmem:[%s2191_s11] sm:$0x2] %v1211_v33 }
  0xf6   : > { %1216 = vst [vmem:[%s2191_s11 + $0x8] sm:$0x2] %v1212_v34 }
  0xf7 PF: > { %s15_s20 = sadd.s32 1, %s1863_s20   ;;  %s2236_s18 = smov %s1859_s19 }
  0xf8   : > { %p12_p5 = scmp.ge.s32.totalorder %s15_s20, 4   ;;  %s2237_s19 = smov %s2239_s1 }
  0xfa   :  { %14 = sbr.rel (!%p12_p5) target bundleno = 2 (0x2), region = 83 }

// kernel: forward.4
= control target key start
LH: loop header
LB: loop body
LE: loop exit
PB: predicated region body
PF: predicated region fallthrough
CT: control target
= control target key end

     0   :  { %s3667_s18 = smov 0   ;;  %s3669_s19 = smov 0   ;;  %s4843_s0 = inlined_call_operand.vmem [shape: bf16[2,32,24,128], index: 0, kind: input, shape index: {}, may-alias: {0,1}]   ;;  %s4844_s1 = inlined_call_operand.vmem [shape: bf16[2,32,24,128], index: 1, kind: input, shape index: {}, may-alias: {0,1}]   ;;  %s4845_s2 = inlined_call_operand.vmem [shape: bf16[3,128,128], index: 2, kind: input, shape index: {}]   ;;  %s4846_s3 = inlined_call_operand.vmem [shape: bf16[3,64,128], index: 3, kind: input, shape index: {}]   ;;  %s4847_s4 = inlined_call_operand.vmem [shape: f32[1,128], index: 4, kind: input, shape index: {}]   ;;  %s4848_s5 = inlined_call_operand.vmem [shape: bf16[2,16,32,128], index: 5, kind: output, shape index: {}]  }
   0x1   :  { %s3671_s20 = smov 0  }
   0x2 LB: > { %s27_s1 = sadd.s32 1, %s3629_s19  ;;  %p3130_p0 = scmp.ge.s32.totalorder %s3633_s20, 1  ;;  %s3633_s20 = sphi %s3671_s20, %s15_s20   ;;  %s3629_s19 = sphi %s3669_s19, %s4976_s19   ;;  %s3625_s18 = sphi %s3667_s18, %s4975_s18  }
   0x3   : > { %p29_p1 = scmp.ge.s32.totalorder %s27_s1, 2  ;;  %p241_p2 = scmp.lt.s32.totalorder %s3633_s20, 3 }
   0x5   : > { %s4978_s1 = smov (%p29_p1, %s27_s1), 0  ;;  %p242_p3 = pnand %p3130_p0, %p241_p2 }
   0x7   : > { %245 = sbr.rel (%p242_p3) target bundleno = 676 (0x2a4), region = 40 }
   0xc   : > { %v3557_v0 = vld [vmem:[%s4845_s2 + $0x78] sm:$0xff]  ;;  %p293_p4 = scmp.lt.s32.totalorder %s3625_s18, 1  ;;  %v3556_v1 = vld [vmem:[%s4845_s2 + $0x70] sm:$0xff]  ;;  %v3555_v2 = vld [vmem:[%s4845_s2 + $0x68] sm:$0xff]  ;;  %v3635_v3 = vmov 0   ;;  %s3636_s10 = smov 64  }
   0xd   : > { %1837 = vmatpush.bf16.msra.mxu2 %v3557_v0  ;;  %v881_v8 = vunpack.c.l.b16 %v3635_v3  ;;  %v3554_v12 = vld [vmem:[%s4845_s2 + $0x60] sm:$0xff]  ;;  %v3553_v22 = vld [vmem:[%s4845_s2 + $0x58] sm:$0xff]  ;;  %vm438_vm0 = vsmask.f32 3328  ;;  %vm439_vm1 = vsmask.f32 7440 }
   0xe   : > { %s4980_s18 = smov (!%p293_p4, %s3625_s18), 1  ;;  %v3552_v27 = vld [vmem:[%s4845_s2 + $0x50] sm:$0xff]  ;;  %vm3755_vm2 = vmor %vm438_vm0, %vm439_vm1  ;;  %v3551_v38 = vld [vmem:[%s4845_s2 + $0x48] sm:$0xff]  ;;  %vm985_vm3 = vcmask 523264   ;;  %vm2798_vm4 = vcmask 1040384   ;;  %vm2799_vm5 = vcmask 1044484  }
   0xf   : > { %s3582_s25 = smul.u32 384, %s4980_s18  ;;  %s3505_s26 = sshll.u32 %s4980_s18, 8  ;;  %v913_v20 = vpack.c.b16 %v881_v8, %v881_v8  ;;  %v3550_v43 = vld [vmem:[%s4845_s2 + $0x40] sm:$0xff]  ;;  %vm4526_vm6 = vmor %vm2798_vm4, %vm2799_vm5 }
  0x10   : > { %s3694_s29 = scalar_lea.vmem %s4848_s5, %s3505_s26 }
  0x11   : > { %1838 = vmatpush.bf16.msra.mxu2 %v3556_v1  ;;  %s3699_s7 = scalar_lea.vmem %s4843_s0, %s3582_s25  ;;  %2750 = vst [vmem:[%s3694_s29] sm:$0x1] %v3635_v3 }
  0x12   : > { %v3522_v4 = vld [vmem:[%s3699_s7 + $0xc0] sm:$0xff]  ;;  %v3520_v5 = vld [vmem:[%s3699_s7 + $0xa8] sm:$0xff]  ;;  %2751 = vst [vmem:[%s3694_s29 + $0x10] sm:$0x1] %v3635_v3  ;;  %v338_v26 = vld [vmem:[%s3699_s7 + $0x18] sm:$0xf] }
  0x13   : > { %2752 = vst [vmem:[%s3694_s29 + $0x20] sm:$0x1] %v3635_v3  ;;  %v3523_v6 = vld [vmem:[%s3699_s7 + $0xcc] sm:$0xff]  ;;  %v332_v7 = vld [vmem:[%s3699_s7] sm:$0xf]  ;;  %2063 = vrot.lane.b32.xlu1 %v3522_v4, %s3636_s10  ;;  %v1349_v35 = vshrl.u32 %v338_v26, 16 }
  0x14   : > { %2061 = vrot.lane.b32.xlu0 %v3520_v5, %s3636_s10  ;;  %2753 = vst [vmem:[%s3694_s29 + $0x30] sm:$0x1] %v3635_v3  ;;  %v333_v9 = vld [vmem:[%s3699_s7 + $0x4] sm:$0xf]  ;;  %v1325_v10 = vshrl.u32 %v332_v7, 16  ;;  %v1328_v11 = vshll.u32 %v332_v7, 16  ;;  %947 = vrot.lane.b32.xlu2 %v3523_v6, %s3636_s10 }
  0x15   : > { %1839 = vmatpush.bf16.msra.mxu2 %v3555_v2  ;;  %2754 = vst [vmem:[%s3694_s29 + $0x40] sm:$0x1] %v3635_v3  ;;  %v1334_v13 = vshll.u32 %v333_v9, 16  ;;  %v1338_v14 = vshrl.u32 %v333_v9, 16  ;;  %v334_v15 = vld [vmem:[%s3699_s7 + $0x8] sm:$0xf] }
  0x16   : > { %2755 = vst [vmem:[%s3694_s29 + $0x50] sm:$0x1] %v3635_v3  ;;  %v1327_v16 = vrot.slane %v1325_v10, 4  ;;  %v1330_v17 = vrot.slane %v1328_v11, 5  ;;  %v3507_v21 = vld [vmem:[%s3699_s7 + $0xc] sm:$0xff]  ;;  %v1344_v25 = vshll.u32 %v334_v15, 16 }
  0x17   : > { %2756 = vst [vmem:[%s3694_s29 + $0x60] sm:$0x1] %v3635_v3  ;;  %v1336_v18 = vrot.slane %v1334_v13, 5  ;;  %v1340_v19 = vrot.slane %v1338_v14, 4  ;;  %v339_v32 = vld [vmem:[%s3699_s7 + $0x1c] sm:$0xf] }
  0x18   : > { %2757 = vst [vmem:[%s3694_s29 + $0x70] sm:$0x1] %v3635_v3  ;;  %v1331_v23 = vor.u32 %v1330_v17, %v1327_v16  ;;  %v1346_v30 = vrot.slane %v1344_v25, 5  ;;  %v3525_v33 = vld [vmem:[%s3699_s7 + $0xe4] sm:$0xff]  ;;  %v1352_v36 = vshll.u32 %v338_v26, 16  ;;  %v3524_v37 = vld [vmem:[%s3699_s7 + $0xd8] sm:$0xff] }
  0x19   : > { %1840 = vmatpush.bf16.msra.mxu2 %v3554_v12  ;;  %2758 = vst [vmem:[%s3694_s29 + $0x80] sm:$0x1] %v3635_v3  ;;  %v1341_v24 = vor.u32 %v1340_v19, %v1336_v18  ;;  %v3509_v34 = vld [vmem:[%s3699_s7 + $0x24] sm:$0xff]  ;;  %v1358_v41 = vshll.u32 %v339_v32, 16  ;;  %v1362_v42 = vshrl.u32 %v339_v32, 16  ;;  %v1351_v47 = vrot.slane %v1349_v35, 4 }
  0x1a   : > { %2759 = vst [vmem:[%s3694_s29 + $0x90] sm:$0x1] %v3635_v3  ;;  %v1332_v28 = vrot.slane %v1331_v23, 4  ;;  %v340_v46 = vld [vmem:[%s3699_s7 + $0x20] sm:$0xf]  ;;  %v1354_v48 = vrot.slane %v1352_v36, 5 }
  0x1b   : > { %2760 = vst [vmem:[%s3694_s29 + $0xa0] sm:$0x1] %v3635_v3  ;;  %931 = vrot.lane.b32.xlu1 %v3507_v21, %s3636_s10  ;;  %v1342_v29 = vrot.slane %v1341_v24, 4  ;;  %v1360_v49 = vrot.slane %v1358_v41, 5  ;;  %v1364_v50 = vrot.slane %v1362_v42, 4  ;;  %v3527_v52 = vld [vmem:[%s3699_s7 + $0xfc] sm:$0xff] }
  0x1c   : > { %2761 = vst [vmem:[%s3694_s29 + $0xb0] sm:$0x1] %v3635_v3  ;;  %929 = vrot.lane.b32.xlu0 %v913_v20, %s3636_s10  ;;  %v1337_v39 = vsel %vm3755_vm2, %v1332_v28, %v1336_v18  ;;  %2065 = vrot.lane.b32.xlu2 %v3524_v37, %s3636_s10  ;;  %v1368_v53 = vshll.u32 %v340_v46, 16  ;;  %v1355_v54 = vor.u32 %v1354_v48, %v1351_v47  ;;  %v3511_v56 = vld [vmem:[%s3699_s7 + $0x3c] sm:$0xff] }
  0x1d   : > { %2762 = vst [vmem:[%s3694_s29 + $0xc0] sm:$0x1] %v3635_v3  ;;  %1841 = vmatpush.bf16.msra.mxu2 %v3553_v22  ;;  %v1347_v40 = vsel %vm3755_vm2, %v1342_v29, %v1346_v30  ;;  %v1725_v44 = vunpack.c.l.b16 %v1337_v39  ;;  %v1365_v55 = vor.u32 %v1364_v50, %v1360_v49  ;;  %v3526_v58 = vld [vmem:[%s3699_s7 + $0xf0] sm:$0xff]  ;;  %v346_v14 = vld [vmem:[%s3699_s7 + $0x38] sm:$0xf]  ;;  %v3528_v22 = vld [vmem:[%s3699_s7 + $0x108] sm:$0xff] }
  0x1e   : > { %2763 = vst [vmem:[%s3694_s29 + $0xd0] sm:$0x1] %v3635_v3  ;;  %v1726_v45 = vunpack.c.l.b16 %v1347_v40  ;;  %v1370_v57 = vrot.slane %v1368_v53, 5  ;;  %v1356_v59 = vrot.slane %v1355_v54, 4  ;;  %v344_v61 = vld [vmem:[%s3699_s7 + $0x30] sm:$0xf] }
  0x1f   : > { %2764 = vst [vmem:[%s3694_s29 + $0xe0] sm:$0x1] %v3635_v3  ;;  %v1366_v60 = vrot.slane %v1365_v55, 4  ;;  %v345_v62 = vld [vmem:[%s3699_s7 + $0x34] sm:$0xf]  ;;  %v1373_v0 = vshrl.u32 %v344_v61, 16 }
  0x20   : > { %2765 = vst [vmem:[%s3694_s29 + $0xf0] sm:$0x1] %v3635_v3  ;;  %v1757_v51 = vpack.c.b16 %v1726_v45, %v1725_v44  ;;  %v3529_v63 = vld [vmem:[%s3699_s7 + $0x114] sm:$0xff]  ;;  %v1376_v1 = vshll.u32 %v344_v61, 16  ;;  %v1361_v2 = vsel %vm3755_vm2, %v1356_v59, %v1360_v49  ;;  %v1382_v5 = vshll.u32 %v345_v62, 16  ;;  %v3531_v16 = vld [vmem:[%s3699_s7 + $0x12c] sm:$0xff] }
  0x21   : > { %2977 = vst [vmem:[%s3694_s29 + $0x8] sm:$0xe] %v3635_v3  ;;  %1842 = vmatpush.bf16.msra.mxu2 %v3552_v27  ;;  %v1371_v4 = vsel %vm3755_vm2, %v1366_v60, %v1370_v57  ;;  %v1386_v6 = vshrl.u32 %v345_v62, 16  ;;  %v3513_v7 = vld [vmem:[%s3699_s7 + $0x54] sm:$0xff]  ;;  %v1727_v8 = vunpack.c.l.b16 %v1361_v2  ;;  %v1375_v10 = vrot.slane %v1373_v0, 4  ;;  %v3515_v26 = vld [vmem:[%s3699_s7 + $0x6c] sm:$0xff] }
  0x22   : > { %2978 = vst [vmem:[%s3694_s29 + $0xc] sm:$0xf] %v3635_v3  ;;  %v1728_v9 = vunpack.c.l.b16 %v1371_v4  ;;  %v1378_v11 = vrot.slane %v1376_v1, 5  ;;  %v1384_v12 = vrot.slane %v1382_v5, 5  ;;  %v1392_v19 = vshll.u32 %v346_v14, 16  ;;  %v3533_v32 = vld [vmem:[%s3699_s7 + $0x144] sm:$0xff] }
  0x23   : > { %2979 = vst [vmem:[%s3694_s29 + $0x18] sm:$0xe] %v3635_v3  ;;  %949 = vrot.lane.b32.xlu1 %v3525_v33, %s3636_s10  ;;  %v1388_v13 = vrot.slane %v1386_v6, 4  ;;  %v350_v20 = vld [vmem:[%s3699_s7 + $0x48] sm:$0xf]  ;;  %v3535_v49 = vld [vmem:[%s3699_s7 + $0x15c] sm:$0xff] }
  0x24   : > { %2980 = vst [vmem:[%s3694_s29 + $0x1c] sm:$0xf] %v3635_v3  ;;  %933 = vrot.lane.b32.xlu0 %v3509_v34, %s3636_s10  ;;  %2067 = vrot.lane.b32.xlu2 %v3526_v58, %s3636_s10  ;;  %v1758_v15 = vpack.c.b16 %v1728_v9, %v1727_v8  ;;  %v1379_v17 = vor.u32 %v1378_v11, %v1375_v10  ;;  %v351_v21 = vld [vmem:[%s3699_s7 + $0x4c] sm:$0xf]  ;;  %v1394_v25 = vrot.slane %v1392_v19, 5  ;;  %v1397_v27 = vshrl.u32 %v350_v20, 16 }
  0x25   : > { %2981 = vst [vmem:[%s3694_s29 + $0x28] sm:$0xe] %v3635_v3  ;;  %1843 = vmatpush.bf16.msra.mxu2 %v3551_v38  ;;  %v1389_v18 = vor.u32 %v1388_v13, %v1384_v12  ;;  %v1400_v28 = vshll.u32 %v350_v20, 16  ;;  %v1406_v29 = vshll.u32 %v351_v21, 16  ;;  %v1410_v30 = vshrl.u32 %v351_v21, 16  ;;  %v3549_v50 = vld [vmem:[%s4846_s3 + $0x18] sm:$0xff] }
  0x26   : > { %2982 = vst [vmem:[%s3694_s29 + $0x2c] sm:$0xf] %v3635_v3  ;;  %v1380_v23 = vrot.slane %v1379_v17, 4  ;;  %v1399_v35 = vrot.slane %v1397_v27, 4  ;;  %v352_v41 = vld [vmem:[%s3699_s7 + $0x50] sm:$0xf]  ;;  %3574 = vmatpush.bf16.msra.mxu1 %v3549_v50  ;;  %1038 = vmatpush.bf16.msra.mxu0 %v3549_v50 }
  0x27   : > { %2983 = vst [vmem:[%s3694_s29 + $0x38] sm:$0xe] %v3635_v3  ;;  %v1390_v24 = vrot.slane %v1389_v18, 4  ;;  %v1402_v36 = vrot.slane %v1400_v28, 5  ;;  %v1408_v37 = vrot.slane %v1406_v29, 5  ;;  %v1412_v38 = vrot.slane %v1410_v30, 4 }
  0x28   : > { %2984 = vst [vmem:[%s3694_s29 + $0x3c] sm:$0xf] %v3635_v3  ;;  %v1385_v33 = vsel %vm3755_vm2, %v1380_v23, %v1384_v12  ;;  %v1416_v44 = vshll.u32 %v352_v41, 16  ;;  %v357_v53 = vld [vmem:[%s3699_s7 + $0x64] sm:$0xf]  ;;  %v3548_v55 = vld [vmem:[%s4846_s3 + $0x10] sm:$0xff] }
  0x29   : > { %2985 = vst [vmem:[%s3694_s29 + $0x48] sm:$0xe] %v3635_v3  ;;  %1844 = vmatpush.bf16.msra.mxu2 %v3550_v43  ;;  %v1395_v34 = vsel %vm3755_vm2, %v1390_v24, %v1394_v25  ;;  %v1729_v39 = vunpack.c.l.b16 %v1385_v33  ;;  %v1403_v42 = vor.u32 %v1402_v36, %v1399_v35  ;;  %v1413_v43 = vor.u32 %v1412_v38, %v1408_v37  ;;  %v3530_v54 = vld [vmem:[%s3699_s7 + $0x120] sm:$0xff]  ;;  %v3560_v59 = vld [vmem:[%s4846_s3 + $0x30] sm:$0xff]  ;;  %v362_v17 = vld [vmem:[%s3699_s7 + $0x78] sm:$0xf] }
  0x2a   : > { %2986 = vst [vmem:[%s3694_s29 + $0x4c] sm:$0xf] %v3635_v3  ;;  %v1730_v40 = vunpack.c.l.b16 %v1395_v34  ;;  %v1418_v48 = vrot.slane %v1416_v44, 5  ;;  %v1430_v62 = vshll.u32 %v357_v53, 16  ;;  %3575 = vmatpush.bf16.msra.mxu1 %v3548_v55  ;;  %1039 = vmatpush.bf16.msra.mxu0 %v3548_v55  ;;  %v363_v18 = vld [vmem:[%s3699_s7 + $0x7c] sm:$0xf] }
  0x2b   : > { %2987 = vst [vmem:[%s3694_s29 + $0x58] sm:$0xe] %v3635_v3  ;;  %951 = vrot.lane.b32.xlu1 %v3527_v52, %s3636_s10  ;;  %v1404_v46 = vrot.slane %v1403_v42, 4  ;;  %v1414_v47 = vrot.slane %v1413_v43, 4  ;;  %v356_v52 = vld [vmem:[%s3699_s7 + $0x60] sm:$0xf] }
  0x2c   : > { %2988 = vst [vmem:[%s3694_s29 + $0x5c] sm:$0xf] %v3635_v3  ;;  %1845 = vmatmul.bf16.vlgmr.msra.gmra.mxu2 %v1757_v51  ;;  %935 = vrot.lane.b32.xlu0 %v3511_v56, %s3636_s10  ;;  %v1759_v45 = vpack.c.b16 %v1730_v40, %v1729_v39  ;;  %v3561_v51 = vld [vmem:[%s4846_s3 + $0x38] sm:$0xff]  ;;  %v3517_v56 = vld [vmem:[%s3699_s7 + $0x84] sm:$0xff]  ;;  %v1421_v60 = vshrl.u32 %v356_v52, 16  ;;  %v1424_v61 = vshll.u32 %v356_v52, 16 }
  0x2d   : > { %2989 = vst [vmem:[%s3694_s29 + $0x68] sm:$0xe] %v3635_v3  ;;  %2069 = vrot.lane.b32.xlu2 %v3528_v22, %s3636_s10  ;;  %v1409_v57 = vsel %vm3755_vm2, %v1404_v46, %v1408_v37  ;;  %v1419_v58 = vsel %vm3755_vm2, %v1414_v47, %v1418_v48  ;;  %3578 = vmatpush.bf16.msra.mxu3 %v3561_v51  ;;  %v1432_v5 = vrot.slane %v1430_v62, 5  ;;  %v3546_v19 = vld [vmem:[%s4846_s3] sm:$0xff]  ;;  %v1445_v23 = vshrl.u32 %v362_v17, 16  ;;  %v3573_v35 = vld [vmem:[%s4846_s3 + $0x58] sm:$0xff] }
  0x2e   : > { %2990 = vst [vmem:[%s3694_s29 + $0x6c] sm:$0xf] %v3635_v3  ;;  %2155 = vmatpush.bf16.msrb.mxu2 %v3561_v51  ;;  %v1731_v0 = vunpack.c.l.b16 %v1409_v57  ;;  %v1732_v1 = vunpack.c.l.b16 %v1419_v58  ;;  %v1423_v2 = vrot.slane %v1421_v60, 4  ;;  %v1426_v4 = vrot.slane %v1424_v61, 5  ;;  %v3558_v20 = vld [vmem:[%s4846_s3 + $0x20] sm:$0xff]  ;;  %v3532_v36 = vld [vmem:[%s3699_s7 + $0x138] sm:$0xff] }
  0x2f   : > { %2991 = vst [vmem:[%s3694_s29 + $0x78] sm:$0xe] %v3635_v3  ;;  %v1448_v24 = vshll.u32 %v362_v17, 16  ;;  %v1454_v25 = vshll.u32 %v363_v18, 16  ;;  %v1447_v29 = vrot.slane %v1445_v23, 4  ;;  %v3519_v37 = vld [vmem:[%s3699_s7 + $0x9c] sm:$0xff] }
  0x30   : > { %2992 = vst [vmem:[%s3694_s29 + $0x7c] sm:$0xf] %v3635_v3  ;;  %v1760_v8 = vpack.c.b16 %v1732_v1, %v1731_v0  ;;  %v1427_v9 = vor.u32 %v1426_v4, %v1423_v2  ;;  %v364_v34 = vld [vmem:[%s3699_s7 + $0x80] sm:$0xf]  ;;  %v368_v42 = vld [vmem:[%s3699_s7 + $0x90] sm:$0xf] }
  0x31   : > { %2993 = vst [vmem:[%s3694_s29 + $0x88] sm:$0xe] %v3635_v3  ;;  %3579 = vmatpush.bf16.msra.mxu3 %v3560_v59  ;;  %v1450_v30 = vrot.slane %v1448_v24, 5  ;;  %v1464_v41 = vshll.u32 %v364_v34, 16  ;;  %v369_v43 = vld [vmem:[%s3699_s7 + $0x94] sm:$0xf] }
  0x32   : > { %2994 = vst [vmem:[%s3694_s29 + $0x8c] sm:$0xf] %v3635_v3  ;;  %2156 = vmatpush.bf16.msrb.mxu2 %v3560_v59  ;;  %v1428_v12 = vrot.slane %v1427_v9, 4  ;;  %v1469_v48 = vshrl.u32 %v368_v42, 16  ;;  %v1478_v50 = vshll.u32 %v369_v43, 16  ;;  %v1482_v51 = vshrl.u32 %v369_v43, 16 }
  0x33   : > { %2995 = vst [vmem:[%s3694_s29 + $0x98] sm:$0xe] %v3635_v3  ;;  %953 = vrot.lane.b32.xlu1 %v3529_v63, %s3636_s10  ;;  %v1434_v63 = vshrl.u32 %v357_v53, 16  ;;  %v1451_v39 = vor.u32 %v1450_v30, %v1447_v29  ;;  %v1466_v46 = vrot.slane %v1464_v41, 5  ;;  %v3569_v52 = vld [vmem:[%s4845_s2 + $0xb8] sm:$0xff]  ;;  %v3534_v1 = vld [vmem:[%s3699_s7 + $0x150] sm:$0xff] }
  0x34   : > { %2996 = vst [vmem:[%s3694_s29 + $0x9c] sm:$0xf] %v3635_v3  ;;  %937 = vrot.lane.b32.xlu0 %v3513_v7, %s3636_s10  ;;  %v358_v7 = vld [vmem:[%s3699_s7 + $0x68] sm:$0xf]  ;;  %v1433_v21 = vsel %vm3755_vm2, %v1428_v12, %v1432_v5  ;;  %v1471_v55 = vrot.slane %v1469_v48, 4  ;;  %v1480_v57 = vrot.slane %v1478_v50, 5 }
  0x35   : > { %2997 = vst [vmem:[%s3694_s29 + $0xa8] sm:$0xe] %v3635_v3  ;;  %2071 = vrot.lane.b32.xlu2 %v3530_v54, %s3636_s10  ;;  %v1436_v6 = vrot.slane %v1434_v63, 4  ;;  %v1440_v11 = vshll.u32 %v358_v7, 16  ;;  %v1733_v27 = vunpack.c.l.b16 %v1433_v21  ;;  %v1452_v44 = vrot.slane %v1451_v39, 4  ;;  %v3521_v2 = vld [vmem:[%s3699_s7 + $0xb4] sm:$0xff] }
  0x36   : > { %2998 = vst [vmem:[%s3694_s29 + $0xac] sm:$0xf] %v3635_v3  ;;  %v1484_v58 = vrot.slane %v1482_v51, 4  ;;  %v370_v61 = vld [vmem:[%s3699_s7 + $0x98] sm:$0xf]  ;;  %v3568_v12 = vld [vmem:[%s4845_s2 + $0xb0] sm:$0xff] }
  0x37   : > { %2999 = vst [vmem:[%s3694_s29 + $0xb8] sm:$0xe] %v3635_v3  ;;  %v1437_v10 = vor.u32 %v1436_v6, %v1432_v5  ;;  %v1442_v14 = vrot.slane %v1440_v11, 5  ;;  %v1488_v0 = vshll.u32 %v370_v61, 16  ;;  %v375_v9 = vld [vmem:[%s3699_s7 + $0xac] sm:$0xf] }
  0x38   : > { %3000 = vst [vmem:[%s3694_s29 + $0xbc] sm:$0xf] %v3635_v3  ;;  %v1485_v63 = vor.u32 %v1484_v58, %v1480_v57  ;;  %v376_v23 = vld [vmem:[%s3699_s7 + $0xb0] sm:$0xf]  ;;  %v381_v39 = vld [vmem:[%s3699_s7 + $0xc4] sm:$0xf] }
  0x39   : > { %3001 = vst [vmem:[%s3694_s29 + $0xc8] sm:$0xe] %v3635_v3  ;;  %v1438_v13 = vrot.slane %v1437_v10, 4  ;;  %v1490_v7 = vrot.slane %v1488_v0, 5  ;;  %v3567_v41 = vld [vmem:[%s4845_s2 + $0xa8] sm:$0xff]  ;;  %v1530_v48 = vshrl.u32 %v381_v39, 16 }
  0x3a   : > { %3002 = vst [vmem:[%s3694_s29 + $0xcc] sm:$0xf] %v3635_v3  ;;  %v1486_v6 = vrot.slane %v1485_v63, 4  ;;  %v3506_v58 = vld [vmem:[%s3699_s7] sm:$0xff]  ;;  %v386_v63 = vld [vmem:[%s3699_s7 + $0xd8] sm:$0xf] }
  0x3b   : > { %3003 = vst [vmem:[%s3694_s29 + $0xd8] sm:$0xe] %v3635_v3  ;;  %955 = vrot.lane.b32.xlu1 %v3531_v16, %s3636_s10  ;;  %v3559_v16 = vld [vmem:[%s4846_s3 + $0x28] sm:$0xff]  ;;  %v1443_v22 = vsel %vm3755_vm2, %v1438_v13, %v1442_v14  ;;  %v387_v0 = vld [vmem:[%s3699_s7 + $0xdc] sm:$0xf] }
  0x3c   : > { %3004 = vst [vmem:[%s3694_s29 + $0xdc] sm:$0xf] %v3635_v3  ;;  %1850 = vmatmul.bf16.gmra.mxu2 %v1758_v15  ;;  %939 = vrot.lane.b32.xlu0 %v3515_v26, %s3636_s10  ;;  %v3547_v15 = vld [vmem:[%s4846_s3 + $0x8] sm:$0xff]  ;;  %v1458_v26 = vshrl.u32 %v363_v18, 16  ;;  %v1734_v28 = vunpack.c.l.b16 %v1443_v22  ;;  %v1491_v11 = vsel %vm3755_vm2, %v1486_v6, %v1490_v7  ;;  %v1544_v6 = vshll.u32 %v386_v63, 16 }
  0x3d   : > { %3005 = vst [vmem:[%s3694_s29 + $0xe8] sm:$0xe] %v3635_v3  ;;  %3576 = vmatpush.bf16.msra.mxu1 %v3547_v15  ;;  %3580 = vmatpush.bf16.msra.mxu3 %v3559_v16  ;;  %v1738_v18 = vunpack.c.l.b16 %v1491_v11  ;;  %v1550_v7 = vshll.u32 %v387_v0, 16 }
  0x3e   : > { %3006 = vst [vmem:[%s3694_s29 + $0xec] sm:$0xf] %v3635_v3  ;;  %1040 = vmatpush.bf16.msra.mxu0 %v3547_v15  ;;  %2157 = vmatpush.bf16.msrb.mxu2 %v3559_v16  ;;  %v1460_v33 = vrot.slane %v1458_v26, 4  ;;  %v1761_v38 = vpack.c.b16 %v1734_v28, %v1733_v27  ;;  %v1502_v15 = vshll.u32 %v375_v9, 16  ;;  %v1506_v16 = vshrl.u32 %v375_v9, 16  ;;  %v3545_v26 = vld [vmem:[%s4845_s2 + $0x38] sm:$0xff] }
  0x3f   : > { %3007 = vst [vmem:[%s3694_s29 + $0xf8] sm:$0xe] %v3635_v3  ;;  %2073 = vrot.lane.b32.xlu2 %v3532_v36, %s3636_s10  ;;  %v3536_v27 = vld [vmem:[%s3699_s7 + $0x168] sm:$0xff] }
  0x40   : > { %3008 = vst [vmem:[%s3694_s29 + $0xfc] sm:$0xf] %v3635_v3  ;;  %v1504_v21 = vrot.slane %v1502_v15, 5  ;;  %v1508_v22 = vrot.slane %v1506_v16, 4  ;;  %v3543_v9 = vld [vmem:[%s4845_s2 + $0x28] sm:$0xff]  ;;  %v1552_v15 = vrot.slane %v1550_v7, 5 }
  0x41   : > { %3577 = vmatpush.bf16.msra.mxu1 %v3546_v19  ;;  %3581 = vmatpush.bf16.msra.mxu3 %v3558_v20 }
  0x42   : > { %1041 = vmatpush.bf16.msra.mxu0 %v3546_v19  ;;  %2158 = vmatpush.bf16.msrb.mxu2 %v3558_v20  ;;  %v1509_v30 = vor.u32 %v1508_v22, %v1504_v21 }
  0x43   : > { %957 = vrot.lane.b32.xlu1 %v3533_v32, %s3636_s10  ;;  %v1456_v32 = vrot.slane %v1454_v25, 5 }
  0x44   : > { %941 = vrot.lane.b32.xlu0 %v3517_v56, %s3636_s10  ;;  %v1510_v34 = vrot.slane %v1509_v30, 4  ;;  %v392_v30 = vld [vmem:[%s3699_s7 + $0xf0] sm:$0xf] }
  0x45   : > { %v1461_v40 = vor.u32 %v1460_v33, %v1456_v32  ;;  %2533 = vmatpush.bf16.msrb.mxu3 %v3573_v35  ;;  %v1457_v53 = vsel %vm3755_vm2, %v1452_v44, %v1456_v32  ;;  %v1512_v32 = vshll.u32 %v376_v23, 16  ;;  %1235 = vmatpush.bf16.msrb.mxu1 %v3545_v26 }
  0x46   : > { %2365 = vmatpush.bf16.msrb.mxu0 %v3569_v52  ;;  %v1735_v59 = vunpack.c.l.b16 %v1457_v53 }
  0x47   : > { %2075 = vrot.lane.b32.xlu2 %v3534_v1, %s3636_s10  ;;  %v1514_v35 = vrot.slane %v1512_v32, 5  ;;  %v393_v32 = vld [vmem:[%s3699_s7 + $0xf4] sm:$0xf] }
  0x49   : > { %v1515_v43 = vsel %vm3755_vm2, %v1510_v34, %v1514_v35 }
  0x4a   : > { %2366 = vmatpush.bf16.msrb.mxu0 %v3568_v12  ;;  %v1740_v50 = vunpack.c.l.b16 %v1515_v43 }
  0x4b   : > { %959 = vrot.lane.b32.xlu1 %v3535_v49, %s3636_s10  ;;  %v1472_v49 = vshll.u32 %v368_v42, 16 }
  0x4c   : > { %1855 = vmatmul.bf16.gmra.mxu2 %v1759_v45  ;;  %943 = vrot.lane.b32.xlu0 %v3519_v37, %s3636_s10  ;;  %v1462_v45 = vrot.slane %v1461_v40, 4  ;;  %v3572_v40 = vld [vmem:[%s4846_s3 + $0x50] sm:$0xff] }
  0x4d   : > { %v1474_v56 = vrot.slane %v1472_v49, 5  ;;  %2534 = vmatpush.bf16.msrb.mxu3 %v3572_v40  ;;  %v1568_v40 = vshll.u32 %v392_v30, 16 }
  0x4e   : > { %v1467_v54 = vsel %vm3755_vm2, %v1462_v45, %v1466_v46  ;;  %v1526_v46 = vshll.u32 %v381_v39, 16  ;;  %2367 = vmatpush.bf16.msrb.mxu0 %v3567_v41  ;;  %v1565_v39 = vshrl.u32 %v392_v30, 16  ;;  %v1574_v41 = vshll.u32 %v393_v32, 16 }
  0x4f   : > { %v1736_v60 = vunpack.c.l.b16 %v1467_v54  ;;  %v1475_v62 = vor.u32 %v1474_v56, %v1471_v55  ;;  %2077 = vrot.lane.b32.xlu2 %v3536_v27, %s3636_s10  ;;  %v1532_v54 = vrot.slane %v1530_v48, 4  ;;  %v382_v56 = vld [vmem:[%s3699_s7 + $0xc8] sm:$0xf] }
  0x50   : > { %v1528_v53 = vrot.slane %v1526_v46, 5  ;;  %v1567_v48 = vrot.slane %v1565_v39, 4 }
  0x51   : > { %v1762_v4 = vpack.c.b16 %v1736_v60, %v1735_v59  ;;  %v1476_v5 = vrot.slane %v1475_v62, 4  ;;  %v1536_v62 = vshll.u32 %v382_v56, 16  ;;  %v3510_v56 = vld [vmem:[%s3699_s7 + $0x30] sm:$0xff] }
  0x52   : > { %v1533_v61 = vor.u32 %v1532_v54, %v1528_v53  ;;  %v3565_v54 = vld [vmem:[%s4845_s2 + $0x98] sm:$0xff] }
  0x53   : > { %v1481_v10 = vsel %vm3755_vm2, %v1476_v5, %v1480_v57  ;;  %v3544_v57 = vld [vmem:[%s4845_s2 + $0x30] sm:$0xff]  ;;  %2047 = vrot.lane.b32.xlu1 %v3506_v58, %s3636_s10  ;;  %v1541_v5 = vshrl.u32 %v386_v63, 16 }
  0x54   : > { %945 = vrot.lane.b32.xlu0 %v3521_v2, %s3636_s10  ;;  %v1737_v17 = vunpack.c.l.b16 %v1481_v10  ;;  %1236 = vmatpush.bf16.msrb.mxu1 %v3544_v57  ;;  %v1534_v2 = vrot.slane %v1533_v61, 4  ;;  %v3566_v10 = vld [vmem:[%s4845_s2 + $0xa0] sm:$0xff] }
  0x55   : > { %2368 = vmatpush.bf16.msrb.mxu0 %v3566_v10 }
  0x56   : > { %v1763_v28 = vpack.c.b16 %v1738_v18, %v1737_v17 }
  0x58   : > { %1237 = vmatpush.bf16.msrb.mxu1 %v3543_v9 }
  0x59   : > { %2369 = vmatpush.bf16.msrb.mxu0 %v3565_v54 }
  0x5c   : > { %1860 = vmatmul.bf16.gmra.mxu2 %v1760_v8  ;;  %v374_v8 = vld [vmem:[%s3699_s7 + $0xa8] sm:$0xf]  ;;  %2051 = vrot.lane.b32.xlu0 %v3510_v56, %s3636_s10 }
  0x5d   : > { %v1493_v13 = vshrl.u32 %v374_v8, 16  ;;  %v1496_v14 = vshll.u32 %v374_v8, 16  ;;  %v1554_v8 = vshrl.u32 %v387_v0, 16 }
  0x5f   : > { %v1495_v19 = vrot.slane %v1493_v13, 4  ;;  %v1498_v20 = vrot.slane %v1496_v14, 5  ;;  %v1543_v13 = vrot.slane %v1541_v5, 4  ;;  %v1546_v14 = vrot.slane %v1544_v6, 5  ;;  %v3541_v5 = vld [vmem:[%s4845_s2 + $0x18] sm:$0xff] }
  0x60   : > { %v1556_v16 = vrot.slane %v1554_v8, 4  ;;  %v3508_v6 = vld [vmem:[%s3699_s7 + $0x18] sm:$0xff] }
  0x61   : > { %v1499_v29 = vor.u32 %v1498_v20, %v1495_v19  ;;  %v1547_v22 = vor.u32 %v1546_v14, %v1543_v13  ;;  %2049 = vrot.lane.b32.xlu2 %v3508_v6, %s3636_s10  ;;  %v3570_v6 = vld [vmem:[%s4846_s3 + $0x40] sm:$0xff] }
  0x62   : > { %v1557_v23 = vor.u32 %v1556_v16, %v1552_v15 }
  0x63   : > { %v1500_v33 = vrot.slane %v1499_v29, 4  ;;  %v1548_v26 = vrot.slane %v1547_v22, 4  ;;  %v400_v22 = vld [vmem:[%s3699_s7 + $0x110] sm:$0xf] }
  0x64   : > { %v1558_v27 = vrot.slane %v1557_v23, 4 }
  0x65   : > { %v1505_v42 = vsel %vm3755_vm2, %v1500_v33, %v1504_v21  ;;  %v388_v21 = vld [vmem:[%s3699_s7 + $0xe0] sm:$0xf]  ;;  %v1553_v34 = vsel %vm3755_vm2, %v1548_v26, %v1552_v15  ;;  %v3540_v26 = vld [vmem:[%s4845_s2 + $0x10] sm:$0xff] }
  0x66   : > { %v1739_v49 = vunpack.c.l.b16 %v1505_v42  ;;  %v1578_v42 = vshrl.u32 %v393_v32, 16  ;;  %v1743_v43 = vunpack.c.l.b16 %v1553_v34  ;;  %v1608_v32 = vshll.u32 %v400_v22, 16 }
  0x68   : > { %v1764_v59 = vpack.c.b16 %v1740_v50, %v1739_v49  ;;  %v1570_v49 = vrot.slane %v1568_v40, 5  ;;  %v1576_v50 = vrot.slane %v1574_v41, 5  ;;  %v1610_v40 = vrot.slane %v1608_v32, 5  ;;  %v3539_v41 = vld [vmem:[%s4845_s2 + $0x8] sm:$0xff] }
  0x6a   : > { %v1571_v58 = vor.u32 %v1570_v49, %v1567_v48  ;;  %v3538_v49 = vld [vmem:[%s4845_s2] sm:$0xff] }
  0x6c   : > { %1865 = vmatmul.bf16.gmra.mxu2 %v1761_v38  ;;  %v380_v38 = vld [vmem:[%s3699_s7 + $0xc0] sm:$0xf] }
  0x6d   : > { %v1517_v44 = vshrl.u32 %v380_v38, 16  ;;  %v1520_v45 = vshll.u32 %v380_v38, 16  ;;  %v3571_v38 = vld [vmem:[%s4846_s3 + $0x48] sm:$0xff] }
  0x6e   : > { %v3930_v47 = vpop.permute.xlu2 %947  ;;  %2535 = vmatpush.bf16.msrb.mxu3 %v3571_v38 }
  0x6f   : > { %3220 = vmatmul.msk.bf16.vlgmr.msra.gmra.mxu1 %vm985_vm3, %v3930_v47  ;;  %v1519_v51 = vrot.slane %v1517_v44, 4  ;;  %v1522_v52 = vrot.slane %v1520_v45, 5 }
  0x71   : > { %v1523_v60 = vor.u32 %v1522_v52, %v1519_v51  ;;  %v1580_v51 = vrot.slane %v1578_v42, 4  ;;  %v394_v52 = vld [vmem:[%s3699_s7 + $0xf8] sm:$0xf] }
  0x72   : > { %2536 = vmatpush.bf16.msrb.mxu3 %v3570_v6 }
  0x73   : > { %v1524_v1 = vrot.slane %v1523_v60, 4  ;;  %v1584_v60 = vshll.u32 %v394_v52, 16 }
  0x75   : > { %v1529_v11 = vsel %vm3755_vm2, %v1524_v1, %v1528_v53  ;;  %v1586_v0 = vrot.slane %v1584_v60, 5  ;;  %v398_v1 = vld [vmem:[%s3699_s7 + $0x108] sm:$0xf] }
  0x76   : > { %v2066_v17 = vpop.permute.xlu2 %2065  ;;  %v1741_v19 = vunpack.c.l.b16 %v1529_v11  ;;  %v1589_v9 = vshrl.u32 %v398_v1, 16  ;;  %v1592_v10 = vshll.u32 %v398_v1, 16 }
  0x7c   : > { %1870 = vmatmul.bf16.gmra.mxu2 %v1762_v4  ;;  %v1538_v4 = vrot.slane %v1536_v62, 5  ;;  %v1572_v62 = vrot.slane %v1571_v58, 4 }
  0x7e   : > { %v1539_v12 = vsel %vm3755_vm2, %v1534_v2, %v1538_v4  ;;  %v2068_v45 = vpop.permute.xlu2 %2067  ;;  %v399_v2 = vld [vmem:[%s3699_s7 + $0x10c] sm:$0xf]  ;;  %v1577_v7 = vsel %vm3755_vm2, %v1572_v62, %v1576_v50 }
  0x7f   : > { %v1742_v20 = vunpack.c.l.b16 %v1539_v12  ;;  %v1598_v11 = vshll.u32 %v399_v2, 16  ;;  %v1602_v12 = vshrl.u32 %v399_v2, 16  ;;  %v1745_v15 = vunpack.c.l.b16 %v1577_v7  ;;  %v3563_v7 = vld [vmem:[%s4845_s2 + $0x88] sm:$0xff] }
  0x85   : > { %v2064_v24 = vpop.permute.xlu1 %2063 }
  0x86   : > { %v2062_v25 = vpop.permute.xlu0 %2061 }
  0x87   : > { %3402 = vmatmul.msk.bf16.vlgmr.msra.gmra.mxu3 %vm985_vm3, %v2062_v25  ;;  %v1765_v25 = vpack.c.b16 %v1742_v20, %v1741_v19  ;;  %v2070_v13 = vpop.permute.xlu2 %2069  ;;  %v1594_v19 = vrot.slane %v1592_v10, 5  ;;  %v1600_v20 = vrot.slane %v1598_v11, 5 }
  0x8c   : > { %1875 = vmatmul.bf16.gmra.mxu2 %v1763_v28 }
  0x8d   : > { %v3962_v37 = vpop.permute.xlu1 %931 }
  0x8e   : > { %v930_v36 = vpop.permute.xlu0 %929 }
  0x8f   : > { %3211 = vmatmul.msk.bf16.vlgmr.msra.gmra.mxu0 %vm985_vm3, %v930_v36  ;;  %v3542_v36 = vld [vmem:[%s4845_s2 + $0x20] sm:$0xff]  ;;  %v2072_v58 = vpop.permute.xlu2 %2071 }
  0x90   : > { %1238 = vmatpush.bf16.msrb.mxu1 %v3542_v36  ;;  %v405_v36 = vld [vmem:[%s3699_s7 + $0x124] sm:$0xf] }
  0x91   : > { %v1626_v48 = vshrl.u32 %v405_v36, 16 }
  0x94   : > { %1239 = vmatpush.bf16.msrb.mxu1 %v3541_v5 }
  0x95   : > { %v3977_v55 = vpop.permute.xlu1 %949 }
  0x96   : > { %3221 = vmatmul.msk.bf16.gmra.mxu1 %vm985_vm3, %v3977_v55  ;;  %v4008_v29 = vpop.permute.xlu0 %933 }
  0x97   : > { %3403 = vmatmul.msk.bf16.gmra.mxu3 %vm985_vm3, %v2064_v24  ;;  %v1560_v24 = vshll.u32 %v388_v21, 16  ;;  %v1604_v21 = vrot.slane %v1602_v12, 4 }
  0x98   : > { %1240 = vmatpush.bf16.msrb.mxu1 %v3540_v26 }
  0x99   : > { %v1562_v28 = vrot.slane %v1560_v24, 5  ;;  %v3564_v24 = vld [vmem:[%s4845_s2 + $0x90] sm:$0xff]  ;;  %v1605_v30 = vor.u32 %v1604_v21, %v1600_v20 }
  0x9a   : > { %2370 = vmatpush.bf16.msrb.mxu0 %v3564_v24 }
  0x9b   : > { %v1563_v35 = vsel %vm3755_vm2, %v1558_v27, %v1562_v28  ;;  %v1606_v39 = vrot.slane %v1605_v30, 4  ;;  %v2074_v30 = vpop.permute.xlu2 %2073 }
  0x9c   : > { %1880 = vmatmul.bf16.gmra.mxu2 %v1764_v59  ;;  %v1744_v44 = vunpack.c.l.b16 %v1563_v35  ;;  %v1581_v59 = vor.u32 %v1580_v51, %v1576_v50  ;;  %v404_v35 = vld [vmem:[%s3699_s7 + $0x120] sm:$0xf]  ;;  %1241 = vmatpush.bf16.msrb.mxu1 %v3539_v41 }
  0x9d   : > { %v4002_v18 = vpop.permute.xlu1 %951  ;;  %v1611_v51 = vsel %vm3755_vm2, %v1606_v39, %v1610_v40  ;;  %v412_v40 = vld [vmem:[%s3699_s7 + $0x140] sm:$0xf] }
  0x9e   : > { %v1766_v57 = vpack.c.b16 %v1744_v44, %v1743_v43  ;;  %v4039_v61 = vpop.permute.xlu0 %935  ;;  %v1582_v63 = vrot.slane %v1581_v59, 4  ;;  %v1613_v43 = vshrl.u32 %v404_v35, 16  ;;  %v1616_v44 = vshll.u32 %v404_v35, 16  ;;  %2371 = vmatpush.bf16.msrb.mxu0 %v3563_v7  ;;  %v416_v7 = vld [vmem:[%s3699_s7 + $0x150] sm:$0xf] }
  0x9f   : > { %3212 = vmatmul.msk.bf16.gmra.mxu0 %vm985_vm3, %v3962_v37  ;;  %v1748_v62 = vunpack.c.l.b16 %v1611_v51  ;;  %v335_v51 = vld [vmem:[%s3699_s7 + $0xc] sm:$0xf] }
  0xa0   : > { %v1587_v8 = vsel %vm3755_vm2, %v1582_v63, %v1586_v0  ;;  %v1615_v52 = vrot.slane %v1613_v43, 4  ;;  %v1618_v54 = vrot.slane %v1616_v44, 5  ;;  %v406_v63 = vld [vmem:[%s3699_s7 + $0x128] sm:$0xf]  ;;  %1242 = vmatpush.bf16.msrb.mxu1 %v3538_v49  ;;  %v3516_v44 = vld [vmem:[%s3699_s7 + $0x78] sm:$0xff] }
  0xa1   : > { %v1746_v16 = vunpack.c.l.b16 %v1587_v8  ;;  %v1632_v5 = vshll.u32 %v406_v63, 16  ;;  %2057 = vrot.lane.b32.xlu0 %v3516_v44, %s3636_s10 }
  0xa2   : > { %v1619_v1 = vor.u32 %v1618_v54, %v1615_v52  ;;  %v336_v52 = vld [vmem:[%s3699_s7 + $0x10] sm:$0xf] }
  0xa3   : > { %v1767_v27 = vpack.c.b16 %v1746_v16, %v1745_v15  ;;  %v1634_v11 = vrot.slane %v1632_v5, 5  ;;  %v411_v15 = vld [vmem:[%s3699_s7 + $0x13c] sm:$0xf]  ;;  %v444_v16 = vrot.slane %v3635_v3, 4  ;;  %v3562_v5 = vld [vmem:[%s4845_s2 + $0x80] sm:$0xff] }
  0xa4   : > { %v1650_v26 = vshrl.u32 %v411_v15, 16  ;;  %2372 = vmatpush.bf16.msrb.mxu0 %v3562_v5 }
  0xa5   : > { %v4026_v46 = vpop.permute.xlu1 %953 }
  0xa6   : > { %3222 = vmatmul.msk.bf16.gmra.mxu1 %vm985_vm3, %v4002_v18  ;;  %v4072_v34 = vpop.permute.xlu0 %937  ;;  %v1652_v39 = vrot.slane %v1650_v26, 4 }
  0xa7   : > { %3404 = vmatmul.msk.bf16.gmra.mxu3 %vm985_vm3, %v2066_v17  ;;  %v1591_v17 = vrot.slane %v1589_v9, 4  ;;  %v1620_v9 = vrot.slane %v1619_v1, 4 }
  0xa9   : > { %v1595_v28 = vor.u32 %v1594_v19, %v1591_v17  ;;  %v447_v17 = vrot.slane %v3635_v3, 5 }
  0xab   : > { %v1596_v38 = vrot.slane %v1595_v28, 4 }
  0xac   : > { %1885 = vmatmul.bf16.gmra.mxu2 %v1765_v25  ;;  %v3512_v25 = vld [vmem:[%s3699_s7 + $0x48] sm:$0xff] }
  0xad   : > { %v4056_v14 = vpop.permute.xlu1 %955  ;;  %2053 = vrot.lane.b32.xlu1 %v3512_v25, %s3636_s10  ;;  %v1601_v50 = vsel %vm3755_vm2, %v1596_v38, %v1600_v20  ;;  %v1646_v25 = vshll.u32 %v411_v15, 16 }
  0xae   : > { %v1747_v60 = vunpack.c.l.b16 %v1601_v50  ;;  %v4104_v12 = vpop.permute.xlu0 %939  ;;  %v1656_v50 = vshll.u32 %v412_v40, 16 }
  0xaf   : > { %3213 = vmatmul.msk.bf16.gmra.mxu0 %vm985_vm3, %v4008_v29  ;;  %v4014_v33 = vpop.f32.mrf.mxu2  ;;  %v1648_v38 = vrot.slane %v1646_v25, 5 }
  0xb0   : > { %v1768_v8 = vpack.c.b16 %v1748_v62, %v1747_v60  ;;  %v479_v60 = vshrl.u32 %v336_v52, 16 }
  0xb1   : > { %v1653_v49 = vor.u32 %v1652_v39, %v1648_v38 }
  0xb2   : > { %v481_v15 = vrot.slane %v479_v60, 4 }
  0xb3   : > { %v1654_v1 = vrot.slane %v1653_v49, 4 }
  0xb5   : > { %v4090_v59 = vpop.permute.xlu1 %957 }
  0xb6   : > { %3223 = vmatmul.msk.bf16.gmra.mxu1 %vm985_vm3, %v4026_v46  ;;  %v4132_v62 = vpop.permute.xlu0 %941 }
  0xb7   : > { %v4031_v53 = vpop.f32.mrf.mxu2  ;;  %3405 = vmatmul.msk.bf16.gmra.mxu3 %vm985_vm3, %v2068_v45  ;;  %v1622_v45 = vshll.u32 %v405_v36, 16 }
  0xb9   : > { %v1624_v56 = vrot.slane %v1622_v45, 5 }
  0xbb   : > { %v1625_v20 = vsel %vm3755_vm2, %v1620_v9, %v1624_v56 }
  0xbc   : > { %1890 = vmatmul.bf16.gmra.mxu2 %v1766_v57  ;;  %v1628_v57 = vrot.slane %v1626_v48, 4  ;;  %v1749_v28 = vunpack.c.l.b16 %v1625_v20 }
  0xbd   : > { %v4118_v32 = vpop.permute.xlu1 %959 }
  0xbe   : > { %v1629_v2 = vor.u32 %v1628_v57, %v1624_v56  ;;  %v466_v56 = vshrl.u32 %v335_v51, 16  ;;  %v469_v57 = vshll.u32 %v335_v51, 16 }
  0xbf   : > { %3214 = vmatmul.msk.bf16.gmra.mxu0 %vm985_vm3, %v4039_v61  ;;  %v4045_v4 = vpop.f32.mrf.mxu2 }
  0xc0   : > { %v1630_v10 = vrot.slane %v1629_v2, 4  ;;  %v1658_v2 = vrot.slane %v1656_v50, 5 }
  0xc2   : > { %v1635_v21 = vsel %vm3755_vm2, %v1630_v10, %v1634_v11  ;;  %v468_v10 = vrot.slane %v466_v56, 4  ;;  %v471_v11 = vrot.slane %v469_v57, 5  ;;  %v1659_v20 = vsel %vm3755_vm2, %v1654_v1, %v1658_v2  ;;  %v342_v57 = vld [vmem:[%s3699_s7 + $0x28] sm:$0xf] }
  0xc3   : > { %v1750_v3 = vunpack.c.l.b16 %v1635_v21  ;;  %v337_v21 = vld [vmem:[%s3699_s7 + $0x14] sm:$0xf] }
  0xc5   : > { %v1769_v45 = vpack.c.b16 %v1750_v3, %v1749_v28  ;;  %v472_v28 = vor.u32 %v471_v11, %v468_v10  ;;  %v4162_v10 = vpop.permute.xlu0 %943  ;;  %v422_v11 = vld [vmem:[%s3699_s7 + $0x168] sm:$0xf] }
  0xc6   : > { %3224 = vmatmul.msk.bf16.gmra.mxu1 %vm985_vm3, %v4056_v14 }
  0xc7   : > { %v4061_v23 = vpop.f32.mrf.mxu2  ;;  %3406 = vmatmul.msk.bf16.gmra.mxu3 %vm985_vm3, %v2070_v13  ;;  %v410_v13 = vld [vmem:[%s3699_s7 + $0x138] sm:$0xf]  ;;  %v473_v49 = vrot.slane %v472_v28, 4  ;;  %v1685_v28 = vshrl.u32 %v422_v11, 16 }
  0xc8   : > { %v1637_v22 = vshrl.u32 %v410_v13, 16  ;;  %v1640_v24 = vshll.u32 %v410_v13, 16 }
  0xca   : > { %v1639_v35 = vrot.slane %v1637_v22, 4  ;;  %v1642_v36 = vrot.slane %v1640_v24, 5  ;;  %v1661_v22 = vshrl.u32 %v416_v7, 16  ;;  %v1664_v24 = vshll.u32 %v416_v7, 16 }
  0xcb   : > { %v499_v7 = vshll.u32 %v342_v57, 16 }
  0xcc   : > { %1895 = vmatmul.bf16.gmra.mxu2 %v1767_v27  ;;  %v448_v27 = vor.u32 %v447_v17, %v444_v16  ;;  %v1643_v48 = vor.u32 %v1642_v36, %v1639_v35  ;;  %v3514_v16 = vld [vmem:[%s3699_s7 + $0x60] sm:$0xff]  ;;  %v2076_v35 = vpop.permute.xlu2 %2075  ;;  %v1663_v39 = vrot.slane %v1661_v22, 4  ;;  %v1666_v40 = vrot.slane %v1664_v24, 5 }
  0xcd   : > { %2055 = vrot.lane.b32.xlu2 %v3514_v16, %s3636_s10 }
  0xce   : > { %v449_v41 = vrot.slane %v448_v27, 4  ;;  %v1644_v63 = vrot.slane %v1643_v48, 4 }
  0xcf   : > { %3215 = vmatmul.msk.bf16.gmra.mxu0 %vm985_vm3, %v4072_v34  ;;  %v4081_v42 = vpop.f32.mrf.mxu2 }
  0xd0   : > { %v454_v54 = vsel %vm3755_vm2, %v449_v41, %v447_v17  ;;  %v1649_v17 = vsel %vm3755_vm2, %v1644_v63, %v1648_v38  ;;  %v1752_v38 = vunpack.c.l.b16 %v1659_v20 }
  0xd1   : > { %v1123_v6 = vunpack.c.l.b16 %v454_v54  ;;  %v1751_v36 = vunpack.c.l.b16 %v1649_v17  ;;  %v3518_v54 = vld [vmem:[%s3699_s7 + $0x90] sm:$0xff] }
  0xd2   : > { %2059 = vrot.lane.b32.xlu1 %v3518_v54, %s3636_s10 }
  0xd3   : > { %v1155_v27 = vpack.c.b16 %v1123_v6, %v1123_v6  ;;  %v1770_v56 = vpack.c.b16 %v1752_v38, %v1751_v36 }
  0xd4   : > { %v2078_v54 = vpop.permute.xlu2 %2077 }
  0xd6   : > { %3225 = vmatmul.msk.bf16.gmra.mxu1 %vm985_vm3, %v4090_v59 }
  0xd7   : > { %v4095_v0 = vpop.f32.mrf.mxu2  ;;  %3407 = vmatmul.msk.bf16.gmra.mxu3 %vm985_vm3, %v2072_v58  ;;  %v475_v58 = vshll.u32 %v336_v52, 16  ;;  %v341_v52 = vld [vmem:[%s3699_s7 + $0x24] sm:$0xf] }
  0xd8   : > { %v490_v1 = vshrl.u32 %v341_v52, 16  ;;  %v493_v2 = vshll.u32 %v341_v52, 16 }
  0xd9   : > { %v477_v13 = vrot.slane %v475_v58, 5  ;;  %v1667_v58 = vor.u32 %v1666_v40, %v1663_v39 }
  0xda   : > { %v492_v22 = vrot.slane %v490_v1, 4  ;;  %v495_v24 = vrot.slane %v493_v2, 5 }
  0xdb   : > { %v482_v3 = vor.u32 %v481_v15, %v477_v13  ;;  %v478_v5 = vsel %vm3755_vm2, %v473_v49, %v477_v13  ;;  %v1668_v15 = vrot.slane %v1667_v58, 4 }
  0xdc   : > { %1900 = vmatmul.bf16.gmra.mxu2 %v1768_v8  ;;  %v417_v8 = vld [vmem:[%s3699_s7 + $0x154] sm:$0xf]  ;;  %v1125_v20 = vunpack.c.l.b16 %v478_v5 }
  0xdd   : > { %v1670_v25 = vshll.u32 %v417_v8, 16  ;;  %v1674_v26 = vshrl.u32 %v417_v8, 16  ;;  %v483_v50 = vrot.slane %v482_v3, 4  ;;  %v503_v8 = vshrl.u32 %v342_v57, 16 }
  0xde   : > { %v1688_v3 = vshll.u32 %v422_v11, 16 }
  0xdf   : > { %3216 = vmatmul.msk.bf16.gmra.mxu0 %vm985_vm3, %v4104_v12  ;;  %v4112_v19 = vpop.f32.mrf.mxu2  ;;  %v1672_v41 = vrot.slane %v1670_v25, 5  ;;  %v1676_v44 = vrot.slane %v1674_v26, 4  ;;  %v423_v25 = vld [vmem:[%s3699_s7 + $0x16c] sm:$0xf]  ;;  %v501_v26 = vrot.slane %v499_v7, 5 }
  0xe0   : > { %v1694_v39 = vshll.u32 %v423_v25, 16  ;;  %v1698_v40 = vshrl.u32 %v423_v25, 16  ;;  %v1690_v52 = vrot.slane %v1688_v3, 5 }
  0xe1   : > { %v1677_v60 = vor.u32 %v1676_v44, %v1672_v41  ;;  %v1673_v36 = vsel %vm3755_vm2, %v1668_v15, %v1672_v41  ;;  %v424_v41 = vld [vmem:[%s3699_s7 + $0x170] sm:$0xf]  ;;  %v347_v15 = vld [vmem:[%s3699_s7 + $0x3c] sm:$0xf] }
  0xe2   : > { %v1696_v58 = vrot.slane %v1694_v39, 5  ;;  %v1704_v11 = vshll.u32 %v424_v41, 16  ;;  %v517_v3 = vshll.u32 %v347_v15, 16 }
  0xe3   : > { %v1678_v16 = vrot.slane %v1677_v60, 4  ;;  %v1700_v60 = vrot.slane %v1698_v40, 4 }
  0xe4   : > { %v1706_v39 = vrot.slane %v1704_v11, 5 }
  0xe6   : > { %3226 = vmatmul.msk.bf16.gmra.mxu1 %vm985_vm3, %v4118_v32 }
  0xe7   : > { %v4123_v43 = vpop.f32.mrf.mxu2  ;;  %3408 = vmatmul.msk.bf16.gmra.mxu3 %vm985_vm3, %v2074_v30  ;;  %v485_v30 = vshll.u32 %v337_v21, 16 }
  0xe9   : > { %v487_v51 = vrot.slane %v485_v30, 5 }
  0xeb   : > { %v488_v6 = vsel %vm3755_vm2, %v483_v50, %v487_v51  ;;  %v1687_v51 = vrot.slane %v1685_v28, 4  ;;  %v514_v28 = vshrl.u32 %v347_v15, 16  ;;  %v353_v15 = vld [vmem:[%s3699_s7 + $0x54] sm:$0xf] }
  0xec   : > { %1905 = vmatmul.bf16.gmra.mxu2 %v1769_v45  ;;  %v418_v45 = vld [vmem:[%s3699_s7 + $0x158] sm:$0xf]  ;;  %v1126_v21 = vunpack.c.l.b16 %v488_v6  ;;  %v4170_v30 = vpop.f32.mrf.mxu1 }
  0xed   : > { %v1680_v63 = vshll.u32 %v418_v45, 16  ;;  %4852 = vst [vmem:[#allocation3_spill] sm:$0xff] %v4170_v30  ;;  %v496_v45 = vor.u32 %v495_v24, %v492_v22  ;;  %v1691_v6 = vor.u32 %v1690_v52, %v1687_v51  ;;  %v519_v51 = vrot.slane %v517_v3, 5 }
  0xee   : > { %v4177_v44 = vpack.c.b16 %v1126_v21, %v1125_v20 }
  0xef   : > { %3217 = vmatmul.msk.bf16.gmra.mxu0 %vm985_vm3, %v4132_v62  ;;  %v4141_v9 = vpop.f32.mrf.mxu2  ;;  %v1682_v17 = vrot.slane %v1680_v63, 5  ;;  %v497_v1 = vrot.slane %v496_v45, 4  ;;  %v1692_v24 = vrot.slane %v1691_v6, 4 }
  0xf1   : > { %v1683_v38 = vsel %vm3755_vm2, %v1678_v16, %v1682_v17  ;;  %v348_v16 = vld [vmem:[%s3699_s7 + $0x40] sm:$0xf]  ;;  %v502_v21 = vsel %vm3755_vm2, %v497_v1, %v501_v26 }
  0xf2   : > { %v1754_v57 = vunpack.c.l.b16 %v1683_v38  ;;  %v1127_v40 = vunpack.c.l.b16 %v502_v21 }
  0xf4   : > { %v4188_v20 = vpop.f32.mrf.mxu1 }
  0xf5   : > { %4855 = vst [vmem:[#allocation6_spill] sm:$0xff] %v4188_v20 }
  0xf6   : > { %1243 = vmatmul.bf16.vlgmr.msrb.gmra.mxu1 %v1155_v27  ;;  %v505_v27 = vrot.slane %v503_v8, 4  ;;  %v1701_v8 = vor.u32 %v1700_v60, %v1696_v58 }
  0xf7   : > { %v4151_v48 = vpop.f32.mrf.mxu2  ;;  %3409 = vmatmul.msk.bf16.gmra.mxu3 %vm985_vm3, %v2076_v35  ;;  %v343_v35 = vld [vmem:[%s3699_s7 + $0x2c] sm:$0xf] }
  0xf8   : > { %v506_v49 = vor.u32 %v505_v27, %v501_v26  ;;  %v509_v50 = vshll.u32 %v343_v35, 16  ;;  %v4196_v27 = vpop.permute.xlu0 %945  ;;  %v523_v35 = vshll.u32 %v348_v16, 16  ;;  %v1702_v38 = vrot.slane %v1701_v8, 4 }
  0xfa   : > { %v507_v2 = vrot.slane %v506_v49, 4  ;;  %v511_v5 = vrot.slane %v509_v50, 5  ;;  %v1697_v49 = vsel %vm3755_vm2, %v1692_v24, %v1696_v58  ;;  %v516_v50 = vrot.slane %v514_v28, 4 }
  0xfb   : > { %v525_v52 = vrot.slane %v523_v35, 5  ;;  %v1755_v1 = vunpack.c.l.b16 %v1697_v49  ;;  %v538_v35 = vshrl.u32 %v353_v15, 16 }
  0xfc   : > { %1910 = vmatmul.bf16.gmra.mxu2 %v1770_v56  ;;  %v1753_v56 = vunpack.c.l.b16 %v1673_v36  ;;  %v512_v22 = vsel %vm3755_vm2, %v507_v2, %v511_v5  ;;  %v527_v36 = vshrl.u32 %v348_v16, 16  ;;  %v520_v6 = vor.u32 %v519_v51, %v516_v50  ;;  %v354_v16 = vld [vmem:[%s3699_s7 + $0x58] sm:$0xf] }
  0xfd   : > { %v1128_v45 = vunpack.c.l.b16 %v512_v22  ;;  %v540_v50 = vrot.slane %v538_v35, 4 }
  0xfe   : > { %v1771_v7 = vpack.c.b16 %v1754_v57, %v1753_v56  ;;  %v1707_v56 = vsel %vm3755_vm2, %v1702_v38, %v1706_v39  ;;  %v349_v57 = vld [vmem:[%s3699_s7 + $0x44] sm:$0xf]  ;;  %v521_v22 = vrot.slane %v520_v6, 4  ;;  %v547_v38 = vshll.u32 %v354_v16, 16  ;;  %v355_v6 = vld [vmem:[%s3699_s7 + $0x5c] sm:$0xf] }
  0xff   : > { %3218 = vmatmul.msk.bf16.gmra.mxu0 %vm985_vm3, %v4162_v10  ;;  %v4168_v13 = vpop.f32.mrf.mxu2  ;;  %v4209_v41 = vpack.c.b16 %v1128_v45, %v1127_v40  ;;  %v1756_v58 = vunpack.c.l.b16 %v1707_v56  ;;  %v533_v8 = vshll.u32 %v349_v57, 16  ;;  %v551_v39 = vshrl.u32 %v354_v16, 16 }
 0x100   : > { %4851 = vst [vmem:[#allocation2_spill] sm:$0xff] %v4168_v13 }
 0x101   : > { %v1772_v21 = vpack.c.b16 %v1756_v58, %v1755_v1  ;;  %v535_v28 = vrot.slane %v533_v8, 5  ;;  %v553_v56 = vrot.slane %v551_v39, 4  ;;  %v2048_v39 = vpop.permute.xlu1 %2047 }
 0x106   : > { %1248 = vmatmul.bf16.gmra.mxu1 %v4177_v44 }
 0x107   : > { %v4181_v63 = vpop.f32.mrf.mxu2  ;;  %3410 = vmatmul.msk.bf16.gmra.mxu3 %vm985_vm3, %v2078_v54  ;;  %v529_v54 = vrot.slane %v527_v36, 4  ;;  %v541_v36 = vshll.u32 %v353_v15, 16  ;;  %v557_v15 = vshll.u32 %v355_v6, 16 }
 0x108   : > { %4853 = vst [vmem:[#allocation4_spill] sm:$0xff] %v4181_v63  ;;  %v409_v63 = vld [vmem:[%s3699_s7 + $0x134] sm:$0xf] }
 0x109   : > { %v543_v51 = vrot.slane %v541_v36, 5  ;;  %v559_v35 = vrot.slane %v557_v15, 5  ;;  %v359_v36 = vld [vmem:[%s3699_s7 + $0x6c] sm:$0xf] }
 0x10a   : > { %v4186_v17 = vpop.f32.mrf.mxu3 }
 0x10b   : > { %4854 = vst [vmem:[#allocation5_spill] sm:$0xff] %v4186_v17  ;;  %v544_v8 = vor.u32 %v543_v51, %v540_v50  ;;  %v562_v51 = vshrl.u32 %v359_v36, 16 }
 0x10c   : > { %v4194_v25 = vpop.f32.mrf.mxu0  ;;  %1915 = vmatmul.bf16.gmra.mxu2 %v1771_v7  ;;  %v530_v7 = vor.u32 %v529_v54, %v525_v52  ;;  %v549_v54 = vrot.slane %v547_v38, 5  ;;  %v360_v38 = vld [vmem:[%s3699_s7 + $0x70] sm:$0xf] }
 0x10e   : > { %v531_v24 = vrot.slane %v530_v7, 4 }
 0x10f   : > { %3219 = vmatmul.msk.bf16.gmra.mxu0 %vm985_vm3, %v4196_v27  ;;  %v4200_v26 = vpop.f32.mrf.mxu2 }
 0x110   : > { %4856 = vst [vmem:[#allocation7_spill] sm:$0xff] %v4200_v26  ;;  %v536_v49 = vsel %vm3755_vm2, %v531_v24, %v535_v28  ;;  %v545_v24 = vrot.slane %v544_v8, 4  ;;  %v403_v26 = vld [vmem:[%s3699_s7 + $0x11c] sm:$0xf] }
 0x111   : > { %v1130_v58 = vunpack.c.l.b16 %v536_v49 }
 0x112   : > { %v4207_v60 = vpop.f32.mrf.mxu3  ;;  %v550_v49 = vsel %vm3755_vm2, %v545_v24, %v549_v54 }
 0x113   : > { %4857 = vst [vmem:[#allocation8_spill] sm:$0xff] %v4207_v60  ;;  %v4213_v5 = vpop.f32.mrf.mxu1 }
 0x114   : > { %v4211_v2 = vpop.f32.mrf.mxu0  ;;  %4858 = vst [vmem:[#allocation9_spill] sm:$0xff] %v4213_v5 }
 0x116   : > { %1253 = vmatmul.bf16.gmra.mxu1 %v4209_v41 }
 0x117   : > { %v4216_v11 = vpop.f32.mrf.mxu2  ;;  %3487 = vmatmul.msk.bf16.vlgmr.msrb.gmra.mxu3 %vm985_vm3, %v3962_v37  ;;  %v526_v37 = vsel %vm3755_vm2, %v521_v22, %v525_v52  ;;  %v554_v52 = vor.u32 %v553_v56, %v549_v54  ;;  %v565_v56 = vshll.u32 %v359_v36, 16  ;;  %v564_v54 = vrot.slane %v562_v51, 4  ;;  %v361_v36 = vld [vmem:[%s3699_s7 + $0x74] sm:$0xf] }
 0x118   : > { %4859 = vst [vmem:[#allocation10_spill] sm:$0xff] %v4216_v11  ;;  %v1129_v1 = vunpack.c.l.b16 %v526_v37  ;;  %v391_v11 = vld [vmem:[%s3699_s7 + $0xec] sm:$0xf] }
 0x119   : > { %v555_v28 = vrot.slane %v554_v52, 4  ;;  %v567_v24 = vrot.slane %v565_v56, 5 }
 0x11a   : > { %v4222_v3 = vpop.f32.mrf.mxu3  ;;  %v1158_v16 = vpack.c.b16 %v1130_v58, %v1129_v1  ;;  %v571_v1 = vshll.u32 %v360_v38, 16  ;;  %v575_v58 = vshrl.u32 %v360_v38, 16 }
 0x11b   : > { %4860 = vst [vmem:[#allocation11_spill] sm:$0xff] %v4222_v3  ;;  %v4226_v45 = vpop.f32.mrf.mxu1  ;;  %v560_v50 = vsel %vm3755_vm2, %v555_v28, %v559_v35 }
 0x11c   : > { %v4224_v40 = vpop.f32.mrf.mxu0  ;;  %4861 = vst [vmem:[#allocation12_spill] sm:$0xff] %v4226_v45  ;;  %1920 = vmatmul.bf16.gmra.mxu2 %v1772_v21  ;;  %v1132_v52 = vunpack.c.l.b16 %v560_v50  ;;  %v573_v28 = vrot.slane %v571_v1, 5  ;;  %v577_v35 = vrot.slane %v575_v58, 4  ;;  %v2050_v58 = vpop.permute.xlu2 %2049 }
 0x11e   : > { %v578_v45 = vor.u32 %v577_v35, %v573_v28 }
 0x11f   : > { %v4232_v57 = vpop.f32.mrf.mxu2  ;;  %2373 = vmatmul.bf16.vlgmr.msrb.gmra.mxu0 %v4177_v44 }
 0x120   : > { %4862 = vst [vmem:[#allocation13_spill] sm:$0xff] %v4232_v57  ;;  %v579_v56 = vrot.slane %v578_v45, 4 }
 0x122   : > { %v4236_v7 = vpop.f32.mrf.mxu3 }
 0x123   : > { %4863 = vst [vmem:[#allocation14_spill] sm:$0xff] %v4236_v7  ;;  %v4240_v22 = vpop.f32.mrf.mxu1 }
 0x124   : > { %v4238_v21 = vpop.f32.mrf.mxu0  ;;  %4864 = vst [vmem:[#allocation15_spill] sm:$0xff] %v4240_v22 }
 0x126   : > { %1258 = vmatmul.bf16.gmra.mxu1 %v1158_v16 }
 0x127   : > { %v4242_v44 = vpop.f32.mrf.mxu2  ;;  %3488 = vmatmul.msk.bf16.gmra.mxu3 %vm985_vm3, %v4008_v29  ;;  %v1131_v29 = vunpack.c.l.b16 %v550_v49 }
 0x128   : > { %4865 = vst [vmem:[#allocation16_spill] sm:$0xff] %v4242_v44 }
 0x129   : > { %v4265_v22 = vpack.c.b16 %v1132_v52, %v1131_v29  ;;  %v365_v29 = vld [vmem:[%s3699_s7 + $0x84] sm:$0xf]  ;;  %v366_v52 = vld [vmem:[%s3699_s7 + $0x88] sm:$0xf] }
 0x12a   : > { %v4248_v37 = vpop.f32.mrf.mxu3  ;;  %v589_v45 = vshll.u32 %v365_v29, 16 }
 0x12b   : > { %4866 = vst [vmem:[#allocation17_spill] sm:$0xff] %v4248_v37  ;;  %v4256_v8 = vpop.f32.mrf.mxu1  ;;  %v367_v37 = vld [vmem:[%s3699_s7 + $0x8c] sm:$0xf] }
 0x12c   : > { %v4254_v6 = vpop.f32.mrf.mxu0  ;;  %4867 = vst [vmem:[#allocation18_spill] sm:$0xff] %v4256_v8  ;;  %3395 = vmatmul.msk.bf16.vlgmr.msrb.gmra.mxu2 %vm985_vm3, %v2048_v39  ;;  %v568_v8 = vor.u32 %v567_v24, %v564_v54  ;;  %v581_v39 = vshll.u32 %v361_v36, 16 }
 0x12e   : > { %v569_v51 = vrot.slane %v568_v8, 4  ;;  %v583_v1 = vrot.slane %v581_v39, 5  ;;  %v595_v8 = vshll.u32 %v366_v52, 16  ;;  %v599_v39 = vshrl.u32 %v366_v52, 16 }
 0x12f   : > { %v4259_v15 = vpop.f32.mrf.mxu2  ;;  %2378 = vmatmul.bf16.gmra.mxu0 %v4209_v41 }
 0x130   : > { %4868 = vst [vmem:[#allocation19_spill] sm:$0xff] %v4259_v15  ;;  %v574_v24 = vsel %vm3755_vm2, %v569_v51, %v573_v28  ;;  %v584_v35 = vsel %vm3755_vm2, %v579_v56, %v583_v1  ;;  %v591_v51 = vrot.slane %v589_v45, 5  ;;  %v597_v56 = vrot.slane %v595_v8, 5 }
 0x131   : > { %v1134_v5 = vunpack.c.l.b16 %v584_v35  ;;  %v601_v1 = vrot.slane %v599_v39, 4  ;;  %v372_v35 = vld [vmem:[%s3699_s7 + $0xa0] sm:$0xf]  ;;  %v2052_v39 = vpop.permute.xlu0 %2051 }
 0x132   : > { %v4263_v38 = vpop.f32.mrf.mxu3 }
 0x133   : > { %4869 = vst [vmem:[#allocation20_spill] sm:$0xff] %v4263_v38  ;;  %v4269_v50 = vpop.f32.mrf.mxu1  ;;  %v602_v7 = vor.u32 %v601_v1, %v597_v56 }
 0x134   : > { %v4267_v49 = vpop.f32.mrf.mxu0  ;;  %4870 = vst [vmem:[#allocation21_spill] sm:$0xff] %v4269_v50 }
 0x135   : > { %v603_v45 = vrot.slane %v602_v7, 4 }
 0x136   : > { %1263 = vmatmul.bf16.gmra.mxu1 %v4265_v22 }
 0x137   : > { %v4272_v41 = vpop.f32.mrf.mxu2  ;;  %3489 = vmatmul.msk.bf16.gmra.mxu3 %vm985_vm3, %v4039_v61  ;;  %v586_v61 = vshrl.u32 %v365_v29, 16 }
 0x138   : > { %4871 = vst [vmem:[#allocation22_spill] sm:$0xff] %v4272_v41 }
 0x139   : > { %v588_v28 = vrot.slane %v586_v61, 4 }
 0x13a   : > { %v4278_v54 = vpop.f32.mrf.mxu3 }
 0x13b   : > { %4872 = vst [vmem:[#allocation23_spill] sm:$0xff] %v4278_v54  ;;  %v4286_v50 = vpop.f32.mrf.mxu1  ;;  %v1133_v54 = vunpack.c.l.b16 %v574_v24  ;;  %v592_v52 = vor.u32 %v591_v51, %v588_v28  ;;  %v371_v24 = vld [vmem:[%s3699_s7 + $0x9c] sm:$0xf]  ;;  %v619_v28 = vshll.u32 %v372_v35, 16  ;;  %v623_v51 = vshrl.u32 %v372_v35, 16 }
 0x13c   : > { %v4284_v36 = vpop.f32.mrf.mxu0  ;;  %4873 = vst [vmem:[#allocation24_spill] sm:$0xff] %v4286_v50  ;;  %3396 = vmatmul.msk.bf16.gmra.mxu2 %vm985_vm3, %v2050_v58 }
 0x13d   : > { %v1160_v50 = vpack.c.b16 %v1134_v5, %v1133_v54  ;;  %v593_v61 = vrot.slane %v592_v52, 4  ;;  %v610_v54 = vshrl.u32 %v371_v24, 16 }
 0x13f   : > { %v4289_v38 = vpop.f32.mrf.mxu2  ;;  %2383 = vmatmul.bf16.gmra.mxu0 %v1158_v16 }
 0x140   : > { %4874 = vst [vmem:[#allocation25_spill] sm:$0xff] %v4289_v38  ;;  %v605_v38 = vshll.u32 %v367_v37, 16 }
 0x142   : > { %v4292_v20 = vpop.f32.mrf.mxu3  ;;  %v607_v8 = vrot.slane %v605_v38, 5  ;;  %v612_v38 = vrot.slane %v610_v54, 4 }
 0x143   : > { %4875 = vst [vmem:[#allocation26_spill] sm:$0xff] %v4292_v20  ;;  %v4296_v29 = vpop.f32.mrf.mxu1  ;;  %v613_v20 = vshll.u32 %v371_v24, 16 }
 0x144   : > { %v4294_v58 = vpop.f32.mrf.mxu0  ;;  %4876 = vst [vmem:[#allocation27_spill] sm:$0xff] %v4296_v29  ;;  %v608_v7 = vsel %vm3755_vm2, %v603_v45, %v607_v8  ;;  %v621_v29 = vrot.slane %v619_v28, 5 }
 0x145   : > { %v615_v52 = vrot.slane %v613_v20, 5 }
 0x146   : > { %1268 = vmatmul.bf16.gmra.mxu1 %v1160_v50 }
 0x147   : > { %v4298_v16 = vpop.f32.mrf.mxu2  ;;  %3490 = vmatmul.msk.bf16.gmra.mxu3 %vm985_vm3, %v4072_v34  ;;  %v598_v34 = vsel %vm3755_vm2, %v593_v61, %v597_v56  ;;  %v616_v30 = vor.u32 %v615_v52, %v612_v38 }
 0x148   : > { %4877 = vst [vmem:[#allocation28_spill] sm:$0xff] %v4298_v16  ;;  %v1135_v35 = vunpack.c.l.b16 %v598_v34  ;;  %v1136_v16 = vunpack.c.l.b16 %v608_v7  ;;  %v378_v34 = vld [vmem:[%s3699_s7 + $0xb8] sm:$0xf]  ;;  %v2054_v7 = vpop.permute.xlu1 %2053 }
 0x149   : > { %v617_v8 = vrot.slane %v616_v30, 4  ;;  %v643_v52 = vshll.u32 %v378_v34, 16 }
 0x14a   : > { %v4304_v5 = vpop.f32.mrf.mxu3  ;;  %v1161_v41 = vpack.c.b16 %v1136_v16, %v1135_v35  ;;  %v647_v35 = vshrl.u32 %v378_v34, 16 }
 0x14b   : > { %4878 = vst [vmem:[#allocation29_spill] sm:$0xff] %v4304_v5  ;;  %v4308_v1 = vpop.f32.mrf.mxu1  ;;  %v625_v5 = vrot.slane %v623_v51, 4  ;;  %v377_v51 = vld [vmem:[%s3699_s7 + $0xb4] sm:$0xf]  ;;  %v622_v16 = vsel %vm3755_vm2, %v617_v8, %v621_v29 }
 0x14c   : > { %v4306_v37 = vpop.f32.mrf.mxu0  ;;  %4879 = vst [vmem:[#allocation30_spill] sm:$0xff] %v4308_v1  ;;  %3397 = vmatmul.msk.bf16.gmra.mxu2 %vm985_vm3, %v2052_v39  ;;  %v373_v1 = vld [vmem:[%s3699_s7 + $0xa4] sm:$0xf]  ;;  %v634_v30 = vshrl.u32 %v377_v51, 16 }
 0x14d   : > { %v626_v56 = vor.u32 %v625_v5, %v621_v29  ;;  %v629_v61 = vshll.u32 %v373_v1, 16  ;;  %v637_v1 = vshll.u32 %v377_v51, 16 }
 0x14e   : > { %v636_v29 = vrot.slane %v634_v30, 4 }
 0x14f   : > { %v4315_v24 = vpop.f32.mrf.mxu2  ;;  %2388 = vmatmul.bf16.gmra.mxu0 %v4265_v22  ;;  %v627_v54 = vrot.slane %v626_v56, 4  ;;  %v631_v28 = vrot.slane %v629_v61, 5  ;;  %v639_v8 = vrot.slane %v637_v1, 5 }
 0x150   : > { %4880 = vst [vmem:[#allocation31_spill] sm:$0xff] %v4315_v24 }
 0x151   : > { %v632_v5 = vsel %vm3755_vm2, %v627_v54, %v631_v28  ;;  %v649_v54 = vrot.slane %v647_v35, 4  ;;  %v379_v28 = vld [vmem:[%s3699_s7 + $0xbc] sm:$0xf]  ;;  %v384_v35 = vld [vmem:[%s3699_s7 + $0xd0] sm:$0xf] }
 0x152   : > { %v4319_v39 = vpop.f32.mrf.mxu3  ;;  %v653_v24 = vshll.u32 %v379_v28, 16 }
 0x153   : > { %4881 = vst [vmem:[#allocation32_spill] sm:$0xff] %v4319_v39  ;;  %v4323_v20 = vpop.f32.mrf.mxu1  ;;  %v645_v39 = vrot.slane %v643_v52, 5  ;;  %v2056_v52 = vpop.permute.xlu2 %2055 }
 0x154   : > { %v4321_v45 = vpop.f32.mrf.mxu0  ;;  %4882 = vst [vmem:[#allocation33_spill] sm:$0xff] %v4323_v20  ;;  %v1138_v20 = vunpack.c.l.b16 %v632_v5  ;;  %v655_v1 = vrot.slane %v653_v24, 5 }
 0x156   : > { %1273 = vmatmul.bf16.gmra.mxu1 %v1161_v41 }
 0x157   : > { %v4325_v22 = vpop.f32.mrf.mxu2  ;;  %3491 = vmatmul.msk.bf16.gmra.mxu3 %vm985_vm3, %v4104_v12  ;;  %v1137_v12 = vunpack.c.l.b16 %v622_v16 }
 0x158   : > { %4883 = vst [vmem:[#allocation34_spill] sm:$0xff] %v4325_v22  ;;  %v640_v22 = vor.u32 %v639_v8, %v636_v29 }
 0x159   : > { %v4347_v34 = vpack.c.b16 %v1138_v20, %v1137_v12  ;;  %v383_v20 = vld [vmem:[%s3699_s7 + $0xcc] sm:$0xf] }
 0x15a   : > { %v4331_v38 = vpop.f32.mrf.mxu3  ;;  %v641_v5 = vrot.slane %v640_v22, 4  ;;  %v661_v24 = vshll.u32 %v383_v20, 16  ;;  %v667_v22 = vshll.u32 %v384_v35, 16 }
 0x15b   : > { %4884 = vst [vmem:[#allocation35_spill] sm:$0xff] %v4331_v38  ;;  %v4339_v61 = vpop.f32.mrf.mxu1 }
 0x15c   : > { %v4337_v56 = vpop.f32.mrf.mxu0  ;;  %4885 = vst [vmem:[#allocation36_spill] sm:$0xff] %v4339_v61  ;;  %3398 = vmatmul.msk.bf16.gmra.mxu2 %vm985_vm3, %v2054_v7  ;;  %v650_v61 = vor.u32 %v649_v54, %v645_v39  ;;  %v646_v29 = vsel %vm3755_vm2, %v641_v5, %v645_v39  ;;  %v663_v5 = vrot.slane %v661_v24, 5 }
 0x15e   : > { %v651_v30 = vrot.slane %v650_v61, 4  ;;  %v671_v61 = vshrl.u32 %v384_v35, 16 }
 0x15f   : > { %v4342_v38 = vpop.f32.mrf.mxu2  ;;  %2393 = vmatmul.bf16.gmra.mxu0 %v1160_v50 }
 0x160   : > { %4886 = vst [vmem:[#allocation37_spill] sm:$0xff] %v4342_v38  ;;  %v656_v8 = vsel %vm3755_vm2, %v651_v30, %v655_v1  ;;  %v669_v30 = vrot.slane %v667_v22, 5  ;;  %v673_v1 = vrot.slane %v671_v61, 4 }
 0x162   : > { %v4345_v51 = vpop.f32.mrf.mxu3 }
 0x163   : > { %4887 = vst [vmem:[#allocation38_spill] sm:$0xff] %v4345_v51  ;;  %v4351_v16 = vpop.f32.mrf.mxu1  ;;  %v1140_v51 = vunpack.c.l.b16 %v656_v8  ;;  %v389_v8 = vld [vmem:[%s3699_s7 + $0xe4] sm:$0xf] }
 0x164   : > { %v4349_v7 = vpop.f32.mrf.mxu0  ;;  %4889 = vst [vmem:[#allocation40_spill] sm:$0xff] %v4351_v16  ;;  %v685_v3 = vshll.u32 %v389_v8, 16 }
 0x165   : > { %4888 = vst [vmem:[#allocation39_spill] sm:$0xff] %v4349_v7 }
 0x166   : > { %1278 = vmatmul.bf16.gmra.mxu1 %v4347_v34 }
 0x167   : > { %v4354_v50 = vpop.f32.mrf.mxu2  ;;  %3492 = vmatmul.msk.bf16.gmra.mxu3 %vm985_vm3, %v4132_v62  ;;  %v658_v62 = vshrl.u32 %v383_v20, 16 }
 0x168   : > { %4890 = vst [vmem:[#allocation41_spill] sm:$0xff] %v4354_v50  ;;  %v385_v50 = vld [vmem:[%s3699_s7 + $0xd4] sm:$0xf] }
 0x169   : > { %v660_v39 = vrot.slane %v658_v62, 4  ;;  %v390_v62 = vld [vmem:[%s3699_s7 + $0xe8] sm:$0xf] }
 0x16a   : > { %v4360_v12 = vpop.f32.mrf.mxu3 }
 0x16b   : > { %4891 = vst [vmem:[#allocation42_spill] sm:$0xff] %v4360_v12  ;;  %v4368_v28 = vpop.f32.mrf.mxu1  ;;  %v1139_v12 = vunpack.c.l.b16 %v646_v29  ;;  %v664_v35 = vor.u32 %v663_v5, %v660_v39  ;;  %v691_v39 = vshll.u32 %v390_v62, 16 }
 0x16c   : > { %v4366_v54 = vpop.f32.mrf.mxu0  ;;  %4893 = vst [vmem:[#allocation44_spill] sm:$0xff] %v4368_v28  ;;  %3399 = vmatmul.msk.bf16.gmra.mxu2 %vm985_vm3, %v2056_v52 }
 0x16d   : > { %4892 = vst [vmem:[#allocation43_spill] sm:$0xff] %v4366_v54  ;;  %v4376_v28 = vpack.c.b16 %v1140_v51, %v1139_v12  ;;  %v665_v24 = vrot.slane %v664_v35, 4  ;;  %v2058_v12 = vpop.permute.xlu0 %2057 }
 0x16f   : > { %v4371_v16 = vpop.f32.mrf.mxu2  ;;  %2398 = vmatmul.bf16.gmra.mxu0 %v1161_v41  ;;  %v677_v41 = vshll.u32 %v385_v50, 16  ;;  %v695_v50 = vshrl.u32 %v390_v62, 16 }
 0x170   : > { %4894 = vst [vmem:[#allocation45_spill] sm:$0xff] %v4371_v16  ;;  %v674_v16 = vor.u32 %v673_v1, %v669_v30 }
 0x171   : > { %v679_v51 = vrot.slane %v677_v41, 5  ;;  %v687_v41 = vrot.slane %v685_v3, 5 }
 0x172   : > { %v4374_v38 = vpop.f32.mrf.mxu3  ;;  %v675_v22 = vrot.slane %v674_v16, 4 }
 0x173   : > { %4895 = vst [vmem:[#allocation46_spill] sm:$0xff] %v4374_v38  ;;  %v4380_v20 = vpop.f32.mrf.mxu1  ;;  %v682_v38 = vshrl.u32 %v389_v8, 16 }
 0x174   : > { %v4378_v52 = vpop.f32.mrf.mxu0  ;;  %v680_v16 = vsel %vm3755_vm2, %v675_v22, %v679_v51 }
 0x175   : > { %4896 = vst [vmem:[#allocation47_spill] sm:$0xff] %v4378_v52  ;;  %v684_v35 = vrot.slane %v682_v38, 4  ;;  %v1142_v15 = vunpack.c.l.b16 %v680_v16  ;;  %v396_v16 = vld [vmem:[%s3699_s7 + $0x100] sm:$0xf] }
 0x176   : > { %1283 = vmatmul.bf16.gmra.mxu1 %v4376_v28 }
 0x177   : > { %v4383_v29 = vpop.f32.mrf.mxu2  ;;  %3493 = vmatmul.msk.bf16.gmra.mxu3 %vm985_vm3, %v4162_v10  ;;  %v670_v10 = vsel %vm3755_vm2, %v665_v24, %v669_v30  ;;  %v688_v60 = vor.u32 %v687_v41, %v684_v35  ;;  %v701_v24 = vshll.u32 %v391_v11, 16  ;;  %v2060_v35 = vpop.permute.xlu1 %2059 }
 0x178   : > { %4897 = vst [vmem:[#allocation48_spill] sm:$0xff] %v4383_v29  ;;  %v697_v29 = vrot.slane %v695_v50, 4  ;;  %v1141_v62 = vunpack.c.l.b16 %v670_v10  ;;  %v395_v10 = vld [vmem:[%s3699_s7 + $0xfc] sm:$0xf] }
 0x179   : > { %v689_v51 = vrot.slane %v688_v60, 4  ;;  %v703_v50 = vrot.slane %v701_v24, 5  ;;  %v3537_v60 = vld [vmem:[%s3699_s7 + $0x174] sm:$0xff]  ;;  %v706_v41 = vshrl.u32 %v395_v10, 16  ;;  %v719_v24 = vshrl.u32 %v396_v16, 16 }
 0x17a   : > { %v4389_v61 = vpop.f32.mrf.mxu3  ;;  %v1164_v22 = vpack.c.b16 %v1142_v15, %v1141_v62  ;;  %v709_v62 = vshll.u32 %v395_v10, 16  ;;  %2500 = vrot.lane.b32.xlu2 %v3537_v60, %s3636_s10 }
 0x17b   : > { %4898 = vst [vmem:[#allocation49_spill] sm:$0xff] %v4389_v61  ;;  %v4393_v1 = vpop.f32.mrf.mxu1  ;;  %v693_v61 = vrot.slane %v691_v39, 5  ;;  %v721_v10 = vrot.slane %v719_v24, 4  ;;  %v402_v24 = vld [vmem:[%s3699_s7 + $0x118] sm:$0xf] }
 0x17c   : > { %v4391_v5 = vpop.f32.mrf.mxu0  ;;  %3400 = vmatmul.msk.bf16.gmra.mxu2 %vm985_vm3, %v2058_v12  ;;  %v1247_v7 = vadd.f32 %v4393_v1, %v4211_v2 }
 0x17d   : > { %4899 = vst [vmem:[#allocation50_spill] sm:$0xff] %v4391_v5  ;;  %v698_v30 = vor.u32 %v697_v29, %v693_v61  ;;  %v694_v11 = vsel %vm3755_vm2, %v689_v51, %v693_v61  ;;  %v708_v51 = vrot.slane %v706_v41, 4 }
 0x17e   : > { %v1927_v2 = vadd.f32 %v4031_v53, %v1247_v7 }
 0x17f   : > { %v4400_v8 = vpop.f32.mrf.mxu2  ;;  %2403 = vmatmul.bf16.gmra.mxu0 %v4347_v34  ;;  %v699_v39 = vrot.slane %v698_v30, 4  ;;  %v715_v30 = vshll.u32 %v396_v16, 16  ;;  %v397_v16 = vld [vmem:[%s3699_s7 + $0x104] sm:$0xf] }
 0x180   : > { %4900 = vst [vmem:[#allocation51_spill] sm:$0xff] %v4400_v8  ;;  %v725_v44 = vshll.u32 %v397_v16, 16 }
 0x181   : > { %v704_v15 = vsel %vm3755_vm2, %v699_v39, %v703_v50  ;;  %v711_v39 = vrot.slane %v709_v62, 5  ;;  %v717_v50 = vrot.slane %v715_v30, 5  ;;  %v401_v30 = vld [vmem:[%s3699_s7 + $0x114] sm:$0xf] }
 0x182   : > { %v4404_v12 = vpop.f32.mrf.mxu3  ;;  %v727_v62 = vrot.slane %v725_v44, 5  ;;  %v733_v16 = vshll.u32 %v401_v30, 16 }
 0x183   : > { %4901 = vst [vmem:[#allocation52_spill] sm:$0xff] %v4404_v12  ;;  %v4408_v3 = vpop.f32.mrf.mxu1  ;;  %v712_v52 = vor.u32 %v711_v39, %v708_v51 }
 0x184   : > { %v4406_v38 = vpop.f32.mrf.mxu0 }
 0x185   : > { %4902 = vst [vmem:[#allocation53_spill] sm:$0xff] %v4406_v38 }
 0x186   : > { %1288 = vmatmul.bf16.gmra.mxu1 %v1164_v22 }
 0x187   : > { %v4410_v34 = vpop.f32.mrf.mxu2  ;;  %3494 = vmatmul.msk.bf16.gmra.mxu3 %vm985_vm3, %v4196_v27 }
 0x188   : > { %4903 = vst [vmem:[#allocation54_spill] sm:$0xff] %v4410_v34  ;;  %v1144_v34 = vunpack.c.l.b16 %v704_v15 }
 0x18a   : > { %v4416_v29 = vpop.f32.mrf.mxu3 }
 0x18b   : > { %4904 = vst [vmem:[#allocation55_spill] sm:$0xff] %v4416_v29  ;;  %v4425_v27 = vpop.f32.mrf.mxu1  ;;  %v1143_v29 = vunpack.c.l.b16 %v694_v11 }
 0x18c   : > { %v4423_v12 = vpop.f32.mrf.mxu0  ;;  %3401 = vmatmul.msk.bf16.gmra.mxu2 %vm985_vm3, %v2060_v35  ;;  %v722_v35 = vor.u32 %v721_v10, %v717_v50  ;;  %v730_v10 = vshrl.u32 %v401_v30, 16 }
 0x18d   : > { %4905 = vst [vmem:[#allocation56_spill] sm:$0xff] %v4423_v12  ;;  %v1165_v12 = vpack.c.b16 %v1144_v34, %v1143_v29 }
 0x18e   : > { %v723_v41 = vrot.slane %v722_v35, 4 }
 0x18f   : > { %v4429_v61 = vpop.f32.mrf.mxu2  ;;  %2408 = vmatmul.bf16.gmra.mxu0 %v4376_v28  ;;  %v713_v28 = vrot.slane %v712_v52, 4 }
 0x190   : > { %4906 = vst [vmem:[#allocation57_spill] sm:$0xff] %v4429_v61  ;;  %v728_v29 = vsel %vm3755_vm2, %v723_v41, %v727_v62  ;;  %v732_v61 = vrot.slane %v730_v10, 4 }
 0x191   : > { %v718_v34 = vsel %vm3755_vm2, %v713_v28, %v717_v50  ;;  %v1146_v35 = vunpack.c.l.b16 %v728_v29  ;;  %v735_v50 = vrot.slane %v733_v16, 5 }
 0x192   : > { %v4433_v8 = vpop.f32.mrf.mxu3  ;;  %v1145_v44 = vunpack.c.l.b16 %v718_v34  ;;  %v408_v34 = vld [vmem:[%s3699_s7 + $0x130] sm:$0xf] }
 0x193   : > { %4907 = vst [vmem:[#allocation58_spill] sm:$0xff] %v4433_v8  ;;  %v4437_v11 = vpop.f32.mrf.mxu1 }
 0x194   : > { %v4435_v60 = vpop.f32.mrf.mxu0  ;;  %v4456_v62 = vpack.c.b16 %v1146_v35, %v1145_v44  ;;  %v767_v35 = vshrl.u32 %v408_v34, 16 }
 0x195   : > { %4908 = vst [vmem:[#allocation59_spill] sm:$0xff] %v4435_v60 }
 0x196   : > { %1293 = vmatmul.bf16.gmra.mxu1 %v1165_v12  ;;  %v769_v54 = vrot.slane %v767_v35, 4  ;;  %v1250_v35 = vadd.f32 %v4408_v3, %v4224_v40 }
 0x197   : > { %v4439_v15 = vpop.f32.mrf.mxu2  ;;  %3495 = vmatmul.msk.bf16.gmra.mxu3 %vm985_vm3, %v3930_v47  ;;  %v743_v47 = vshrl.u32 %v402_v24, 16 }
 0x198   : > { %4909 = vst [vmem:[#allocation60_spill] sm:$0xff] %v4439_v15  ;;  %v739_v15 = vshll.u32 %v402_v24, 16  ;;  %v736_v24 = vor.u32 %v735_v50, %v732_v61 }
 0x199   : > { %v745_v60 = vrot.slane %v743_v47, 4  ;;  %v1245_v47 = vadd.f32 %v4380_v20, %v4194_v25 }
 0x19a   : > { %v2538_v8 = vpop.f32.mrf.mxu3  ;;  %v741_v28 = vrot.slane %v739_v15, 5  ;;  %v407_v15 = vld [vmem:[%s3699_s7 + $0x12c] sm:$0xf]  ;;  %v737_v29 = vrot.slane %v736_v24, 4 }
 0x19b   : > { %v4449_v51 = vpop.f32.mrf.mxu1  ;;  %v754_v61 = vshrl.u32 %v407_v15, 16 }
 0x19c   : > { %v2374_v39 = vpop.f32.mrf.mxu0  ;;  %v746_v38 = vor.u32 %v745_v60, %v741_v28  ;;  %v757_v60 = vshll.u32 %v407_v15, 16 }
 0x19d   : > { %v756_v25 = vrot.slane %v754_v61, 4 }
 0x19e   : > { %v747_v10 = vrot.slane %v746_v38, 4  ;;  %v759_v20 = vrot.slane %v757_v60, 5 }
 0x19f   : > { %v4451_v52 = vpop.f32.mrf.mxu2  ;;  %2413 = vmatmul.bf16.gmra.mxu0 %v1164_v22 }
 0x1a0   : > { %4910 = vst [vmem:[#allocation61_spill] sm:$0xff] %v4451_v52  ;;  %v749_v52 = vshll.u32 %v403_v26, 16  ;;  %v763_v26 = vshll.u32 %v408_v34, 16 }
 0x1a2   : > { %v4454_v41 = vpop.f32.mrf.mxu3  ;;  %v751_v16 = vrot.slane %v749_v52, 5  ;;  %v1926_v52 = vadd.f32 %v4014_v33, %v1245_v47  ;;  %v765_v24 = vrot.slane %v763_v26, 5 }
 0x1a3   : > { %v4458_v17 = vpop.f32.mrf.mxu1 }
 0x1a4   : > { %v2376_v30 = vpop.f32.mrf.mxu0  ;;  %v752_v38 = vsel %vm3755_vm2, %v747_v10, %v751_v16  ;;  %v770_v10 = vor.u32 %v769_v54, %v765_v24  ;;  %v773_v16 = vshll.u32 %v409_v63, 16 }
 0x1a5   : > { %v1148_v34 = vunpack.c.l.b16 %v752_v38 }
 0x1a6   : > { %1298 = vmatmul.bf16.gmra.mxu1 %v4456_v62  ;;  %v775_v26 = vrot.slane %v773_v16, 5 }
 0x1a7   : > { %v4461_v22 = vpop.f32.mrf.mxu2  ;;  %3496 = vmatmul.msk.bf16.gmra.mxu3 %vm985_vm3, %v3977_v55  ;;  %v742_v55 = vsel %vm3755_vm2, %v737_v29, %v741_v28  ;;  %v4486_v28 = vld [vmem:[%s4847_s4] ss:$0 sm:$0xff]  ;;  %v760_v29 = vor.u32 %v759_v20, %v756_v25 }
 0x1a8   : > { %4911 = vst [vmem:[#allocation62_spill] sm:$0xff] %v4461_v22  ;;  %v1147_v57 = vunpack.c.l.b16 %v742_v55 }
 0x1a9   : > { %v761_v1 = vrot.slane %v760_v29, 4 }
 0x1aa   : > { %v4469_v44 = vpop.f32.mrf.mxu3 }
 0x1ab   : > { %v4471_v50 = vpop.f32.mrf.mxu1  ;;  %v766_v38 = vsel %vm3755_vm2, %v761_v1, %v765_v24 }
 0x1ac   : > { %v4473_v22 = vpop.f32.mrf.mxu0  ;;  %v1149_v24 = vunpack.c.l.b16 %v766_v38 }
 0x1af   : > { %v2160_v15 = vpop.f32.mrf.mxu2  ;;  %2418 = vmatmul.bf16.gmra.mxu0 %v1165_v12  ;;  %v4490_v12 = vpack.c.b16 %v1148_v34, %v1147_v57 }
 0x1b0   : > { %v2240_v5 = vadd.f32 %v2160_v15, %v1926_v52 }
 0x1b2   : > { %v2454_v13 = vadd.f32 %v2374_v39, %v2240_v5  ;;  %v4488_v33 = vpop.f32.mrf.mxu3  ;;  %v771_v39 = vrot.slane %v770_v10, 4 }
 0x1b3   : > { %v4492_v61 = vpop.f32.mrf.mxu1 }
 0x1b4   : > { %v2618_v47 = vadd.f32 %v2538_v8, %v2454_v13  ;;  %v4494_v60 = vpop.f32.mrf.mxu0  ;;  %v413_v13 = vld [vmem:[%s3699_s7 + $0x144] sm:$0xf]  ;;  %v414_v8 = vld [vmem:[%s3699_s7 + $0x148] sm:$0xf]  ;;  %v776_v52 = vsel %vm3755_vm2, %v771_v39, %v775_v26 }
 0x1b5   : > { %v778_v25 = vshrl.u32 %v413_v13, 16  ;;  %v787_v20 = vshll.u32 %v414_v8, 16  ;;  %v791_v15 = vshrl.u32 %v414_v8, 16  ;;  %v1150_v16 = vunpack.c.l.b16 %v776_v52 }
 0x1b6   : > { %v2654_v5 = vadd.f32 %v4486_v28, %v2618_v47  ;;  %1303 = vmatmul.bf16.gmra.mxu1 %v4490_v12 }
 0x1b7   : > { %v2162_v54 = vpop.f32.mrf.mxu2  ;;  %3497 = vmatmul.msk.bf16.gmra.mxu3 %vm985_vm3, %v4002_v18  ;;  %v781_v18 = vshll.u32 %v413_v13, 16  ;;  %v789_v1 = vrot.slane %v787_v20, 5  ;;  %v793_v39 = vrot.slane %v791_v15, 4  ;;  %v4530_v8 = vpack.c.b16 %v1150_v16, %v1149_v24  ;;  %v419_v16 = vld [vmem:[%s3699_s7 + $0x15c] sm:$0xf] }
 0x1b8   : > { %v2686_v63 = vmax.f32 %v2654_v5, 0.0  ;;  %v2241_v57 = vadd.f32 %v2162_v54, %v1927_v2  ;;  %v780_v2 = vrot.slane %v778_v25, 4  ;;  %v415_v54 = vld [vmem:[%s3699_s7 + $0x14c] sm:$0xf] }
 0x1b9   : > { %v783_v5 = vrot.slane %v781_v18, 5 }
 0x1ba   : > { %v2718_v53 = vpack.c.bf16 %v2686_v63, %v2686_v63  ;;  %v2455_v7 = vadd.f32 %v2376_v30, %v2241_v57  ;;  %v4505_v55 = vpop.f32.mrf.mxu3  ;;  %v1928_v30 = vadd.f32 %v4045_v4, %v1250_v35  ;;  %v1252_v63 = vadd.f32 %v4425_v27, %v4238_v21 }
 0x1bb   : > { %v4512_v10 = vpop.f32.mrf.mxu1  ;;  %v784_v35 = vor.u32 %v783_v5, %v780_v2  ;;  %v1255_v2 = vadd.f32 %v4437_v11, %v4254_v6 }
 0x1bc   : > { %v2801_v34 = vrot.slane %v2718_v53, 7  ;;  %v2619_v29 = vadd.f32 %v4454_v41, %v2455_v7  ;;  %v4514_v40 = vpop.f32.mrf.mxu0  ;;  %v794_v53 = vor.u32 %v793_v39, %v789_v1  ;;  %v797_v7 = vshll.u32 %v415_v54, 16 }
 0x1bd   : > { %v1929_v15 = vadd.f32 %v4061_v23, %v1252_v63  ;;  %v805_v54 = vshll.u32 %v419_v16, 16 }
 0x1be   : > { %2929 = vst [vmem:[%s3694_s29] sm:$0xe] %v2801_v34  ;;  %v2655_v3 = vadd.f32 %v4486_v28, %v2619_v29  ;;  %v2802_v38 = vrot.slane %v2801_v34, 4  ;;  %v795_v29 = vrot.slane %v794_v53, 4 }
 0x1bf   : > { %v2165_v47 = vpop.f32.mrf.mxu2  ;;  %2423 = vmatmul.bf16.gmra.mxu0 %v4456_v62 }
 0x1c0   : > { %v2687_v41 = vmax.f32 %v2655_v3, 0.0  ;;  %v2242_v26 = vadd.f32 %v2165_v47, %v1928_v30  ;;  %v799_v3 = vrot.slane %v797_v7, 5  ;;  %v420_v47 = vld [vmem:[%s3699_s7 + $0x160] sm:$0xf] }
 0x1c1   : > { %v811_v11 = vshll.u32 %v420_v47, 16 }
 0x1c2   : > { %v2719_v57 = vpack.c.bf16 %v2687_v41, %v2687_v41  ;;  %v2456_v4 = vadd.f32 %v4473_v22, %v2242_v26  ;;  %v4524_v13 = vpop.f32.mrf.mxu3  ;;  %v800_v41 = vsel %vm3755_vm2, %v795_v29, %v799_v3  ;;  %v802_v26 = vshrl.u32 %v419_v16, 16 }
 0x1c3   : > { %v4533_v27 = vpop.f32.mrf.mxu1 }
 0x1c4   : > { %v2803_v52 = vrot.slane %v2719_v57, 7  ;;  %v2620_v21 = vadd.f32 %v4469_v44, %v2456_v4  ;;  %v4535_v22 = vpop.f32.mrf.mxu0  ;;  %v785_v44 = vrot.slane %v784_v35, 4 }
 0x1c6   : > { %v2804_v25 = vsel %vm4526_vm6, %v2802_v38, %v2803_v52  ;;  %v2805_v18 = vrot.slane %v2803_v52, 4  ;;  %v2656_v20 = vadd.f32 %v4486_v28, %v2620_v21  ;;  %1308 = vmatmul.bf16.gmra.mxu1 %v4530_v8  ;;  %v1152_v38 = vunpack.c.l.b16 %v800_v41 }
 0x1c7   : > { %2930 = vst [vmem:[%s3694_s29 + $0x4] sm:$0xf] %v2804_v25  ;;  %v2167_v34 = vpop.f32.mrf.mxu2  ;;  %3498 = vmatmul.msk.bf16.gmra.mxu3 %vm985_vm3, %v4026_v46  ;;  %v790_v46 = vsel %vm3755_vm2, %v785_v44, %v789_v1  ;;  %v1930_v1 = vadd.f32 %v4081_v42, %v1255_v2  ;;  %v804_v52 = vrot.slane %v802_v26, 4  ;;  %v807_v21 = vrot.slane %v805_v54, 5 }
 0x1c8   : > { %2931 = vst [vmem:[%s3694_s29 + $0x8] sm:$0x1] %v2805_v18  ;;  %v2688_v30 = vmax.f32 %v2656_v20, 0.0  ;;  %v2243_v24 = vadd.f32 %v2167_v34, %v1929_v15  ;;  %v1151_v7 = vunpack.c.l.b16 %v790_v46  ;;  %v421_v18 = vld [vmem:[%s3699_s7 + $0x164] sm:$0xf]  ;;  %v813_v20 = vrot.slane %v811_v11, 5 }
 0x1c9   : > { %v1257_v34 = vadd.f32 %v4449_v51, %v4267_v49  ;;  %v1260_v11 = vadd.f32 %v4458_v17, %v4284_v36 }
 0x1ca   : > { %v2720_v23 = vpack.c.bf16 %v2688_v30, %v2688_v30  ;;  %v2457_v5 = vadd.f32 %v4494_v60, %v2243_v24  ;;  %v4551_v39 = vpop.f32.mrf.mxu3  ;;  %v815_v60 = vshrl.u32 %v420_v47, 16  ;;  %v4572_v3 = vpack.c.b16 %v1152_v38, %v1151_v7 }
 0x1cb   : > { %v4558_v4 = vpop.f32.mrf.mxu1  ;;  %v821_v30 = vshll.u32 %v421_v18, 16  ;;  %v1931_v46 = vadd.f32 %v4095_v0, %v1257_v34  ;;  %v1932_v36 = vadd.f32 %v4112_v19, %v1260_v11  ;;  %v1262_v18 = vadd.f32 %v4471_v50, %v4294_v58 }
 0x1cc   : > { %v2806_v63 = vrot.slane %v2720_v23, 7  ;;  %v2621_v57 = vadd.f32 %v4488_v33, %v2457_v5  ;;  %v4560_v6 = vpop.f32.mrf.mxu0  ;;  %v817_v15 = vrot.slane %v815_v60, 4 }
 0x1cd   : > { %v1933_v50 = vadd.f32 %v4123_v43, %v1262_v18 }
 0x1ce   : > { %2932 = vst [vmem:[%s3694_s29 + $0x10] sm:$0xe] %v2806_v63  ;;  %v2657_v35 = vadd.f32 %v4486_v28, %v2621_v57  ;;  %v2807_v24 = vrot.slane %v2806_v63, 4  ;;  %v818_v5 = vor.u32 %v817_v15, %v813_v20  ;;  %v823_v57 = vrot.slane %v821_v30, 5 }
 0x1cf   : > { %v2170_v53 = vpop.f32.mrf.mxu2  ;;  %2428 = vmatmul.bf16.gmra.mxu0 %v4490_v12  ;;  %v808_v12 = vor.u32 %v807_v21, %v804_v52 }
 0x1d0   : > { %v2689_v33 = vmax.f32 %v2657_v35, 0.0  ;;  %v2244_v25 = vadd.f32 %v2170_v53, %v1930_v1  ;;  %v819_v63 = vrot.slane %v818_v5, 4  ;;  %v1265_v5 = vadd.f32 %v4492_v61, %v4306_v37 }
 0x1d2   : > { %v2721_v44 = vpack.c.bf16 %v2689_v33, %v2689_v33  ;;  %v2458_v29 = vadd.f32 %v4514_v40, %v2244_v25  ;;  %v4570_v42 = vpop.f32.mrf.mxu3  ;;  %v824_v52 = vsel %vm3755_vm2, %v819_v63, %v823_v57  ;;  %v425_v63 = vld [vmem:[%s3699_s7 + $0x174] sm:$0xf]  ;;  %v1267_v57 = vadd.f32 %v4512_v10, %v4321_v45 }
 0x1d3   : > { %v4575_v2 = vpop.f32.mrf.mxu1  ;;  %v1154_v33 = vunpack.c.l.b16 %v824_v52 }
 0x1d4   : > { %v2808_v16 = vrot.slane %v2721_v44, 7  ;;  %v2622_v47 = vadd.f32 %v4505_v55, %v2458_v29  ;;  %v2391_v23 = vpop.f32.mrf.mxu0  ;;  %v809_v55 = vrot.slane %v808_v12, 4 }
 0x1d6   : > { %v2809_v49 = vsel %vm4526_vm6, %v2807_v24, %v2808_v16  ;;  %v2810_v51 = vrot.slane %v2808_v16, 4  ;;  %v2658_v40 = vadd.f32 %v4486_v28, %v2622_v47  ;;  %1313 = vmatmul.bf16.gmra.mxu1 %v4572_v3  ;;  %v814_v38 = vsel %vm3755_vm2, %v809_v55, %v813_v20 }
 0x1d7   : > { %2933 = vst [vmem:[%s3694_s29 + $0x14] sm:$0xf] %v2809_v49  ;;  %v2172_v41 = vpop.f32.mrf.mxu2  ;;  %3499 = vmatmul.msk.bf16.gmra.mxu3 %vm985_vm3, %v4056_v14  ;;  %v1153_v21 = vunpack.c.l.b16 %v814_v38 }
 0x1d8   : > { %2934 = vst [vmem:[%s3694_s29 + $0x18] sm:$0x1] %v2810_v51  ;;  %v2690_v26 = vmax.f32 %v2658_v40, 0.0  ;;  %v2245_v54 = vadd.f32 %v2172_v41, %v1931_v46 }
 0x1d9   : > { %v4607_v44 = vpack.c.b16 %v1154_v33, %v1153_v21 }
 0x1da   : > { %v2722_v60 = vpack.c.bf16 %v2690_v26, %v2690_v26  ;;  %v2459_v0 = vadd.f32 %v4535_v22, %v2245_v54  ;;  %v4589_v35 = vpop.f32.mrf.mxu3  ;;  %v1934_v26 = vadd.f32 %v4141_v9, %v1265_v5  ;;  %v4914_v5 = vld [vmem:[#allocation2_spill] sm:$0xff] }
 0x1db   : > { %v4592_v7 = vpop.f32.mrf.mxu1 }
 0x1dc   : > { %v2811_v1 = vrot.slane %v2722_v60, 7  ;;  %v2623_v53 = vadd.f32 %v4524_v13, %v2459_v0  ;;  %v2394_v14 = vpop.f32.mrf.mxu0  ;;  %v2273_v0 = vshrl.u32 %v425_v63, 16 }
 0x1de   : > { %2935 = vst [vmem:[%s3694_s29 + $0x20] sm:$0xe] %v2811_v1  ;;  %v2659_v17 = vadd.f32 %v4486_v28, %v2623_v53  ;;  %v2812_v19 = vrot.slane %v2811_v1, 4  ;;  %v2276_v1 = vshll.u32 %v425_v63, 16 }
 0x1df   : > { %v2175_v22 = vpop.f32.mrf.mxu2  ;;  %2433 = vmatmul.bf16.gmra.mxu0 %v4530_v8 }
 0x1e0   : > { %v2691_v13 = vmax.f32 %v2659_v17, 0.0  ;;  %v2246_v25 = vadd.f32 %v2175_v22, %v1932_v36  ;;  %v1935_v22 = vadd.f32 %v4151_v48, %v1267_v57  ;;  %v2278_v33 = vrot.slane %v2276_v1, 5 }
 0x1e2   : > { %v2723_v20 = vpack.c.bf16 %v2691_v13, %v2691_v13  ;;  %v2460_v15 = vadd.f32 %v4560_v6, %v2246_v25  ;;  %v4605_v34 = vpop.f32.mrf.mxu3 }
 0x1e3   : > { %v4610_v12 = vpop.f32.mrf.mxu1 }
 0x1e4   : > { %v2813_v29 = vrot.slane %v2723_v20, 7  ;;  %v2624_v8 = vadd.f32 %v4551_v39, %v2460_v15  ;;  %v2396_v30 = vpop.f32.mrf.mxu0  ;;  %v427_v15 = vld [vmem:[%s3699_s7 + $0x17c] sm:$0xf] }
 0x1e6   : > { %v2814_v24 = vsel %vm4526_vm6, %v2812_v19, %v2813_v29  ;;  %v2815_v16 = vrot.slane %v2813_v29, 4  ;;  %v2660_v58 = vadd.f32 %v4486_v28, %v2624_v8  ;;  %1318 = vmatmul.bf16.gmra.mxu1 %v4607_v44  ;;  %v1270_v19 = vadd.f32 %v4533_v27, %v4337_v56 }
 0x1e7   : > { %2936 = vst [vmem:[%s3694_s29 + $0x24] sm:$0xf] %v2814_v24  ;;  %v2177_v6 = vpop.f32.mrf.mxu2  ;;  %3500 = vmatmul.msk.bf16.gmra.mxu3 %vm985_vm3, %v4090_v59 }
 0x1e8   : > { %2937 = vst [vmem:[%s3694_s29 + $0x28] sm:$0x1] %v2815_v16  ;;  %v2692_v39 = vmax.f32 %v2660_v58, 0.0  ;;  %v2247_v47 = vadd.f32 %v2177_v6, %v1933_v50 }
 0x1ea   : > { %v2724_v49 = vpack.c.bf16 %v2692_v39, %v2692_v39  ;;  %v2461_v51 = vadd.f32 %v2391_v23, %v2247_v47  ;;  %v4623_v40 = vpop.f32.mrf.mxu3  ;;  %v426_v23 = vld [vmem:[%s3699_s7 + $0x178] sm:$0xf]  ;;  %v2292_v39 = vshll.u32 %v427_v15, 16 }
 0x1eb   : > { %v4626_v41 = vpop.f32.mrf.mxu1  ;;  %v2282_v53 = vshll.u32 %v426_v23, 16  ;;  %v2286_v36 = vshrl.u32 %v426_v23, 16 }
 0x1ec   : > { %v2816_v43 = vrot.slane %v2724_v49, 7  ;;  %v2625_v46 = vadd.f32 %v4570_v42, %v2461_v51  ;;  %v2399_v55 = vpop.f32.mrf.mxu0  ;;  %v1936_v49 = vadd.f32 %v4914_v5, %v1270_v19 }
 0x1ed   : > { %v2284_v18 = vrot.slane %v2282_v53, 5  ;;  %v2288_v20 = vrot.slane %v2286_v36, 4 }
 0x1ee   : > { %2938 = vst [vmem:[%s3694_s29 + $0x30] sm:$0xe] %v2816_v43  ;;  %v2661_v59 = vadd.f32 %v4486_v28, %v2625_v46  ;;  %v2817_v9 = vrot.slane %v2816_v43, 4  ;;  %v2294_v46 = vrot.slane %v2292_v39, 5  ;;  %v4923_v39 = vld [vmem:[#allocation16_spill] sm:$0xff] }
 0x1ef   : > { %v2180_v54 = vpop.f32.mrf.mxu2  ;;  %2438 = vmatmul.bf16.gmra.mxu0 %v4572_v3  ;;  %v2289_v6 = vor.u32 %v2288_v20, %v2284_v18  ;;  %v4921_v20 = vld [vmem:[#allocation5_spill] sm:$0xff] }
 0x1f0   : > { %v2693_v37 = vmax.f32 %v2661_v59, 0.0  ;;  %v2248_v61 = vadd.f32 %v2180_v54, %v1934_v26 }
 0x1f1   : > { %v2290_v43 = vrot.slane %v2289_v6, 4  ;;  %v4922_v6 = vld [vmem:[#allocation7_spill] sm:$0xff] }
 0x1f2   : > { %v2725_v11 = vpack.c.bf16 %v2693_v37, %v2693_v37  ;;  %v2462_v42 = vadd.f32 %v2394_v14, %v2248_v61  ;;  %v4636_v60 = vpop.f32.mrf.mxu3  ;;  %v4916_v61 = vld [vmem:[#allocation50_spill] sm:$0xff] }
 0x1f3   : > { %v4639_v52 = vpop.f32.mrf.mxu1  ;;  %v1280_v63 = vadd.f32 %v4610_v12, %v4916_v61 }
 0x1f4   : > { %v2818_v38 = vrot.slane %v2725_v11, 7  ;;  %v2626_v3 = vadd.f32 %v4589_v35, %v2462_v42  ;;  %v4641_v17 = vpop.f32.mrf.mxu0  ;;  %v2275_v35 = vrot.slane %v2273_v0, 4  ;;  %v2501_v0 = vpop.permute.xlu2 %2500 }
 0x1f6   : > { %v2819_v45 = vsel %vm4526_vm6, %v2817_v9, %v2818_v38  ;;  %v2820_v10 = vrot.slane %v2818_v38, 4  ;;  %v2662_v14 = vadd.f32 %v4486_v28, %v2626_v3  ;;  %v2279_v24 = vor.u32 %v2278_v33, %v2275_v35  ;;  %v4917_v9 = vld [vmem:[#allocation4_spill] sm:$0xff]  ;;  %v4918_v3 = vld [vmem:[#allocation13_spill] sm:$0xff] }
 0x1f7   : > { %2939 = vst [vmem:[%s3694_s29 + $0x34] sm:$0xf] %v2819_v45  ;;  %v2182_v21 = vpop.f32.mrf.mxu2  ;;  %3501 = vmatmul.msk.bf16.gmra.mxu3 %vm985_vm3, %v4118_v32  ;;  %v1940_v36 = vadd.f32 %v4918_v3, %v1280_v63 }
 0x1f8   : > { %2940 = vst [vmem:[%s3694_s29 + $0x38] sm:$0x1] %v2820_v10  ;;  %v2694_v13 = vmax.f32 %v2662_v14, 0.0  ;;  %v2249_v25 = vadd.f32 %v2182_v21, %v1935_v22  ;;  %v2280_v27 = vrot.slane %v2279_v24, 4  ;;  %v4919_v22 = vld [vmem:[#allocation43_spill] sm:$0xff] }
 0x1f9   : > { %v1275_v21 = vadd.f32 %v4575_v2, %v4919_v22  ;;  %v2254_v15 = vadd.f32 %v4921_v20, %v1940_v36  ;;  %v4929_v22 = vld [vmem:[#allocation59_spill] sm:$0xff] }
 0x1fa   : > { %v2726_v29 = vpack.c.bf16 %v2694_v13, %v2694_v13  ;;  %v2463_v8 = vadd.f32 %v2396_v30, %v2249_v25  ;;  %v4654_v48 = vpop.f32.mrf.mxu3  ;;  %v2285_v23 = vsel %vm3755_vm2, %v2280_v27, %v2284_v18  ;;  %v4920_v25 = vld [vmem:[#allocation53_spill] sm:$0xff] }
 0x1fb   : > { %v4657_v58 = vpop.f32.mrf.mxu1  ;;  %v2313_v45 = vunpack.c.l.b16 %v2285_v23  ;;  %v1282_v18 = vadd.f32 %v4626_v41, %v4920_v25  ;;  %v1938_v2 = vadd.f32 %v4922_v6, %v1275_v21 }
 0x1fc   : > { %v2821_v16 = vrot.slane %v2726_v29, 7  ;;  %v2627_v32 = vadd.f32 %v4605_v34, %v2463_v8  ;;  %v4659_v50 = vpop.f32.mrf.mxu0  ;;  %v4915_v34 = vld [vmem:[#allocation39_spill] sm:$0xff]  ;;  %v1287_v21 = vadd.f32 %v4657_v58, %v4929_v22 }
 0x1fd   : > { %v1272_v59 = vadd.f32 %v4558_v4, %v4915_v34  ;;  %v2295_v4 = vsel %vm3755_vm2, %v2290_v43, %v2294_v46  ;;  %v4925_v34 = vld [vmem:[#allocation56_spill] sm:$0xff] }
 0x1fe   : > { %2941 = vst [vmem:[%s3694_s29 + $0x40] sm:$0xe] %v2821_v16  ;;  %v2663_v47 = vadd.f32 %v4486_v28, %v2627_v32  ;;  %v2314_v31 = vunpack.c.l.b16 %v2295_v4 }
 0x1ff   : > { %v2185_v56 = vpop.f32.mrf.mxu2  ;;  %2443 = vmatmul.bf16.gmra.mxu0 %v4607_v44  ;;  %v2822_v44 = vrot.slane %v2821_v16, 4  ;;  %v1937_v38 = vadd.f32 %v4917_v9, %v1272_v59  ;;  %v1285_v59 = vadd.f32 %v4639_v52, %v4925_v34 }
 0x200   : > { %v2695_v30 = vmax.f32 %v2663_v47, 0.0  ;;  %v2250_v51 = vadd.f32 %v2185_v56, %v1936_v49  ;;  %v2315_v19 = vpack.c.b16 %v2314_v31, %v2313_v45  ;;  %v1941_v47 = vadd.f32 %v4923_v39, %v1282_v18 }
 0x202   : > { %v2727_v26 = vpack.c.bf16 %v2695_v30, %v2695_v30  ;;  %v2464_v54 = vadd.f32 %v2399_v55, %v2250_v51  ;;  %v4667_v37 = vpop.f32.mrf.mxu3  ;;  %v4924_v30 = vld [vmem:[#allocation47_spill] sm:$0xff] }
 0x203   : > { %v4681_v53 = vpop.f32.mrf.mxu1 }
 0x204   : > { %v2823_v57 = vrot.slane %v2727_v26, 7  ;;  %v2628_v11 = vadd.f32 %v4623_v40, %v2464_v54  ;;  %v4674_v42 = vpop.f32.mrf.mxu0  ;;  %v4926_v54 = vld [vmem:[#allocation8_spill] sm:$0xff] }
 0x205   : > { %v2255_v61 = vadd.f32 %v4926_v54, %v1941_v47  ;;  %v4934_v54 = vld [vmem:[#allocation25_spill] sm:$0xff] }
 0x206   : > { %v2824_v55 = vsel %vm4526_vm6, %v2822_v44, %v2823_v57  ;;  %v2825_v1 = vrot.slane %v2823_v57, 4  ;;  %v2664_v12 = vadd.f32 %v4486_v28, %v2628_v11 }
 0x207   : > { %2942 = vst [vmem:[%s3694_s29 + $0x44] sm:$0xf] %v2824_v55  ;;  %v2187_v40 = vpop.f32.mrf.mxu2  ;;  %3502 = vmatmul.msk.bf16.gmra.mxu3 %vm985_vm3, %v2501_v0  ;;  %v4927_v55 = vld [vmem:[#allocation10_spill] sm:$0xff] }
 0x208   : > { %2943 = vst [vmem:[%s3694_s29 + $0x48] sm:$0x1] %v2825_v1  ;;  %v2696_v10 = vmax.f32 %v2664_v12, 0.0  ;;  %v2251_v14 = vadd.f32 %v2187_v40, %v1937_v38  ;;  %v4928_v1 = vld [vmem:[#allocation19_spill] sm:$0xff] }
 0x209   : > { %v1942_v12 = vadd.f32 %v4928_v1, %v1285_v59 }
 0x20a   : > { %v2728_v35 = vpack.c.bf16 %v2696_v10, %v2696_v10  ;;  %v2465_v33 = vadd.f32 %v4641_v17, %v2251_v14  ;;  %v2573_v13 = vpop.f32.mrf.mxu3 }
 0x20b   : > { %v4699_v41 = vpop.f32.mrf.mxu1 }
 0x20c   : > { %v2826_v29 = vrot.slane %v2728_v35, 7  ;;  %v2629_v8 = vadd.f32 %v4636_v60, %v2465_v33  ;;  %v2409_v24 = vpop.f32.mrf.mxu0  ;;  %v1277_v60 = vadd.f32 %v4592_v7, %v4924_v30  ;;  %v4930_v33 = vld [vmem:[#allocation11_spill] sm:$0xff] }
 0x20d   : > { %v2468_v16 = vadd.f32 %v2409_v24, %v2254_v15 }
 0x20e   : > { %2944 = vst [vmem:[%s3694_s29 + $0x50] sm:$0xe] %v2826_v29  ;;  %v2665_v32 = vadd.f32 %v4486_v28, %v2629_v8  ;;  %v2827_v63 = vrot.slane %v2826_v29, 4  ;;  %v1939_v52 = vadd.f32 %v4927_v55, %v1277_v60  ;;  %v4931_v8 = vld [vmem:[#allocation22_spill] sm:$0xff] }
 0x20f   : > { %v2632_v17 = vadd.f32 %v2573_v13, %v2468_v16  ;;  %v2190_v5 = vpop.f32.mrf.mxu2  ;;  %2448 = vmatmul.bf16.gmra.mxu0 %v2315_v19  ;;  %v2256_v13 = vadd.f32 %v4930_v33, %v1942_v12  ;;  %v4937_v12 = vld [vmem:[#allocation28_spill] sm:$0xff] }
 0x210   : > { %v2697_v49 = vmax.f32 %v2665_v32, 0.0  ;;  %v2252_v56 = vadd.f32 %v2190_v5, %v1938_v2 }
 0x211   : > { %v2668_v27 = vadd.f32 %v4486_v28, %v2632_v17  ;;  %v4932_v17 = vld [vmem:[#allocation3_spill] sm:$0xff] }
 0x212   : > { %v2729_v51 = vpack.c.bf16 %v2697_v49, %v2697_v49  ;;  %v2466_v43 = vadd.f32 %v4659_v50, %v2252_v56  ;;  %v2575_v46 = vpop.f32.mrf.mxu3  ;;  %v1290_v5 = vadd.f32 %v4681_v53, %v4932_v17  ;;  %v4933_v56 = vld [vmem:[#allocation14_spill] sm:$0xff] }
 0x213   : > { %v2700_v26 = vmax.f32 %v2668_v27, 0.0  ;;  %v1294_v31 = vpop.f32.mrf.mxu1 }
 0x214   : > { %v2828_v23 = vrot.slane %v2729_v51, 7  ;;  %v2630_v44 = vadd.f32 %v4654_v48, %v2466_v43  ;;  %v2411_v57 = vpop.f32.mrf.mxu0 }
 0x215   : > { %v2732_v11 = vpack.c.bf16 %v2700_v26, %v2700_v26  ;;  %v2469_v7 = vadd.f32 %v2411_v57, %v2255_v61  ;;  %v1944_v61 = vadd.f32 %v4934_v54, %v1290_v5  ;;  %v4935_v57 = vld [vmem:[#allocation6_spill] sm:$0xff] }
 0x216   : > { %v2829_v50 = vsel %vm4526_vm6, %v2827_v63, %v2828_v23  ;;  %v2830_v0 = vrot.slane %v2828_v23, 4  ;;  %v2666_v4 = vadd.f32 %v4486_v28, %v2630_v44 }
 0x217   : > { %2945 = vst [vmem:[%s3694_s29 + $0x54] sm:$0xf] %v2829_v50  ;;  %v2836_v9 = vrot.slane %v2732_v11, 7  ;;  %v2633_v38 = vadd.f32 %v2575_v46, %v2469_v7  ;;  %v2192_v3 = vpop.f32.mrf.mxu2  ;;  %v1292_v11 = vadd.f32 %v4699_v41, %v4935_v57  ;;  %v4936_v50 = vld [vmem:[#allocation17_spill] sm:$0xff] }
 0x218   : > { %2946 = vst [vmem:[%s3694_s29 + $0x58] sm:$0x1] %v2830_v0  ;;  %v2698_v48 = vmax.f32 %v2666_v4, 0.0  ;;  %v2253_v36 = vadd.f32 %v2192_v3, %v1939_v52  ;;  %v2258_v0 = vadd.f32 %v4936_v50, %v1944_v61  ;;  %v4947_v50 = vld [vmem:[#allocation18_spill] sm:$0xff] }
 0x219   : > { %2950 = vst [vmem:[%s3694_s29 + $0x70] sm:$0xe] %v2836_v9  ;;  %v2669_v40 = vadd.f32 %v4486_v28, %v2633_v38  ;;  %v2837_v24 = vrot.slane %v2836_v9, 4  ;;  %v1945_v9 = vadd.f32 %v4937_v12, %v1292_v11 }
 0x21a   : > { %v2730_v45 = vpack.c.bf16 %v2698_v48, %v2698_v48  ;;  %v2467_v10 = vadd.f32 %v4674_v42, %v2253_v36  ;;  %v2578_v14 = vpop.f32.mrf.mxu3  ;;  %v1943_v42 = vadd.f32 %v4931_v8, %v1287_v21  ;;  %v4939_v21 = vld [vmem:[#allocation20_spill] sm:$0xff] }
 0x21b   : > { %v2701_v35 = vmax.f32 %v2669_v40, 0.0  ;;  %v1296_v51 = vpop.f32.mrf.mxu1 }
 0x21c   : > { %v2831_v25 = vrot.slane %v2730_v45, 7  ;;  %v2631_v18 = vadd.f32 %v4667_v37, %v2467_v10  ;;  %v2414_v20 = vpop.f32.mrf.mxu0  ;;  %v2257_v27 = vadd.f32 %v4933_v56, %v1943_v42  ;;  %v4938_v10 = vld [vmem:[#allocation9_spill] sm:$0xff] }
 0x21d   : > { %v2733_v15 = vpack.c.bf16 %v2701_v35, %v2701_v35  ;;  %v2470_v19 = vadd.f32 %v2414_v20, %v2256_v13  ;;  %v2259_v35 = vadd.f32 %v4939_v21, %v1945_v9  ;;  %v4950_v21 = vld [vmem:[#allocation21_spill] sm:$0xff] }
 0x21e   : > { %2947 = vst [vmem:[%s3694_s29 + $0x60] sm:$0xe] %v2831_v25  ;;  %v2667_v29 = vadd.f32 %v4486_v28, %v2631_v18  ;;  %v2832_v30 = vrot.slane %v2831_v25, 4  ;;  %v4940_v18 = vld [vmem:[#allocation31_spill] sm:$0xff] }
 0x21f   : > { %v2838_v16 = vrot.slane %v2733_v15, 7  ;;  %v2634_v32 = vadd.f32 %v2578_v14, %v2470_v19  ;;  %v1295_v14 = vadd.f32 %v1294_v31, %v4938_v10 }
 0x220   : > { %v2699_v58 = vmax.f32 %v2667_v29, 0.0 }
 0x221   : > { %v2839_v6 = vsel %vm4526_vm6, %v2837_v24, %v2838_v16  ;;  %v2840_v2 = vrot.slane %v2838_v16, 4  ;;  %v2670_v39 = vadd.f32 %v4486_v28, %v2634_v32  ;;  %v1946_v20 = vadd.f32 %v4940_v18, %v1295_v14  ;;  %v4941_v24 = vld [vmem:[#allocation12_spill] sm:$0xff]  ;;  %v4942_v32 = vld [vmem:[#allocation23_spill] sm:$0xff] }
 0x222   : > { %2951 = vst [vmem:[%s3694_s29 + $0x74] sm:$0xf] %v2839_v6  ;;  %v2731_v37 = vpack.c.bf16 %v2699_v58, %v2699_v58  ;;  %v2580_v47 = vpop.f32.mrf.mxu3  ;;  %v1297_v16 = vadd.f32 %v1296_v51, %v4941_v24 }
 0x223   : > { %2952 = vst [vmem:[%s3694_s29 + $0x78] sm:$0x1] %v2840_v2  ;;  %v2702_v49 = vmax.f32 %v2670_v39, 0.0  ;;  %v1299_v1 = vpop.f32.mrf.mxu1  ;;  %v2260_v58 = vadd.f32 %v4942_v32, %v1946_v20  ;;  %v4953_v32 = vld [vmem:[#allocation24_spill] sm:$0xff] }
 0x224   : > { %v2833_v60 = vrot.slane %v2731_v37, 7  ;;  %v2416_v43 = vpop.f32.mrf.mxu0  ;;  %v4943_v37 = vld [vmem:[#allocation34_spill] sm:$0xff] }
 0x225   : > { %v2734_v46 = vpack.c.bf16 %v2702_v49, %v2702_v49  ;;  %v2471_v34 = vadd.f32 %v2416_v43, %v2257_v27  ;;  %v4944_v43 = vld [vmem:[#allocation15_spill] sm:$0xff] }
 0x226   : > { %v2834_v59 = vsel %vm4526_vm6, %v2832_v30, %v2833_v60  ;;  %v2835_v26 = vrot.slane %v2833_v60, 4 }
 0x227   : > { %2948 = vst [vmem:[%s3694_s29 + $0x64] sm:$0xf] %v2834_v59  ;;  %v2841_v53 = vrot.slane %v2734_v46, 7  ;;  %v2635_v63 = vadd.f32 %v2580_v47, %v2471_v34  ;;  %v1947_v47 = vadd.f32 %v4943_v37, %v1297_v16  ;;  %v1300_v46 = vadd.f32 %v1299_v1, %v4944_v43  ;;  %v4945_v59 = vld [vmem:[#allocation26_spill] sm:$0xff] }
 0x228   : > { %2949 = vst [vmem:[%s3694_s29 + $0x68] sm:$0x1] %v2835_v26 }
 0x229   : > { %2953 = vst [vmem:[%s3694_s29 + $0x80] sm:$0xe] %v2841_v53  ;;  %v2671_v23 = vadd.f32 %v4486_v28, %v2635_v63  ;;  %v2842_v38 = vrot.slane %v2841_v53, 4  ;;  %v2261_v26 = vadd.f32 %v4945_v59, %v1947_v47  ;;  %v4946_v63 = vld [vmem:[#allocation37_spill] sm:$0xff]  ;;  %v4956_v59 = vld [vmem:[#allocation27_spill] sm:$0xff] }
 0x22a   : > { %v2583_v44 = vpop.f32.mrf.mxu3 }
 0x22b   : > { %v2703_v7 = vmax.f32 %v2671_v23, 0.0  ;;  %v1301_v29 = vpop.f32.mrf.mxu1  ;;  %v1948_v23 = vadd.f32 %v4946_v63, %v1300_v46 }
 0x22c   : > { %v2419_v4 = vpop.f32.mrf.mxu0 }
 0x22d   : > { %v2735_v55 = vpack.c.bf16 %v2703_v7, %v2703_v7  ;;  %v2472_v52 = vadd.f32 %v2419_v4, %v2258_v0  ;;  %v1302_v0 = vadd.f32 %v1301_v29, %v4947_v50  ;;  %v4952_v29 = vld [vmem:[#allocation45_spill] sm:$0xff] }
 0x22f   : > { %v2843_v3 = vrot.slane %v2735_v55, 7  ;;  %v2636_v48 = vadd.f32 %v2583_v44, %v2472_v52  ;;  %v4948_v55 = vld [vmem:[#allocation29_spill] sm:$0xff] }
 0x230   : > { %v2262_v52 = vadd.f32 %v4948_v55, %v1948_v23 }
 0x231   : > { %v2844_v36 = vsel %vm4526_vm6, %v2842_v38, %v2843_v3  ;;  %v2845_v40 = vrot.slane %v2843_v3, 4  ;;  %v2672_v41 = vadd.f32 %v4486_v28, %v2636_v48  ;;  %v4949_v3 = vld [vmem:[#allocation41_spill] sm:$0xff] }
 0x232   : > { %2954 = vst [vmem:[%s3694_s29 + $0x84] sm:$0xf] %v2844_v36  ;;  %v2585_v45 = vpop.f32.mrf.mxu3  ;;  %v1949_v48 = vadd.f32 %v4949_v3, %v1302_v0 }
 0x233   : > { %2955 = vst [vmem:[%s3694_s29 + $0x88] sm:$0x1] %v2845_v40  ;;  %v2704_v22 = vmax.f32 %v2672_v41, 0.0  ;;  %v1304_v60 = vpop.f32.mrf.mxu1 }
 0x234   : > { %v2421_v33 = vpop.f32.mrf.mxu0 }
 0x235   : > { %v2736_v13 = vpack.c.bf16 %v2704_v22, %v2704_v22  ;;  %v2473_v25 = vadd.f32 %v2421_v33, %v2259_v35  ;;  %v1305_v35 = vadd.f32 %v1304_v60, %v4950_v21 }
 0x237   : > { %v2846_v15 = vrot.slane %v2736_v13, 7  ;;  %v2637_v19 = vadd.f32 %v2585_v45, %v2473_v25  ;;  %v4951_v13 = vld [vmem:[#allocation32_spill] sm:$0xff] }
 0x238   : > { %v2263_v25 = vadd.f32 %v4951_v13, %v1949_v48  ;;  %v4962_v13 = vld [vmem:[#allocation33_spill] sm:$0xff] }
 0x239   : > { %2956 = vst [vmem:[%s3694_s29 + $0x90] sm:$0xe] %v2846_v15  ;;  %v2673_v8 = vadd.f32 %v4486_v28, %v2637_v19  ;;  %v2847_v17 = vrot.slane %v2846_v15, 4 }
 0x23a   : > { %v2588_v42 = vpop.f32.mrf.mxu3 }
 0x23b   : > { %v2705_v31 = vmax.f32 %v2673_v8, 0.0  ;;  %v1306_v1 = vpop.f32.mrf.mxu1  ;;  %v1950_v8 = vadd.f32 %v4952_v29, %v1305_v35 }
 0x23c   : > { %v2424_v6 = vpop.f32.mrf.mxu0 }
 0x23d   : > { %v2737_v2 = vpack.c.bf16 %v2705_v31, %v2705_v31  ;;  %v2474_v39 = vadd.f32 %v2424_v6, %v2260_v58  ;;  %v1307_v58 = vadd.f32 %v1306_v1, %v4953_v32 }
 0x23f   : > { %v2848_v5 = vrot.slane %v2737_v2, 7  ;;  %v2638_v49 = vadd.f32 %v2588_v42, %v2474_v39  ;;  %v4954_v2 = vld [vmem:[#allocation35_spill] sm:$0xff] }
 0x240   : > { %v2264_v39 = vadd.f32 %v4954_v2, %v1950_v8  ;;  %v4965_v2 = vld [vmem:[#allocation36_spill] sm:$0xff] }
 0x241   : > { %v2849_v56 = vsel %vm4526_vm6, %v2847_v17, %v2848_v5  ;;  %v2850_v27 = vrot.slane %v2848_v5, 4  ;;  %v2674_v30 = vadd.f32 %v4486_v28, %v2638_v49  ;;  %v4955_v5 = vld [vmem:[#allocation48_spill] sm:$0xff] }
 0x242   : > { %2957 = vst [vmem:[%s3694_s29 + $0x94] sm:$0xf] %v2849_v56  ;;  %v2590_v51 = vpop.f32.mrf.mxu3  ;;  %v1951_v49 = vadd.f32 %v4955_v5, %v1307_v58 }
 0x243   : > { %2958 = vst [vmem:[%s3694_s29 + $0x98] sm:$0x1] %v2850_v27  ;;  %v2706_v34 = vmax.f32 %v2674_v30, 0.0  ;;  %v1309_v19 = vpop.f32.mrf.mxu1 }
 0x244   : > { %v2426_v54 = vpop.f32.mrf.mxu0 }
 0x245   : > { %v2738_v61 = vpack.c.bf16 %v2706_v34, %v2706_v34  ;;  %v2475_v53 = vadd.f32 %v2426_v54, %v2261_v26  ;;  %v1310_v26 = vadd.f32 %v1309_v19, %v4956_v59  ;;  %v3610_v59 = vld [vmem:[%s4847_s4] ss:$0 sm:$0xff] }
 0x247   : > { %v2851_v44 = vrot.slane %v2738_v61, 7  ;;  %v2639_v57 = vadd.f32 %v2590_v51, %v2475_v53  ;;  %v4957_v61 = vld [vmem:[#allocation38_spill] sm:$0xff] }
 0x248   : > { %v2265_v53 = vadd.f32 %v4957_v61, %v1951_v49  ;;  %v4968_v61 = vld [vmem:[#allocation40_spill] sm:$0xff] }
 0x249   : > { %2959 = vst [vmem:[%s3694_s29 + $0xa0] sm:$0xe] %v2851_v44  ;;  %v2675_v11 = vadd.f32 %v4486_v28, %v2639_v57  ;;  %v2852_v36 = vrot.slane %v2851_v44, 4  ;;  %v4958_v57 = vld [vmem:[#allocation51_spill] sm:$0xff] }
 0x24a   : > { %v2593_v7 = vpop.f32.mrf.mxu3 }
 0x24b   : > { %v2707_v4 = vmax.f32 %v2675_v11, 0.0  ;;  %v1311_v60 = vpop.f32.mrf.mxu1  ;;  %v1952_v11 = vadd.f32 %v4958_v57, %v1310_v26 }
 0x24c   : > { %v2429_v12 = vpop.f32.mrf.mxu0 }
 0x24d   : > { %v2739_v9 = vpack.c.bf16 %v2707_v4, %v2707_v4  ;;  %v2476_v38 = vadd.f32 %v2429_v12, %v2262_v52  ;;  %v4959_v52 = vld [vmem:[#allocation30_spill] sm:$0xff] }
 0x24e   : > { %v1312_v1 = vadd.f32 %v1311_v60, %v4959_v52 }
 0x24f   : > { %v2853_v40 = vrot.slane %v2739_v9, 7  ;;  %v2640_v41 = vadd.f32 %v2593_v7, %v2476_v38  ;;  %v4960_v9 = vld [vmem:[#allocation42_spill] sm:$0xff] }
 0x250   : > { %v2266_v38 = vadd.f32 %v4960_v9, %v1952_v11 }
 0x251   : > { %v2854_v45 = vsel %vm4526_vm6, %v2852_v36, %v2853_v40  ;;  %v2855_v10 = vrot.slane %v2853_v40, 4  ;;  %v2676_v14 = vadd.f32 %v4486_v28, %v2640_v41  ;;  %v4961_v40 = vld [vmem:[#allocation54_spill] sm:$0xff] }
 0x252   : > { %2960 = vst [vmem:[%s3694_s29 + $0xa4] sm:$0xf] %v2854_v45  ;;  %v2595_v22 = vpop.f32.mrf.mxu3  ;;  %v1953_v41 = vadd.f32 %v4961_v40, %v1312_v1 }
 0x253   : > { %2961 = vst [vmem:[%s3694_s29 + $0xa8] sm:$0x1] %v2855_v10  ;;  %v2708_v33 = vmax.f32 %v2676_v14, 0.0  ;;  %v1314_v4 = vpop.f32.mrf.mxu1 }
 0x254   : > { %v2431_v18 = vpop.f32.mrf.mxu0 }
 0x255   : > { %v2740_v20 = vpack.c.bf16 %v2708_v33, %v2708_v33  ;;  %v2477_v15 = vadd.f32 %v2431_v18, %v2263_v25  ;;  %v1315_v25 = vadd.f32 %v1314_v4, %v4962_v13 }
 0x257   : > { %v2856_v42 = vrot.slane %v2740_v20, 7  ;;  %v2641_v24 = vadd.f32 %v2595_v22, %v2477_v15  ;;  %v4963_v20 = vld [vmem:[#allocation46_spill] sm:$0xff] }
 0x258   : > { %v2267_v15 = vadd.f32 %v4963_v20, %v1953_v41  ;;  %v4974_v20 = vld [vmem:[#allocation58_spill] sm:$0xff] }
 0x259   : > { %2962 = vst [vmem:[%s3694_s29 + $0xb0] sm:$0xe] %v2856_v42  ;;  %v2677_v16 = vadd.f32 %v4486_v28, %v2641_v24  ;;  %v2857_v56 = vrot.slane %v2856_v42, 4  ;;  %v4964_v24 = vld [vmem:[#allocation57_spill] sm:$0xff] }
 0x25a   : > { %v2598_v31 = vpop.f32.mrf.mxu3 }
 0x25b   : > { %v2709_v6 = vmax.f32 %v2677_v16, 0.0  ;;  %v1316_v19 = vpop.f32.mrf.mxu1  ;;  %v1954_v16 = vadd.f32 %v4964_v24, %v1315_v25 }
 0x25c   : > { %v2434_v37 = vpop.f32.mrf.mxu0 }
 0x25d   : > { %v2741_v47 = vpack.c.bf16 %v2709_v6, %v2709_v6  ;;  %v2478_v17 = vadd.f32 %v2434_v37, %v2264_v39  ;;  %v1317_v39 = vadd.f32 %v1316_v19, %v4965_v2 }
 0x25f   : > { %v2858_v27 = vrot.slane %v2741_v47, 7  ;;  %v2642_v30 = vadd.f32 %v2598_v31, %v2478_v17  ;;  %v4966_v47 = vld [vmem:[#allocation49_spill] sm:$0xff] }
 0x260   : > { %v2268_v17 = vadd.f32 %v4966_v47, %v1954_v16 }
 0x261   : > { %v2859_v51 = vsel %vm4526_vm6, %v2857_v56, %v2858_v27  ;;  %v2860_v43 = vrot.slane %v2858_v27, 4  ;;  %v2678_v46 = vadd.f32 %v4486_v28, %v2642_v30  ;;  %v4967_v30 = vld [vmem:[#allocation60_spill] sm:$0xff] }
 0x262   : > { %2963 = vst [vmem:[%s3694_s29 + $0xb4] sm:$0xf] %v2859_v51  ;;  %v2600_v34 = vpop.f32.mrf.mxu3  ;;  %v1955_v60 = vadd.f32 %v4967_v30, %v1317_v39 }
 0x263   : > { %2964 = vst [vmem:[%s3694_s29 + $0xb8] sm:$0x1] %v2860_v43  ;;  %v2710_v54 = vmax.f32 %v2678_v46, 0.0  ;;  %v1319_v27 = vpop.f32.mrf.mxu1 }
 0x264   : > { %v2436_v63 = vpop.f32.mrf.mxu0 }
 0x265   : > { %v2742_v23 = vpack.c.bf16 %v2710_v54, %v2710_v54  ;;  %v2479_v44 = vadd.f32 %v2436_v63, %v2265_v53  ;;  %v1320_v53 = vadd.f32 %v1319_v27, %v4968_v61 }
 0x267   : > { %v2861_v7 = vrot.slane %v2742_v23, 7  ;;  %v2643_v50 = vadd.f32 %v2600_v34, %v2479_v44  ;;  %v4969_v23 = vld [vmem:[#allocation52_spill] sm:$0xff] }
 0x268   : > { %v2269_v44 = vadd.f32 %v4969_v23, %v1955_v60 }
 0x269   : > { %2965 = vst [vmem:[%s3694_s29 + $0xc0] sm:$0xe] %v2861_v7  ;;  %v2679_v0 = vadd.f32 %v4486_v28, %v2643_v50  ;;  %v2862_v45 = vrot.slane %v2861_v7, 4  ;;  %v4970_v50 = vld [vmem:[#allocation61_spill] sm:$0xff] }
 0x26a   : > { %v2603_v55 = vpop.f32.mrf.mxu3 }
 0x26b   : > { %v2711_v12 = vmax.f32 %v2679_v0, 0.0  ;;  %v1956_v0 = vadd.f32 %v4970_v50, %v1320_v53  ;;  %v1321_v52 = vpop.f32.mrf.mxu1 }
 0x26c   : > { %v2439_v3 = vpop.f32.mrf.mxu0 }
 0x26d   : > { %v2743_v48 = vpack.c.bf16 %v2711_v12, %v2711_v12  ;;  %v2480_v36 = vadd.f32 %v2439_v3, %v2266_v38  ;;  %v4971_v12 = vld [vmem:[#allocation44_spill] sm:$0xff]  ;;  %v4972_v3 = vld [vmem:[#allocation55_spill] sm:$0xff] }
 0x26e   : > { %v1322_v9 = vadd.f32 %v1321_v52, %v4971_v12 }
 0x26f   : > { %v2863_v10 = vrot.slane %v2743_v48, 7  ;;  %v2644_v14 = vadd.f32 %v2603_v55, %v2480_v36  ;;  %v2270_v48 = vadd.f32 %v4972_v3, %v1956_v0 }
 0x271   : > { %v2864_v22 = vsel %vm4526_vm6, %v2862_v45, %v2863_v10  ;;  %v2865_v21 = vrot.slane %v2863_v10, 4  ;;  %v2680_v35 = vadd.f32 %v4486_v28, %v2644_v14  ;;  %v4973_v10 = vld [vmem:[#allocation62_spill] sm:$0xff] }
 0x272   : > { %2966 = vst [vmem:[%s3694_s29 + $0xc4] sm:$0xf] %v2864_v22  ;;  %v2605_v33 = vpop.f32.mrf.mxu3  ;;  %v1957_v14 = vadd.f32 %v4973_v10, %v1322_v9 }
 0x273   : > { %2967 = vst [vmem:[%s3694_s29 + $0xc8] sm:$0x1] %v2865_v21  ;;  %v2712_v18 = vmax.f32 %v2680_v35, 0.0 }
 0x274   : > { %v2441_v29 = vpop.f32.mrf.mxu0 }
 0x275   : > { %v2744_v8 = vpack.c.bf16 %v2712_v18, %v2712_v18  ;;  %v2481_v42 = vadd.f32 %v2441_v29, %v2267_v15  ;;  %v2271_v15 = vadd.f32 %v4974_v20, %v1957_v14 }
 0x277   : > { %v2866_v31 = vrot.slane %v2744_v8, 7  ;;  %v2645_v32 = vadd.f32 %v2605_v33, %v2481_v42 }
 0x279   : > { %2968 = vst [vmem:[%s3694_s29 + $0xd0] sm:$0xe] %v2866_v31  ;;  %v2681_v58 = vadd.f32 %v4486_v28, %v2645_v32  ;;  %v2867_v51 = vrot.slane %v2866_v31, 4 }
 0x27a   : > { %v2608_v6 = vpop.f32.mrf.mxu3 }
 0x27b   : > { %v2713_v37 = vmax.f32 %v2681_v58, 0.0 }
 0x27c   : > { %v2444_v5 = vpop.f32.mrf.mxu0 }
 0x27d   : > { %v2745_v49 = vpack.c.bf16 %v2713_v37, %v2713_v37  ;;  %v2482_v56 = vadd.f32 %v2444_v5, %v2268_v17 }
 0x27f   : > { %v2868_v43 = vrot.slane %v2745_v49, 7  ;;  %v2646_v46 = vadd.f32 %v2608_v6, %v2482_v56 }
 0x281   : > { %v2869_v28 = vsel %vm4526_vm6, %v2867_v51, %v2868_v43  ;;  %v2870_v34 = vrot.slane %v2868_v43, 4  ;;  %v2682_v26 = vadd.f32 %v3610_v59, %v2646_v46 }
 0x282   : > { %2969 = vst [vmem:[%s3694_s29 + $0xd4] sm:$0xf] %v2869_v28  ;;  %v2610_v54 = vpop.f32.mrf.mxu3 }
 0x283   : > { %2970 = vst [vmem:[%s3694_s29 + $0xd8] sm:$0x1] %v2870_v34  ;;  %v2714_v63 = vmax.f32 %v2682_v26, 0.0 }
 0x284   : > { %v2446_v57 = vpop.f32.mrf.mxu0 }
 0x285   : > { %v2746_v11 = vpack.c.bf16 %v2714_v63, %v2714_v63  ;;  %v2483_v7 = vadd.f32 %v2446_v57, %v2269_v44 }
 0x287   : > { %v2871_v4 = vrot.slane %v2746_v11, 7  ;;  %v2647_v55 = vadd.f32 %v2610_v54, %v2483_v7 }
 0x289   : > { %2971 = vst [vmem:[%s3694_s29 + $0xe0] sm:$0xe] %v2871_v4  ;;  %v2683_v1 = vadd.f32 %v3610_v59, %v2647_v55  ;;  %v2872_v22 = vrot.slane %v2871_v4, 4 }
 0x28a   : > { %v2613_v36 = vpop.f32.mrf.mxu3 }
 0x28b   : > { %v2715_v38 = vmax.f32 %v2683_v1, 0.0 }
 0x28c   : > { %v2449_v40 = vpop.f32.mrf.mxu0 }
 0x28d   : > { %v2747_v41 = vpack.c.bf16 %v2715_v38, %v2715_v38  ;;  %v2484_v45 = vadd.f32 %v2449_v40, %v2270_v48 }
 0x28f   : > { %v2873_v21 = vrot.slane %v2747_v41, 7  ;;  %v2648_v35 = vadd.f32 %v2613_v36, %v2484_v45 }
 0x291   : > { %v2874_v33 = vsel %vm4526_vm6, %v2872_v22, %v2873_v21  ;;  %v2875_v13 = vrot.slane %v2873_v21, 4  ;;  %v2684_v25 = vadd.f32 %v3610_v59, %v2648_v35 }
 0x292   : > { %2972 = vst [vmem:[%s3694_s29 + $0xe4] sm:$0xf] %v2874_v33  ;;  %v2615_v42 = vpop.f32.mrf.mxu3 }
 0x293   : > { %2973 = vst [vmem:[%s3694_s29 + $0xe8] sm:$0x1] %v2875_v13  ;;  %v2716_v18 = vmax.f32 %v2684_v25, 0.0 }
 0x294   : > { %v2451_v19 = vpop.f32.mrf.mxu0 }
 0x295   : > { %v2748_v29 = vpack.c.bf16 %v2716_v18, %v2716_v18  ;;  %v2485_v8 = vadd.f32 %v2451_v19, %v2271_v15 }
 0x297   : > { %v2876_v24 = vrot.slane %v2748_v29, 7  ;;  %v2649_v16 = vadd.f32 %v2615_v42, %v2485_v8 }
 0x299   : > { %2974 = vst [vmem:[%s3694_s29 + $0xf0] sm:$0xe] %v2876_v24  ;;  %v2685_v31 = vadd.f32 %v3610_v59, %v2649_v16  ;;  %v2877_v6 = vrot.slane %v2876_v24, 4 }
 0x29b   : > { %v2717_v32 = vmax.f32 %v2685_v31, 0.0 }
 0x29d   : > { %v2749_v58 = vpack.c.bf16 %v2717_v32, %v2717_v32 }
 0x29f   : > { %v2878_v2 = vrot.slane %v2749_v58, 7 }
 0x2a1   : > { %v2879_v39 = vsel %vm4526_vm6, %v2877_v6, %v2878_v2  ;;  %v2880_v37 = vrot.slane %v2878_v2, 4 }
 0x2a2   : > { %2975 = vst [vmem:[%s3694_s29 + $0xf4] sm:$0xf] %v2879_v39 }
 0x2a3   : > { %2976 = vst [vmem:[%s3694_s29 + $0xf8] sm:$0x1] %v2880_v37 }
 0x2a4 PF: > { %s15_s20 = sadd.s32 1, %s3633_s20   ;;  %s4975_s18 = smov %s3629_s19 }
 0x2a5   : > { %p12_p5 = scmp.ge.s32.totalorder %s15_s20, 4   ;;  %s4976_s19 = smov %s4978_s1 }
 0x2a7   :  { %14 = sbr.rel (!%p12_p5) target bundleno = 2 (0x2), region = 77 }

</bundles_post_ra>
